<compile_context>
chip_gen: v7x
topology: tpu7x:2x2x1
jax: 0.10.0
libtpu: 0.0.40
codegen_flags: <defaults>
</compile_context>

<pallas_src>
import jax
import jax.numpy as jnp
import numpy as np
from jax.experimental import pallas as pl
from jax.experimental.pallas import tpu as pltpu  # noqa: F401  (kept for TPU-specific tuning hooks)

# ----------------------------- configuration -------------------------------
NUM_CLASSES     = 10
INPUT_FEATURES  = 32
INPUT_CHANNELS  = 1
NUM_CONVS       = 3
CONV_CHANNELS   = [8, 8, 8]
KERNEL_SIZES    = [3, 3, 3]
NUM_LSTMS       = 2
LSTM_CHANNELS   = 32
DOWN_SAMPLE     = 2
OUT_PAD         = 128      # lane-padded width of the logits slab (>= NUM_CLASSES)

BATCH = 2
SEQ_T = 16

NEG = -1e30                # python float -> jaxpr literal (never a captured const)


def get_padding(k):
    return k // 2


def downsample_length(length, stride):
    # MaxPool(kernel=3, stride=stride, padding=1)
    return (length + 2 * 1 - 3) // stride + 1


# ----------------------- host-side weight transforms ------------------------
def _build_conv_mats(w, F):
    """Fold the F-direction taps + channel mixing of a kxk conv into 3 big
    matmul weights, one per T-direction tap j:
        W_j[ci*F + f_in, co*F + f_out] = w[f_in - f_out + 1, j, ci, co]."""
    w = np.asarray(w, np.float32)
    k, _, Cin, Cout = w.shape
    mats = np.zeros((k, Cin * F, Cout * F), np.float32)
    ci = np.arange(Cin)[:, None]
    co = np.arange(Cout)[None, :]
    for j in range(k):
        for i in range(k):
            di = i - (k // 2)
            for fo in range(F):
                fi = fo + di
                if 0 <= fi < F:
                    mats[j, ci * F + fi, co * F + fo] = w[i, j]
    return mats


def _build_conv_bias(b, F):
    # bias_row[co*F + f] = b[co]
    return jnp.asarray(np.repeat(np.asarray(b, np.float32), F)[None, :])


def _build_pool_q(C, F, FP):
    # lane selection: col c*F + 2*f'  ->  c*FP + f'
    q = np.zeros((C * F, C * FP), np.float32)
    for c in range(C):
        for fp_ in range(FP):
            q[c * F + 2 * fp_, c * FP + fp_] = 1.0
    return q


def _combine_bilstm(wih_f, whh_f, b_f, wih_r, whh_r, b_r, H):
    """Combine fwd/rev LSTM weights into the kernel gate layout
         [ i_f i_r | f_f f_r | o_f o_r | g_f g_r ]   (each block H lanes wide)
       so the three sigmoid gates are lane-contiguous.
       whh rows: [h_fwd (0:H) | h_rev (H:2H)], block-diagonal per direction."""
    wih_f, whh_f, b_f = (np.asarray(a, np.float32) for a in (wih_f, whh_f, b_f))
    wih_r, whh_r, b_r = (np.asarray(a, np.float32) for a in (wih_r, whh_r, b_r))
    I = wih_f.shape[0]
    wih_c = np.zeros((I, 8 * H), np.float32)
    whh_c = np.zeros((2 * H, 8 * H), np.float32)
    b_c = np.zeros((1, 8 * H), np.float32)
    # PyTorch gate order (i, f, g, o) -> destination blocks (i, f, o, g)
    for gt, dst in enumerate((0, 1, 3, 2)):
        src = slice(gt * H, (gt + 1) * H)
        dst_f = slice(dst * 2 * H, dst * 2 * H + H)
        dst_r = slice(dst * 2 * H + H, (dst + 1) * 2 * H)
        wih_c[:, dst_f] = wih_f[:, src]
        wih_c[:, dst_r] = wih_r[:, src]
        whh_c[:H, dst_f] = whh_f[:, src]
        whh_c[H:, dst_r] = whh_r[:, src]
        b_c[:, dst_f] = b_f[:, src]
        b_c[:, dst_r] = b_r[:, src]
    return wih_c, whh_c, b_c


# ----------------------------- parameters -----------------------------------
def init_params(key):
    params = {}
    keys = iter(jax.random.split(key, 128))

    def nrm(shape, scale=0.1):
        return (scale * jax.random.normal(next(keys), shape)).astype(jnp.float32)

    k0 = KERNEL_SIZES[0]
    params['conv0_w'] = nrm((k0, k0, INPUT_CHANNELS, CONV_CHANNELS[0]))
    params['conv0_b'] = nrm((CONV_CHANNELS[0],))
    for i in range(1, NUM_CONVS):
        k = KERNEL_SIZES[i]
        assert CONV_CHANNELS[i - 1] == CONV_CHANNELS[i], \
            "identity residual assumed (in_ch == out_ch)"
        params[f'conv{i}_w'] = nrm((k, k, CONV_CHANNELS[i - 1], CONV_CHANNELS[i]))
        params[f'conv{i}_b'] = nrm((CONV_CHANNELS[i],))

    H = LSTM_CHANNELS
    d_in = CONV_CHANNELS[-1] * downsample_length(INPUT_FEATURES, DOWN_SAMPLE) + 1
    for i in range(NUM_LSTMS):
        isz = d_in if i == 0 else 2 * H
        if i > 0:
            params[f'ln{i}_g'] = jnp.ones((1, isz), jnp.float32)
            params[f'ln{i}_b'] = jnp.zeros((1, isz), jnp.float32)
        for d in ('f', 'r'):
            params[f'lstm{i}_wih_{d}'] = nrm((isz, 4 * H))
            params[f'lstm{i}_whh_{d}'] = nrm((H, 4 * H))
            params[f'lstm{i}_bias_{d}'] = nrm((1, 4 * H))

    params['fc1_w'] = nrm((2 * H, H))
    params['fc1_b'] = nrm((1, H))
    params['fc2_w'] = nrm((H, NUM_CLASSES))
    params['fc2_b'] = nrm((1, NUM_CLASSES))
    return params


def prepare_params(params):
    """One-time host-side transform of raw params into kernel-ready tensors."""
    F = INPUT_FEATURES
    C = CONV_CHANNELS[-1]
    H = LSTM_CHANNELS
    FP = downsample_length(F, DOWN_SAMPLE)
    bf16 = jnp.bfloat16
    prep = {}

    # CNN -> shifted-matmul weights (lane layout: ci*F + f), stored bf16.
    prep['wc1'] = jnp.asarray(_build_conv_mats(params['conv0_w'], F), bf16)  # (3, F, C*F)
    prep['bc1'] = _build_conv_bias(params['conv0_b'], F)                     # (1, C*F)
    prep['wc2'] = jnp.asarray(_build_conv_mats(params['conv1_w'], F), bf16)
    prep['bc2'] = _build_conv_bias(params['conv1_b'], F)
    prep['wc3'] = jnp.asarray(_build_conv_mats(params['conv2_w'], F), bf16)
    prep['bc3'] = _build_conv_bias(params['conv2_b'], F)

    q_sel = _build_pool_q(C, F, FP)                                          # (C*F, C*FP)

    # biLSTM layers -> combined, gate-interleaved weights.
    for l in range(NUM_LSTMS):
        wih_c, whh_c, b_c = _combine_bilstm(
            params[f'lstm{l}_wih_f'], params[f'lstm{l}_whh_f'], params[f'lstm{l}_bias_f'],
            params[f'lstm{l}_wih_r'], params[f'lstm{l}_whh_r'], params[f'lstm{l}_bias_r'], H)
        if l == 0:
            D = C * FP                                   # 128 main features
            # fold the stride-2 lane selection into the input projection
            prep['qw0'] = jnp.asarray(q_sel @ wih_c[:D], bf16)   # (C*F, 8H)
            prep['won0'] = jnp.asarray(wih_c[D:D + 1])           # (1, 8H) onset row
        else:
            prep['wih1'] = jnp.asarray(wih_c, bf16)              # (2H, 8H)
        prep[f'whh{l}'] = jnp.asarray(whh_c)                     # (2H, 8H) f32
        prep[f'b{l}'] = jnp.asarray(b_c)                         # (1, 8H)  f32

    prep['ln1_g'] = params['ln1_g']
    prep['ln1_b'] = params['ln1_b']
    prep['fc1_w'] = params['fc1_w']
    prep['fc1_b'] = params['fc1_b']

    # Pad fc2 to a 128-lane slab so the final store is unmasked/lane-dense.
    fc2w = np.zeros((H, OUT_PAD), np.float32)
    fc2w[:, :NUM_CLASSES] = np.asarray(params['fc2_w'])
    fc2b = np.zeros((1, OUT_PAD), np.float32)
    fc2b[:, :NUM_CLASSES] = np.asarray(params['fc2_b'])
    prep['fc2_w'] = jnp.asarray(fc2w)
    prep['fc2_b'] = jnp.asarray(fc2b)
    return prep


# ----------------------------- fused kernel ---------------------------------
def _make_crnn_kernel(B, T, F, C, TP, H):
    BT = B * T
    TPB = TP * B
    CF = C * F
    f32 = jnp.float32
    bf16 = jnp.bfloat16

    def kernel(x_ref, on_ref, p_ref, r_ref,
               wc1_ref, bc1_ref, wc2_ref, bc2_ref, wc3_ref, bc3_ref,
               qw0_ref, won0_ref, b0_ref, whh0_ref,
               lng_ref, lnb_ref, wih1_ref, b1_ref, whh1_ref,
               fc1w_ref, fc1b_ref, fc2w_ref, fc2b_ref,
               out_ref):
        # per-row "first / last frame of its clip" masks (rows are b*T + t)
        row_t = jax.lax.broadcasted_iota(jnp.int32, (BT, 1), 0) % T
        first = row_t == 0
        last = row_t == T - 1

        def shift_time(X, fill):
            # neighbours at t-1 / t+1 with `fill` padding; static sublane
            # slice + concat keeps the shift off the MXU (no Sm/Sp matmuls).
            pad = jnp.full((1, X.shape[1]), fill, X.dtype)
            xm = jnp.where(first, fill, jnp.concatenate([pad, X[:-1, :]], axis=0))
            xp = jnp.where(last, fill, jnp.concatenate([X[1:, :], pad], axis=0))
            return xm, xp

        def conv_mm(Xb, w_ref, b_ref):
            # 3x3 "same" conv as 3 time-tap matmuls; freq taps + channel mix
            # folded into the block weights; bf16 operands, f32 accumulation.
            xm, xp = shift_time(Xb, 0.0)
            return (jnp.dot(xm, w_ref[0], preferred_element_type=f32)
                    + jnp.dot(Xb, w_ref[1], preferred_element_type=f32)
                    + jnp.dot(xp, w_ref[2], preferred_element_type=f32)
                    + b_ref[...])

        # ------------------------------- CNN --------------------------------
        # first layer is a bare Conv2d (no activation), per the reference.
        y = conv_mm(x_ref[...].astype(bf16), wc1_ref, bc1_ref)       # (BT, C*F) f32
        # TODO(synk): ResCNNLayer source not provided; assumed relu(BN(conv(x)))+x
        # with eval-mode BatchNorm folded to identity.
        y = jnp.maximum(conv_mm(y.astype(bf16), wc2_ref, bc2_ref), 0.0) + y
        y = jnp.maximum(conv_mm(y.astype(bf16), wc3_ref, bc3_ref), 0.0) + y

        # ------------------ MaxPool2d(3, stride=2, pad=1) -------------------
        ym, yp = shift_time(y, NEG)
        mt = jnp.maximum(jnp.maximum(y, ym), yp)                     # time-window max
        lane = jax.lax.broadcasted_iota(jnp.int32, (BT, CF), 1)
        negcol = jnp.full((BT, 1), NEG, f32)
        f_prev = jnp.where(lane % F == 0, NEG,
                           jnp.concatenate([negcol, mt[:, :-1]], axis=1))
        f_next = jnp.where(lane % F == F - 1, NEG,
                           jnp.concatenate([mt[:, 1:], negcol], axis=1))
        mp = jnp.maximum(jnp.maximum(mt, f_prev), f_next)            # (BT, C*F)

        # stride-2 row selection + relayout to sequence rows (t'*B + b);
        # the stride-2 lane selection (q_sel) is folded into qw0 at prep time.
        xsel = jnp.dot(p_ref[...], mp, preferred_element_type=f32)   # (TPB, C*F)

        # --------------- onset MaxPool1d(3, stride=2, pad=1) ----------------
        on = on_ref[...]                                             # (BT, 1)
        om, op_ = shift_time(on, NEG)
        on_t = jnp.maximum(jnp.maximum(on, om), op_)
        on_sel = jnp.dot(p_ref[...], on_t, preferred_element_type=f32)   # (TPB, 1)
        on_gate = on_sel * won0_ref[...]                             # (TPB, 8H) rank-1

        # --------------- fused bidirectional LSTM layers --------------------
        lane_g = jax.lax.broadcasted_iota(jnp.int32, (TPB, 8 * H), 1)
        fwd_mask = (lane_g % (2 * H)) < H            # forward-direction gate lanes

        def merge_directions(gx):
            # forward lanes keep time order; reverse lanes take time-reversed
            # rows (folded once, before the serial recurrence).
            gx_rev = jnp.dot(r_ref[...], gx, preferred_element_type=f32)
            return jnp.where(fwd_mask, gx, gx_rev)

        def bilstm(gxc, whh):
            # gxc: (TPB, 8H) hoisted + direction-merged input gates.
            # Fully unrolled; h/c stay in vregs, sequence assembled with one
            # concat (no per-step masked partial stores / scratch round-trip).
            h = jnp.zeros((B, 2 * H), f32)
            c = jnp.zeros((B, 2 * H), f32)
            hs_f, hs_r = [], []
            for s in range(TP):
                g = gxc[B * s:B * (s + 1), :] + jnp.dot(h, whh,
                                                        preferred_element_type=f32)
                sg = jax.nn.sigmoid(g[:, :6 * H])       # [ i | f | o ] contiguous
                gg = jnp.tanh(g[:, 6 * H:])             # g gate
                c = sg[:, 2 * H:4 * H] * c + sg[:, :2 * H] * gg
                h = sg[:, 4 * H:6 * H] * jnp.tanh(c)
                hs_f.append(h[:, :H])                   # fwd dir, time s
                hs_r.append(h[:, H:])                   # rev dir, time TP-1-s
            seq_f = jnp.concatenate(hs_f, axis=0)            # rows t*B+b
            seq_r = jnp.concatenate(hs_r[::-1], axis=0)      # back to time order
            return jnp.concatenate([seq_f, seq_r], axis=1)   # (TPB, 2H)

        # layer 0 (no LayerNorm): hoisted input projection for both directions
        gx0 = (jnp.dot(xsel.astype(bf16), qw0_ref[...], preferred_element_type=f32)
               + on_gate + b0_ref[...])                              # (TPB, 8H)
        seq0 = bilstm(merge_directions(gx0), whh0_ref[...])          # (TPB, 2H)

        # layer 1: LayerNorm + biLSTM
        # TODO(synk): RNNLayer source not provided; assumed LayerNorm (i>0) + biLSTM.
        mu = jnp.mean(seq0, axis=-1, keepdims=True)
        var = jnp.mean((seq0 - mu) ** 2, axis=-1, keepdims=True)
        x1 = (seq0 - mu) * jax.lax.rsqrt(var + 1e-5) * lng_ref[...] + lnb_ref[...]
        gx1 = (jnp.dot(x1.astype(bf16), wih1_ref[...], preferred_element_type=f32)
               + b1_ref[...])
        seq1 = bilstm(merge_directions(gx1), whh1_ref[...])          # (TPB, 2H)

        # ----------------------------- dense head ---------------------------
        hd = jnp.maximum(jnp.dot(seq1, fc1w_ref[...], preferred_element_type=f32)
                         + fc1b_ref[...], 0.0)                       # (TPB, H)
        out_ref[...] = (jnp.dot(hd, fc2w_ref[...], preferred_element_type=f32)
                        + fc2b_ref[...])                             # (TPB, OUT_PAD)

    return kernel


# ----------------------------- forward pass ----------------------------------
def forward(prep, x, onsets):
    # x: (B, F, T) ; onsets: (B, T)
    B, F, T = x.shape
    assert F == INPUT_FEATURES
    C = CONV_CHANNELS[-1]
    H = LSTM_CHANNELS
    TP = downsample_length(T, DOWN_SAMPLE)

    # minimal input formatting: rows = b*T + t, lanes = f / onset column
    x0 = jnp.transpose(x, (0, 2, 1)).reshape(B * T, F).astype(jnp.float32)
    on0 = onsets.astype(jnp.float32).reshape(B * T, 1)

    # shape-dependent 0/1 selection matrices (trace-time constants, kernel operands)
    p = np.zeros((TP * B, B * T), np.float32)
    for tp_ in range(TP):
        for b in range(B):
            p[tp_ * B + b, b * T + 2 * tp_] = 1.0          # stride-2 row pick + relayout
    r = np.zeros((TP * B, TP * B), np.float32)
    for tp_ in range(TP):
        for b in range(B):
            r[tp_ * B + b, (TP - 1 - tp_) * B + b] = 1.0   # per-sample time reversal

    # TODO(synk): on v7x a grid=(B,) with dimension_semantics=("parallel",) would
    # split the two independent per-sample pipelines across the 2 TensorCores;
    # kept gridless here (single-TC v5e/v6e, and correctness-first).
    kernel = _make_crnn_kernel(B=B, T=T, F=F, C=C, TP=TP, H=H)
    out = pl.pallas_call(
        kernel,
        out_shape=jax.ShapeDtypeStruct((TP * B, OUT_PAD), jnp.float32),
    )(x0, on0, jnp.asarray(p), jnp.asarray(r),
      prep['wc1'], prep['bc1'], prep['wc2'], prep['bc2'], prep['wc3'], prep['bc3'],
      prep['qw0'], prep['won0'], prep['b0'], prep['whh0'],
      prep['ln1_g'], prep['ln1_b'], prep['wih1'], prep['b1'], prep['whh1'],
      prep['fc1_w'], prep['fc1_b'], prep['fc2_w'], prep['fc2_b'])

    # single wrapper slice of the lane-padded logits slab
    return out[:, :NUM_CLASSES].reshape(TP, B, NUM_CLASSES)     # (T', B, classes)


# ----------------------------- main ------------------------------------------
if __name__ == "__main__":
    key = jax.random.PRNGKey(0)
    k_p, k_x, k_o = jax.random.split(key, 3)

    params = init_params(k_p)
    prep = prepare_params(params)

    x = jax.random.normal(k_x, (BATCH, INPUT_FEATURES, SEQ_T), dtype=jnp.float32)
    onsets = jax.random.uniform(k_o, (BATCH, SEQ_T), dtype=jnp.float32)

    fwd = jax.jit(forward)
    out = jax.block_until_ready(fwd(prep, x, onsets))

    TP = downsample_length(SEQ_T, DOWN_SAMPLE)
    assert out.shape == (TP, BATCH, NUM_CLASSES), out.shape
    assert bool(jnp.all(jnp.isfinite(out)))
    print("KERNEL_OK")
</pallas_src>

<mosaic_0001>
module attributes {stable_mosaic.version = 11 : i64} {
  func.func @kernel(%arg0: memref<32x32xf32, #tpu.memory_space<vmem>>, %arg1: memref<32x1xf32, #tpu.memory_space<vmem>>, %arg2: memref<16x32xf32, #tpu.memory_space<vmem>>, %arg3: memref<16x16xf32, #tpu.memory_space<vmem>>, %arg4: memref<3x32x256xbf16, #tpu.memory_space<vmem>>, %arg5: memref<1x256xf32, #tpu.memory_space<vmem>>, %arg6: memref<3x256x256xbf16, #tpu.memory_space<vmem>>, %arg7: memref<1x256xf32, #tpu.memory_space<vmem>>, %arg8: memref<3x256x256xbf16, #tpu.memory_space<vmem>>, %arg9: memref<1x256xf32, #tpu.memory_space<vmem>>, %arg10: memref<256x256xbf16, #tpu.memory_space<vmem>>, %arg11: memref<1x256xf32, #tpu.memory_space<vmem>>, %arg12: memref<1x256xf32, #tpu.memory_space<vmem>>, %arg13: memref<64x256xf32, #tpu.memory_space<vmem>>, %arg14: memref<1x64xf32, #tpu.memory_space<vmem>>, %arg15: memref<1x64xf32, #tpu.memory_space<vmem>>, %arg16: memref<64x256xbf16, #tpu.memory_space<vmem>>, %arg17: memref<1x256xf32, #tpu.memory_space<vmem>>, %arg18: memref<64x256xf32, #tpu.memory_space<vmem>>, %arg19: memref<64x32xf32, #tpu.memory_space<vmem>>, %arg20: memref<1x32xf32, #tpu.memory_space<vmem>>, %arg21: memref<32x128xf32, #tpu.memory_space<vmem>>, %arg22: memref<1x128xf32, #tpu.memory_space<vmem>>, %arg23: memref<16x128xf32, #tpu.memory_space<vmem>>) attributes {dimension_semantics = [], scalar_prefetch = 0 : i64, scratch_operands = 0 : i64, tpu.core_type = #tpu.core_type<tc>} {
    %0 = tpu.iota {dimensions = array<i32: 0>} : vector<32x1xi32>
    %c16_i32 = arith.constant 16 : i32
    %c0_i32 = arith.constant 0 : i32
    %1 = arith.cmpi eq, %c16_i32, %c0_i32 : i32
    %c1_i32 = arith.constant 1 : i32
    %2 = arith.select %1, %c1_i32, %c16_i32 : i32
    %3 = vector.broadcast %2 : i32 to vector<32x1xi32>
    %4 = arith.remsi %0, %3 : vector<32x1xi32>
    %c0_i32_0 = arith.constant 0 : i32
    %5 = vector.broadcast %c0_i32_0 : i32 to vector<32x1xi32>
    %6 = arith.cmpi ne, %4, %5 : vector<32x1xi32>
    %c0_i32_1 = arith.constant 0 : i32
    %7 = vector.broadcast %c0_i32_1 : i32 to vector<32x1xi32>
    %8 = arith.cmpi slt, %4, %7 : vector<32x1xi32>
    %c0_i32_2 = arith.constant 0 : i32
    %9 = arith.cmpi slt, %2, %c0_i32_2 : i32
    %10 = vector.broadcast %9 : i1 to vector<32x1xi1>
    %11 = vector.broadcast %10 : vector<32x1xi1> to vector<32x1xi1>
    %12 = arith.xori %8, %11 : vector<32x1xi1>
    %13 = arith.andi %12, %6 : vector<32x1xi1>
    %14 = vector.broadcast %2 : i32 to vector<32x1xi32>
    %15 = arith.addi %4, %14 : vector<32x1xi32>
    %16 = arith.select %13, %15, %4 : vector<32x1xi1>, vector<32x1xi32>
    %c0_i32_3 = arith.constant 0 : i32
    %17 = vector.broadcast %c0_i32_3 : i32 to vector<32x1xi32>
    %18 = arith.cmpi eq, %16, %17 : vector<32x1xi32>
    %c15_i32 = arith.constant 15 : i32
    %19 = vector.broadcast %c15_i32 : i32 to vector<32x1xi32>
    %20 = arith.cmpi eq, %16, %19 : vector<32x1xi32>
    %c0 = arith.constant 0 : index
    %c0_4 = arith.constant 0 : index
    %21 = vector.load %arg0[%c0, %c0_4] : memref<32x32xf32, #tpu.memory_space<vmem>>, vector<32x32xf32>
    %22 = arith.truncf %21 : vector<32x32xf32> to vector<32x32xbf16>
    %cst = arith.constant 0.000000e+00 : bf16
    %23 = vector.broadcast %cst : bf16 to vector<1x32xbf16>
    %24 = vector.extract_strided_slice %22 {offsets = [0, 0], sizes = [31, 32], strides = [1, 1]} : vector<32x32xbf16> to vector<31x32xbf16>
    %25 = tpu.concatenate %23, %24 in 0 : vector<1x32xbf16>, vector<31x32xbf16> -> vector<32x32xbf16>
    %cst_5 = arith.constant 0.000000e+00 : f32
    %26 = arith.truncf %cst_5 : f32 to bf16
    %27 = vector.shape_cast %18 : vector<32x1xi1> to vector<32x1xi1>
    %28 = vector.broadcast %27 : vector<32x1xi1> to vector<32x32xi1>
    %29 = vector.broadcast %26 : bf16 to vector<32x32xbf16>
    %30 = arith.select %28, %29, %25 : vector<32x32xi1>, vector<32x32xbf16>
    %31 = vector.extract_strided_slice %22 {offsets = [1, 0], sizes = [31, 32], strides = [1, 1]} : vector<32x32xbf16> to vector<31x32xbf16>
    %32 = tpu.concatenate %31, %23 in 0 : vector<31x32xbf16>, vector<1x32xbf16> -> vector<32x32xbf16>
    %cst_6 = arith.constant 0.000000e+00 : f32
    %33 = arith.truncf %cst_6 : f32 to bf16
    %34 = vector.shape_cast %20 : vector<32x1xi1> to vector<32x1xi1>
    %35 = vector.broadcast %34 : vector<32x1xi1> to vector<32x32xi1>
    %36 = vector.broadcast %33 : bf16 to vector<32x32xbf16>
    %37 = arith.select %35, %36, %32 : vector<32x32xi1>, vector<32x32xbf16>
    %c0_7 = arith.constant 0 : index
    %c0_8 = arith.constant 0 : index
    %c0_9 = arith.constant 0 : index
    %38 = vector.load %arg4[%c0_7, %c0_8, %c0_9] : memref<3x32x256xbf16, #tpu.memory_space<vmem>>, vector<1x32x256xbf16>
    %39 = vector.shape_cast %38 : vector<1x32x256xbf16> to vector<32x256xbf16>
    %cst_10 = arith.constant dense<0.000000e+00> : vector<32x256xf32>
    %40 = tpu.matmul %30, %39, %cst_10 {dimension_numbers = #tpu.dot_dimension_numbers<[1], [0], [0], [1], [0, 0, 1, 1], [], []>} : vector<32x32xbf16>, vector<32x256xbf16>, vector<32x256xf32> -> vector<32x256xf32>
    %c1 = arith.constant 1 : index
    %c0_11 = arith.constant 0 : index
    %c0_12 = arith.constant 0 : index
    %41 = vector.load %arg4[%c1, %c0_11, %c0_12] : memref<3x32x256xbf16, #tpu.memory_space<vmem>>, vector<1x32x256xbf16>
    %42 = vector.shape_cast %41 : vector<1x32x256xbf16> to vector<32x256xbf16>
    %cst_13 = arith.constant dense<0.000000e+00> : vector<32x256xf32>
    %43 = tpu.matmul %22, %42, %cst_13 {dimension_numbers = #tpu.dot_dimension_numbers<[1], [0], [0], [1], [0, 0, 1, 1], [], []>} : vector<32x32xbf16>, vector<32x256xbf16>, vector<32x256xf32> -> vector<32x256xf32>
    %44 = arith.addf %40, %43 : vector<32x256xf32>
    %c2 = arith.constant 2 : index
    %c0_14 = arith.constant 0 : index
    %c0_15 = arith.constant 0 : index
    %45 = vector.load %arg4[%c2, %c0_14, %c0_15] : memref<3x32x256xbf16, #tpu.memory_space<vmem>>, vector<1x32x256xbf16>
    %46 = vector.shape_cast %45 : vector<1x32x256xbf16> to vector<32x256xbf16>
    %cst_16 = arith.constant dense<0.000000e+00> : vector<32x256xf32>
    %47 = tpu.matmul %37, %46, %cst_16 {dimension_numbers = #tpu.dot_dimension_numbers<[1], [0], [0], [1], [0, 0, 1, 1], [], []>} : vector<32x32xbf16>, vector<32x256xbf16>, vector<32x256xf32> -> vector<32x256xf32>
    %48 = arith.addf %44, %47 : vector<32x256xf32>
    %c0_17 = arith.constant 0 : index
    %c0_18 = arith.constant 0 : index
    %49 = vector.load %arg5[%c0_17, %c0_18] : memref<1x256xf32, #tpu.memory_space<vmem>>, vector<1x256xf32>
    %50 = vector.broadcast %49 : vector<1x256xf32> to vector<32x256xf32>
    %51 = arith.addf %48, %50 : vector<32x256xf32>
    %52 = arith.truncf %51 : vector<32x256xf32> to vector<32x256xbf16>
    %cst_19 = arith.constant 0.000000e+00 : bf16
    %53 = vector.broadcast %cst_19 : bf16 to vector<1x256xbf16>
    %54 = vector.extract_strided_slice %52 {offsets = [0, 0], sizes = [31, 256], strides = [1, 1]} : vector<32x256xbf16> to vector<31x256xbf16>
    %55 = tpu.concatenate %53, %54 in 0 : vector<1x256xbf16>, vector<31x256xbf16> -> vector<32x256xbf16>
    %cst_20 = arith.constant 0.000000e+00 : f32
    %56 = arith.truncf %cst_20 : f32 to bf16
    %57 = vector.shape_cast %18 : vector<32x1xi1> to vector<32x1xi1>
    %58 = vector.broadcast %57 : vector<32x1xi1> to vector<32x256xi1>
    %59 = vector.broadcast %56 : bf16 to vector<32x256xbf16>
    %60 = arith.select %58, %59, %55 : vector<32x256xi1>, vector<32x256xbf16>
    %61 = vector.extract_strided_slice %52 {offsets = [1, 0], sizes = [31, 256], strides = [1, 1]} : vector<32x256xbf16> to vector<31x256xbf16>
    %62 = tpu.concatenate %61, %53 in 0 : vector<31x256xbf16>, vector<1x256xbf16> -> vector<32x256xbf16>
    %cst_21 = arith.constant 0.000000e+00 : f32
    %63 = arith.truncf %cst_21 : f32 to bf16
    %64 = vector.shape_cast %20 : vector<32x1xi1> to vector<32x1xi1>
    %65 = vector.broadcast %64 : vector<32x1xi1> to vector<32x256xi1>
    %66 = vector.broadcast %63 : bf16 to vector<32x256xbf16>
    %67 = arith.select %65, %66, %62 : vector<32x256xi1>, vector<32x256xbf16>
    %c0_22 = arith.constant 0 : index
    %c0_23 = arith.constant 0 : index
    %c0_24 = arith.constant 0 : index
    %68 = vector.load %arg6[%c0_22, %c0_23, %c0_24] : memref<3x256x256xbf16, #tpu.memory_space<vmem>>, vector<1x256x256xbf16>
    %69 = vector.shape_cast %68 : vector<1x256x256xbf16> to vector<256x256xbf16>
    %cst_25 = arith.constant dense<0.000000e+00> : vector<32x256xf32>
    %70 = tpu.matmul %60, %69, %cst_25 {dimension_numbers = #tpu.dot_dimension_numbers<[1], [0], [0], [1], [0, 0, 1, 1], [], []>} : vector<32x256xbf16>, vector<256x256xbf16>, vector<32x256xf32> -> vector<32x256xf32>
    %c1_26 = arith.constant 1 : index
    %c0_27 = arith.constant 0 : index
    %c0_28 = arith.constant 0 : index
    %71 = vector.load %arg6[%c1_26, %c0_27, %c0_28] : memref<3x256x256xbf16, #tpu.memory_space<vmem>>, vector<1x256x256xbf16>
    %72 = vector.shape_cast %71 : vector<1x256x256xbf16> to vector<256x256xbf16>
    %cst_29 = arith.constant dense<0.000000e+00> : vector<32x256xf32>
    %73 = tpu.matmul %52, %72, %cst_29 {dimension_numbers = #tpu.dot_dimension_numbers<[1], [0], [0], [1], [0, 0, 1, 1], [], []>} : vector<32x256xbf16>, vector<256x256xbf16>, vector<32x256xf32> -> vector<32x256xf32>
    %74 = arith.addf %70, %73 : vector<32x256xf32>
    %c2_30 = arith.constant 2 : index
    %c0_31 = arith.constant 0 : index
    %c0_32 = arith.constant 0 : index
    %75 = vector.load %arg6[%c2_30, %c0_31, %c0_32] : memref<3x256x256xbf16, #tpu.memory_space<vmem>>, vector<1x256x256xbf16>
    %76 = vector.shape_cast %75 : vector<1x256x256xbf16> to vector<256x256xbf16>
    %cst_33 = arith.constant dense<0.000000e+00> : vector<32x256xf32>
    %77 = tpu.matmul %67, %76, %cst_33 {dimension_numbers = #tpu.dot_dimension_numbers<[1], [0], [0], [1], [0, 0, 1, 1], [], []>} : vector<32x256xbf16>, vector<256x256xbf16>, vector<32x256xf32> -> vector<32x256xf32>
    %78 = arith.addf %74, %77 : vector<32x256xf32>
    %c0_34 = arith.constant 0 : index
    %c0_35 = arith.constant 0 : index
    %79 = vector.load %arg7[%c0_34, %c0_35] : memref<1x256xf32, #tpu.memory_space<vmem>>, vector<1x256xf32>
    %80 = vector.broadcast %79 : vector<1x256xf32> to vector<32x256xf32>
    %81 = arith.addf %78, %80 : vector<32x256xf32>
    %cst_36 = arith.constant 0.000000e+00 : f32
    %82 = vector.broadcast %cst_36 : f32 to vector<32x256xf32>
    %83 = arith.maximumf %81, %82 : vector<32x256xf32>
    %84 = arith.addf %83, %51 : vector<32x256xf32>
    %85 = arith.truncf %84 : vector<32x256xf32> to vector<32x256xbf16>
    %cst_37 = arith.constant 0.000000e+00 : bf16
    %86 = vector.broadcast %cst_37 : bf16 to vector<1x256xbf16>
    %87 = vector.extract_strided_slice %85 {offsets = [0, 0], sizes = [31, 256], strides = [1, 1]} : vector<32x256xbf16> to vector<31x256xbf16>
    %88 = tpu.concatenate %86, %87 in 0 : vector<1x256xbf16>, vector<31x256xbf16> -> vector<32x256xbf16>
    %cst_38 = arith.constant 0.000000e+00 : f32
    %89 = arith.truncf %cst_38 : f32 to bf16
    %90 = vector.shape_cast %18 : vector<32x1xi1> to vector<32x1xi1>
    %91 = vector.broadcast %90 : vector<32x1xi1> to vector<32x256xi1>
    %92 = vector.broadcast %89 : bf16 to vector<32x256xbf16>
    %93 = arith.select %91, %92, %88 : vector<32x256xi1>, vector<32x256xbf16>
    %94 = vector.extract_strided_slice %85 {offsets = [1, 0], sizes = [31, 256], strides = [1, 1]} : vector<32x256xbf16> to vector<31x256xbf16>
    %95 = tpu.concatenate %94, %86 in 0 : vector<31x256xbf16>, vector<1x256xbf16> -> vector<32x256xbf16>
    %cst_39 = arith.constant 0.000000e+00 : f32
    %96 = arith.truncf %cst_39 : f32 to bf16
    %97 = vector.shape_cast %20 : vector<32x1xi1> to vector<32x1xi1>
    %98 = vector.broadcast %97 : vector<32x1xi1> to vector<32x256xi1>
    %99 = vector.broadcast %96 : bf16 to vector<32x256xbf16>
    %100 = arith.select %98, %99, %95 : vector<32x256xi1>, vector<32x256xbf16>
    %c0_40 = arith.constant 0 : index
    %c0_41 = arith.constant 0 : index
    %c0_42 = arith.constant 0 : index
    %101 = vector.load %arg8[%c0_40, %c0_41, %c0_42] : memref<3x256x256xbf16, #tpu.memory_space<vmem>>, vector<1x256x256xbf16>
    %102 = vector.shape_cast %101 : vector<1x256x256xbf16> to vector<256x256xbf16>
    %cst_43 = arith.constant dense<0.000000e+00> : vector<32x256xf32>
    %103 = tpu.matmul %93, %102, %cst_43 {dimension_numbers = #tpu.dot_dimension_numbers<[1], [0], [0], [1], [0, 0, 1, 1], [], []>} : vector<32x256xbf16>, vector<256x256xbf16>, vector<32x256xf32> -> vector<32x256xf32>
    %c1_44 = arith.constant 1 : index
    %c0_45 = arith.constant 0 : index
    %c0_46 = arith.constant 0 : index
    %104 = vector.load %arg8[%c1_44, %c0_45, %c0_46] : memref<3x256x256xbf16, #tpu.memory_space<vmem>>, vector<1x256x256xbf16>
    %105 = vector.shape_cast %104 : vector<1x256x256xbf16> to vector<256x256xbf16>
    %cst_47 = arith.constant dense<0.000000e+00> : vector<32x256xf32>
    %106 = tpu.matmul %85, %105, %cst_47 {dimension_numbers = #tpu.dot_dimension_numbers<[1], [0], [0], [1], [0, 0, 1, 1], [], []>} : vector<32x256xbf16>, vector<256x256xbf16>, vector<32x256xf32> -> vector<32x256xf32>
    %107 = arith.addf %103, %106 : vector<32x256xf32>
    %c2_48 = arith.constant 2 : index
    %c0_49 = arith.constant 0 : index
    %c0_50 = arith.constant 0 : index
    %108 = vector.load %arg8[%c2_48, %c0_49, %c0_50] : memref<3x256x256xbf16, #tpu.memory_space<vmem>>, vector<1x256x256xbf16>
    %109 = vector.shape_cast %108 : vector<1x256x256xbf16> to vector<256x256xbf16>
    %cst_51 = arith.constant dense<0.000000e+00> : vector<32x256xf32>
    %110 = tpu.matmul %100, %109, %cst_51 {dimension_numbers = #tpu.dot_dimension_numbers<[1], [0], [0], [1], [0, 0, 1, 1], [], []>} : vector<32x256xbf16>, vector<256x256xbf16>, vector<32x256xf32> -> vector<32x256xf32>
    %111 = arith.addf %107, %110 : vector<32x256xf32>
    %c0_52 = arith.constant 0 : index
    %c0_53 = arith.constant 0 : index
    %112 = vector.load %arg9[%c0_52, %c0_53] : memref<1x256xf32, #tpu.memory_space<vmem>>, vector<1x256xf32>
    %113 = vector.broadcast %112 : vector<1x256xf32> to vector<32x256xf32>
    %114 = arith.addf %111, %113 : vector<32x256xf32>
    %cst_54 = arith.constant 0.000000e+00 : f32
    %115 = vector.broadcast %cst_54 : f32 to vector<32x256xf32>
    %116 = arith.maximumf %114, %115 : vector<32x256xf32>
    %117 = arith.addf %116, %84 : vector<32x256xf32>
    %cst_55 = arith.constant -1.000000e+30 : f32
    %118 = vector.broadcast %cst_55 : f32 to vector<1x256xf32>
    %119 = vector.extract_strided_slice %117 {offsets = [0, 0], sizes = [31, 256], strides = [1, 1]} : vector<32x256xf32> to vector<31x256xf32>
    %120 = tpu.concatenate %118, %119 in 0 : vector<1x256xf32>, vector<31x256xf32> -> vector<32x256xf32>
    %cst_56 = arith.constant -1.000000e+30 : f32
    %121 = vector.shape_cast %18 : vector<32x1xi1> to vector<32x1xi1>
    %122 = vector.broadcast %121 : vector<32x1xi1> to vector<32x256xi1>
    %123 = vector.broadcast %cst_56 : f32 to vector<32x256xf32>
    %124 = arith.select %122, %123, %120 : vector<32x256xi1>, vector<32x256xf32>
    %125 = vector.extract_strided_slice %117 {offsets = [1, 0], sizes = [31, 256], strides = [1, 1]} : vector<32x256xf32> to vector<31x256xf32>
    %126 = tpu.concatenate %125, %118 in 0 : vector<31x256xf32>, vector<1x256xf32> -> vector<32x256xf32>
    %cst_57 = arith.constant -1.000000e+30 : f32
    %127 = vector.shape_cast %20 : vector<32x1xi1> to vector<32x1xi1>
    %128 = vector.broadcast %127 : vector<32x1xi1> to vector<32x256xi1>
    %129 = vector.broadcast %cst_57 : f32 to vector<32x256xf32>
    %130 = arith.select %128, %129, %126 : vector<32x256xi1>, vector<32x256xf32>
    %131 = arith.maximumf %117, %124 : vector<32x256xf32>
    %132 = arith.maximumf %131, %130 : vector<32x256xf32>
    %133 = tpu.iota {dimensions = array<i32: 1>} : vector<32x256xi32>
    %cst_58 = arith.constant -1.000000e+30 : f32
    %134 = vector.broadcast %cst_58 : f32 to vector<32x1xf32>
    %c32_i32 = arith.constant 32 : i32
    %c0_i32_59 = arith.constant 0 : i32
    %135 = arith.cmpi eq, %c32_i32, %c0_i32_59 : i32
    %c1_i32_60 = arith.constant 1 : i32
    %136 = arith.select %135, %c1_i32_60, %c32_i32 : i32
    %137 = vector.broadcast %136 : i32 to vector<32x256xi32>
    %138 = arith.remsi %133, %137 : vector<32x256xi32>
    %c0_i32_61 = arith.constant 0 : i32
    %139 = vector.broadcast %c0_i32_61 : i32 to vector<32x256xi32>
    %140 = arith.cmpi ne, %138, %139 : vector<32x256xi32>
    %c0_i32_62 = arith.constant 0 : i32
    %141 = vector.broadcast %c0_i32_62 : i32 to vector<32x256xi32>
    %142 = arith.cmpi slt, %138, %141 : vector<32x256xi32>
    %c0_i32_63 = arith.constant 0 : i32
    %143 = arith.cmpi slt, %136, %c0_i32_63 : i32
    %144 = vector.broadcast %143 : i1 to vector<32x256xi1>
    %145 = vector.broadcast %144 : vector<32x256xi1> to vector<32x256xi1>
    %146 = arith.xori %142, %145 : vector<32x256xi1>
    %147 = arith.andi %146, %140 : vector<32x256xi1>
    %148 = vector.broadcast %136 : i32 to vector<32x256xi32>
    %149 = arith.addi %138, %148 : vector<32x256xi32>
    %150 = arith.select %147, %149, %138 : vector<32x256xi1>, vector<32x256xi32>
    %c0_i32_64 = arith.constant 0 : i32
    %151 = vector.broadcast %c0_i32_64 : i32 to vector<32x256xi32>
    %152 = arith.cmpi eq, %150, %151 : vector<32x256xi32>
    %153 = vector.extract_strided_slice %132 {offsets = [0, 0], sizes = [32, 255], strides = [1, 1]} : vector<32x256xf32> to vector<32x255xf32>
    %154 = tpu.concatenate %134, %153 in 1 : vector<32x1xf32>, vector<32x255xf32> -> vector<32x256xf32>
    %cst_65 = arith.constant -1.000000e+30 : f32
    %155 = vector.broadcast %cst_65 : f32 to vector<32x256xf32>
    %156 = arith.select %152, %155, %154 : vector<32x256xi1>, vector<32x256xf32>
    %c32_i32_66 = arith.constant 32 : i32
    %c0_i32_67 = arith.constant 0 : i32
    %157 = arith.cmpi eq, %c32_i32_66, %c0_i32_67 : i32
    %c1_i32_68 = arith.constant 1 : i32
    %158 = arith.select %157, %c1_i32_68, %c32_i32_66 : i32
    %159 = vector.broadcast %158 : i32 to vector<32x256xi32>
    %160 = arith.remsi %133, %159 : vector<32x256xi32>
    %c0_i32_69 = arith.constant 0 : i32
    %161 = vector.broadcast %c0_i32_69 : i32 to vector<32x256xi32>
    %162 = arith.cmpi ne, %160, %161 : vector<32x256xi32>
    %c0_i32_70 = arith.constant 0 : i32
    %163 = vector.broadcast %c0_i32_70 : i32 to vector<32x256xi32>
    %164 = arith.cmpi slt, %160, %163 : vector<32x256xi32>
    %c0_i32_71 = arith.constant 0 : i32
    %165 = arith.cmpi slt, %158, %c0_i32_71 : i32
    %166 = vector.broadcast %165 : i1 to vector<32x256xi1>
    %167 = vector.broadcast %166 : vector<32x256xi1> to vector<32x256xi1>
    %168 = arith.xori %164, %167 : vector<32x256xi1>
    %169 = arith.andi %168, %162 : vector<32x256xi1>
    %170 = vector.broadcast %158 : i32 to vector<32x256xi32>
    %171 = arith.addi %160, %170 : vector<32x256xi32>
    %172 = arith.select %169, %171, %160 : vector<32x256xi1>, vector<32x256xi32>
    %c31_i32 = arith.constant 31 : i32
    %173 = vector.broadcast %c31_i32 : i32 to vector<32x256xi32>
    %174 = arith.cmpi eq, %172, %173 : vector<32x256xi32>
    %175 = vector.extract_strided_slice %132 {offsets = [0, 1], sizes = [32, 255], strides = [1, 1]} : vector<32x256xf32> to vector<32x255xf32>
    %176 = tpu.concatenate %175, %134 in 1 : vector<32x255xf32>, vector<32x1xf32> -> vector<32x256xf32>
    %cst_72 = arith.constant -1.000000e+30 : f32
    %177 = vector.broadcast %cst_72 : f32 to vector<32x256xf32>
    %178 = arith.select %174, %177, %176 : vector<32x256xi1>, vector<32x256xf32>
    %179 = arith.maximumf %132, %156 : vector<32x256xf32>
    %180 = arith.maximumf %179, %178 : vector<32x256xf32>
    %c0_73 = arith.constant 0 : index
    %c0_74 = arith.constant 0 : index
    %181 = vector.load %arg2[%c0_73, %c0_74] : memref<16x32xf32, #tpu.memory_space<vmem>>, vector<16x32xf32>
    %cst_75 = arith.constant dense<0.000000e+00> : vector<16x256xf32>
    %182 = tpu.matmul %181, %180, %cst_75 {dimension_numbers = #tpu.dot_dimension_numbers<[1], [0], [0], [1], [0, 0, 1, 1], [], []>} : vector<16x32xf32>, vector<32x256xf32>, vector<16x256xf32> -> vector<16x256xf32>
    %c0_76 = arith.constant 0 : index
    %c0_77 = arith.constant 0 : index
    %183 = vector.load %arg1[%c0_76, %c0_77] : memref<32x1xf32, #tpu.memory_space<vmem>>, vector<32x1xf32>
    %cst_78 = arith.constant -1.000000e+30 : f32
    %184 = vector.broadcast %cst_78 : f32 to vector<1x1xf32>
    %185 = vector.extract_strided_slice %183 {offsets = [0, 0], sizes = [31, 1], strides = [1, 1]} : vector<32x1xf32> to vector<31x1xf32>
    %186 = tpu.concatenate %184, %185 in 0 : vector<1x1xf32>, vector<31x1xf32> -> vector<32x1xf32>
    %cst_79 = arith.constant -1.000000e+30 : f32
    %187 = vector.broadcast %cst_79 : f32 to vector<32x1xf32>
    %188 = arith.select %18, %187, %186 : vector<32x1xi1>, vector<32x1xf32>
    %189 = vector.extract_strided_slice %183 {offsets = [1, 0], sizes = [31, 1], strides = [1, 1]} : vector<32x1xf32> to vector<31x1xf32>
    %190 = tpu.concatenate %189, %184 in 0 : vector<31x1xf32>, vector<1x1xf32> -> vector<32x1xf32>
    %cst_80 = arith.constant -1.000000e+30 : f32
    %191 = vector.broadcast %cst_80 : f32 to vector<32x1xf32>
    %192 = arith.select %20, %191, %190 : vector<32x1xi1>, vector<32x1xf32>
    %193 = arith.maximumf %183, %188 : vector<32x1xf32>
    %194 = arith.maximumf %193, %192 : vector<32x1xf32>
    %c0_81 = arith.constant 0 : index
    %c0_82 = arith.constant 0 : index
    %195 = vector.load %arg2[%c0_81, %c0_82] : memref<16x32xf32, #tpu.memory_space<vmem>>, vector<16x32xf32>
    %cst_83 = arith.constant dense<0.000000e+00> : vector<16x1xf32>
    %196 = tpu.matmul %195, %194, %cst_83 {dimension_numbers = #tpu.dot_dimension_numbers<[1], [0], [0], [1], [0, 0, 1, 1], [], []>} : vector<16x32xf32>, vector<32x1xf32>, vector<16x1xf32> -> vector<16x1xf32>
    %c0_84 = arith.constant 0 : index
    %c0_85 = arith.constant 0 : index
    %197 = vector.load %arg11[%c0_84, %c0_85] : memref<1x256xf32, #tpu.memory_space<vmem>>, vector<1x256xf32>
    %198 = vector.broadcast %196 : vector<16x1xf32> to vector<16x256xf32>
    %199 = vector.broadcast %197 : vector<1x256xf32> to vector<16x256xf32>
    %200 = arith.mulf %198, %199 : vector<16x256xf32>
    %201 = tpu.iota {dimensions = array<i32: 1>} : vector<16x256xi32>
    %c64_i32 = arith.constant 64 : i32
    %c0_i32_86 = arith.constant 0 : i32
    %202 = arith.cmpi eq, %c64_i32, %c0_i32_86 : i32
    %c1_i32_87 = arith.constant 1 : i32
    %203 = arith.select %202, %c1_i32_87, %c64_i32 : i32
    %204 = vector.broadcast %203 : i32 to vector<16x256xi32>
    %205 = arith.remsi %201, %204 : vector<16x256xi32>
    %c0_i32_88 = arith.constant 0 : i32
    %206 = vector.broadcast %c0_i32_88 : i32 to vector<16x256xi32>
    %207 = arith.cmpi ne, %205, %206 : vector<16x256xi32>
    %c0_i32_89 = arith.constant 0 : i32
    %208 = vector.broadcast %c0_i32_89 : i32 to vector<16x256xi32>
    %209 = arith.cmpi slt, %205, %208 : vector<16x256xi32>
    %c0_i32_90 = arith.constant 0 : i32
    %210 = arith.cmpi slt, %203, %c0_i32_90 : i32
    %211 = vector.broadcast %210 : i1 to vector<16x256xi1>
    %212 = vector.broadcast %211 : vector<16x256xi1> to vector<16x256xi1>
    %213 = arith.xori %209, %212 : vector<16x256xi1>
    %214 = arith.andi %213, %207 : vector<16x256xi1>
    %215 = vector.broadcast %203 : i32 to vector<16x256xi32>
    %216 = arith.addi %205, %215 : vector<16x256xi32>
    %217 = arith.select %214, %216, %205 : vector<16x256xi1>, vector<16x256xi32>
    %c32_i32_91 = arith.constant 32 : i32
    %218 = vector.broadcast %c32_i32_91 : i32 to vector<16x256xi32>
    %219 = arith.cmpi slt, %217, %218 : vector<16x256xi32>
    %220 = arith.truncf %182 : vector<16x256xf32> to vector<16x256xbf16>
    %c0_92 = arith.constant 0 : index
    %c0_93 = arith.constant 0 : index
    %221 = vector.load %arg10[%c0_92, %c0_93] : memref<256x256xbf16, #tpu.memory_space<vmem>>, vector<256x256xbf16>
    %cst_94 = arith.constant dense<0.000000e+00> : vector<16x256xf32>
    %222 = tpu.matmul %220, %221, %cst_94 {dimension_numbers = #tpu.dot_dimension_numbers<[1], [0], [0], [1], [0, 0, 1, 1], [], []>} : vector<16x256xbf16>, vector<256x256xbf16>, vector<16x256xf32> -> vector<16x256xf32>
    %223 = arith.addf %222, %200 : vector<16x256xf32>
    %c0_95 = arith.constant 0 : index
    %c0_96 = arith.constant 0 : index
    %224 = vector.load %arg12[%c0_95, %c0_96] : memref<1x256xf32, #tpu.memory_space<vmem>>, vector<1x256xf32>
    %225 = vector.broadcast %224 : vector<1x256xf32> to vector<16x256xf32>
    %226 = arith.addf %223, %225 : vector<16x256xf32>
    %c0_97 = arith.constant 0 : index
    %c0_98 = arith.constant 0 : index
    %227 = vector.load %arg3[%c0_97, %c0_98] : memref<16x16xf32, #tpu.memory_space<vmem>>, vector<16x16xf32>
    %cst_99 = arith.constant dense<0.000000e+00> : vector<16x256xf32>
    %228 = tpu.matmul %227, %226, %cst_99 {dimension_numbers = #tpu.dot_dimension_numbers<[1], [0], [0], [1], [0, 0, 1, 1], [], []>} : vector<16x16xf32>, vector<16x256xf32>, vector<16x256xf32> -> vector<16x256xf32>
    %229 = arith.select %219, %226, %228 : vector<16x256xi1>, vector<16x256xf32>
    %c0_100 = arith.constant 0 : index
    %c0_101 = arith.constant 0 : index
    %230 = vector.load %arg13[%c0_100, %c0_101] : memref<64x256xf32, #tpu.memory_space<vmem>>, vector<64x256xf32>
    %cst_102 = arith.constant 0.000000e+00 : f32
    %231 = vector.broadcast %cst_102 : f32 to vector<2x64xf32>
    %cst_103 = arith.constant 0.000000e+00 : f32
    %232 = vector.broadcast %cst_103 : f32 to vector<2x64xf32>
    %233 = vector.extract_strided_slice %229 {offsets = [0, 0], sizes = [2, 256], strides = [1, 1]} : vector<16x256xf32> to vector<2x256xf32>
    %cst_104 = arith.constant dense<0.000000e+00> : vector<2x256xf32>
    %234 = tpu.matmul %231, %230, %cst_104 {dimension_numbers = #tpu.dot_dimension_numbers<[1], [0], [0], [1], [0, 0, 1, 1], [], []>} : vector<2x64xf32>, vector<64x256xf32>, vector<2x256xf32> -> vector<2x256xf32>
    %235 = arith.addf %233, %234 : vector<2x256xf32>
    %236 = vector.extract_strided_slice %235 {offsets = [0, 0], sizes = [2, 192], strides = [1, 1]} : vector<2x256xf32> to vector<2x192xf32>
    %237 = arith.negf %236 : vector<2x192xf32>
    %238 = math.exp %237 : vector<2x192xf32>
    %cst_105 = arith.constant 1.000000e+00 : f32
    %239 = vector.broadcast %cst_105 : f32 to vector<2x192xf32>
    %240 = arith.addf %239, %238 : vector<2x192xf32>
    %241 = arith.divf %239, %240 : vector<2x192xf32>
    %242 = vector.extract_strided_slice %235 {offsets = [0, 192], sizes = [2, 64], strides = [1, 1]} : vector<2x256xf32> to vector<2x64xf32>
    %243 = math.tanh %242 : vector<2x64xf32>
    %244 = vector.extract_strided_slice %241 {offsets = [0, 64], sizes = [2, 64], strides = [1, 1]} : vector<2x192xf32> to vector<2x64xf32>
    %245 = arith.mulf %244, %232 : vector<2x64xf32>
    %246 = vector.extract_strided_slice %241 {offsets = [0, 0], sizes = [2, 64], strides = [1, 1]} : vector<2x192xf32> to vector<2x64xf32>
    %247 = arith.mulf %246, %243 : vector<2x64xf32>
    %248 = arith.addf %245, %247 : vector<2x64xf32>
    %249 = vector.extract_strided_slice %241 {offsets = [0, 128], sizes = [2, 64], strides = [1, 1]} : vector<2x192xf32> to vector<2x64xf32>
    %250 = math.tanh %248 : vector<2x64xf32>
    %251 = arith.mulf %249, %250 : vector<2x64xf32>
    %252 = vector.extract_strided_slice %251 {offsets = [0, 0], sizes = [2, 32], strides = [1, 1]} : vector<2x64xf32> to vector<2x32xf32>
    %253 = vector.extract_strided_slice %251 {offsets = [0, 32], sizes = [2, 32], strides = [1, 1]} : vector<2x64xf32> to vector<2x32xf32>
    %254 = vector.extract_strided_slice %229 {offsets = [2, 0], sizes = [2, 256], strides = [1, 1]} : vector<16x256xf32> to vector<2x256xf32>
    %cst_106 = arith.constant dense<0.000000e+00> : vector<2x256xf32>
    %255 = tpu.matmul %251, %230, %cst_106 {dimension_numbers = #tpu.dot_dimension_numbers<[1], [0], [0], [1], [0, 0, 1, 1], [], []>} : vector<2x64xf32>, vector<64x256xf32>, vector<2x256xf32> -> vector<2x256xf32>
    %256 = arith.addf %254, %255 : vector<2x256xf32>
    %257 = vector.extract_strided_slice %256 {offsets = [0, 0], sizes = [2, 192], strides = [1, 1]} : vector<2x256xf32> to vector<2x192xf32>
    %258 = arith.negf %257 : vector<2x192xf32>
    %259 = math.exp %258 : vector<2x192xf32>
    %cst_107 = arith.constant 1.000000e+00 : f32
    %260 = vector.broadcast %cst_107 : f32 to vector<2x192xf32>
    %261 = arith.addf %260, %259 : vector<2x192xf32>
    %262 = arith.divf %260, %261 : vector<2x192xf32>
    %263 = vector.extract_strided_slice %256 {offsets = [0, 192], sizes = [2, 64], strides = [1, 1]} : vector<2x256xf32> to vector<2x64xf32>
    %264 = math.tanh %263 : vector<2x64xf32>
    %265 = vector.extract_strided_slice %262 {offsets = [0, 64], sizes = [2, 64], strides = [1, 1]} : vector<2x192xf32> to vector<2x64xf32>
    %266 = arith.mulf %265, %248 : vector<2x64xf32>
    %267 = vector.extract_strided_slice %262 {offsets = [0, 0], sizes = [2, 64], strides = [1, 1]} : vector<2x192xf32> to vector<2x64xf32>
    %268 = arith.mulf %267, %264 : vector<2x64xf32>
    %269 = arith.addf %266, %268 : vector<2x64xf32>
    %270 = vector.extract_strided_slice %262 {offsets = [0, 128], sizes = [2, 64], strides = [1, 1]} : vector<2x192xf32> to vector<2x64xf32>
    %271 = math.tanh %269 : vector<2x64xf32>
    %272 = arith.mulf %270, %271 : vector<2x64xf32>
    %273 = vector.extract_strided_slice %272 {offsets = [0, 0], sizes = [2, 32], strides = [1, 1]} : vector<2x64xf32> to vector<2x32xf32>
    %274 = vector.extract_strided_slice %272 {offsets = [0, 32], sizes = [2, 32], strides = [1, 1]} : vector<2x64xf32> to vector<2x32xf32>
    %275 = vector.extract_strided_slice %229 {offsets = [4, 0], sizes = [2, 256], strides = [1, 1]} : vector<16x256xf32> to vector<2x256xf32>
    %cst_108 = arith.constant dense<0.000000e+00> : vector<2x256xf32>
    %276 = tpu.matmul %272, %230, %cst_108 {dimension_numbers = #tpu.dot_dimension_numbers<[1], [0], [0], [1], [0, 0, 1, 1], [], []>} : vector<2x64xf32>, vector<64x256xf32>, vector<2x256xf32> -> vector<2x256xf32>
    %277 = arith.addf %275, %276 : vector<2x256xf32>
    %278 = vector.extract_strided_slice %277 {offsets = [0, 0], sizes = [2, 192], strides = [1, 1]} : vector<2x256xf32> to vector<2x192xf32>
    %279 = arith.negf %278 : vector<2x192xf32>
    %280 = math.exp %279 : vector<2x192xf32>
    %cst_109 = arith.constant 1.000000e+00 : f32
    %281 = vector.broadcast %cst_109 : f32 to vector<2x192xf32>
    %282 = arith.addf %281, %280 : vector<2x192xf32>
    %283 = arith.divf %281, %282 : vector<2x192xf32>
    %284 = vector.extract_strided_slice %277 {offsets = [0, 192], sizes = [2, 64], strides = [1, 1]} : vector<2x256xf32> to vector<2x64xf32>
    %285 = math.tanh %284 : vector<2x64xf32>
    %286 = vector.extract_strided_slice %283 {offsets = [0, 64], sizes = [2, 64], strides = [1, 1]} : vector<2x192xf32> to vector<2x64xf32>
    %287 = arith.mulf %286, %269 : vector<2x64xf32>
    %288 = vector.extract_strided_slice %283 {offsets = [0, 0], sizes = [2, 64], strides = [1, 1]} : vector<2x192xf32> to vector<2x64xf32>
    %289 = arith.mulf %288, %285 : vector<2x64xf32>
    %290 = arith.addf %287, %289 : vector<2x64xf32>
    %291 = vector.extract_strided_slice %283 {offsets = [0, 128], sizes = [2, 64], strides = [1, 1]} : vector<2x192xf32> to vector<2x64xf32>
    %292 = math.tanh %290 : vector<2x64xf32>
    %293 = arith.mulf %291, %292 : vector<2x64xf32>
    %294 = vector.extract_strided_slice %293 {offsets = [0, 0], sizes = [2, 32], strides = [1, 1]} : vector<2x64xf32> to vector<2x32xf32>
    %295 = vector.extract_strided_slice %293 {offsets = [0, 32], sizes = [2, 32], strides = [1, 1]} : vector<2x64xf32> to vector<2x32xf32>
    %296 = vector.extract_strided_slice %229 {offsets = [6, 0], sizes = [2, 256], strides = [1, 1]} : vector<16x256xf32> to vector<2x256xf32>
    %cst_110 = arith.constant dense<0.000000e+00> : vector<2x256xf32>
    %297 = tpu.matmul %293, %230, %cst_110 {dimension_numbers = #tpu.dot_dimension_numbers<[1], [0], [0], [1], [0, 0, 1, 1], [], []>} : vector<2x64xf32>, vector<64x256xf32>, vector<2x256xf32> -> vector<2x256xf32>
    %298 = arith.addf %296, %297 : vector<2x256xf32>
    %299 = vector.extract_strided_slice %298 {offsets = [0, 0], sizes = [2, 192], strides = [1, 1]} : vector<2x256xf32> to vector<2x192xf32>
    %300 = arith.negf %299 : vector<2x192xf32>
    %301 = math.exp %300 : vector<2x192xf32>
    %cst_111 = arith.constant 1.000000e+00 : f32
    %302 = vector.broadcast %cst_111 : f32 to vector<2x192xf32>
    %303 = arith.addf %302, %301 : vector<2x192xf32>
    %304 = arith.divf %302, %303 : vector<2x192xf32>
    %305 = vector.extract_strided_slice %298 {offsets = [0, 192], sizes = [2, 64], strides = [1, 1]} : vector<2x256xf32> to vector<2x64xf32>
    %306 = math.tanh %305 : vector<2x64xf32>
    %307 = vector.extract_strided_slice %304 {offsets = [0, 64], sizes = [2, 64], strides = [1, 1]} : vector<2x192xf32> to vector<2x64xf32>
    %308 = arith.mulf %307, %290 : vector<2x64xf32>
    %309 = vector.extract_strided_slice %304 {offsets = [0, 0], sizes = [2, 64], strides = [1, 1]} : vector<2x192xf32> to vector<2x64xf32>
    %310 = arith.mulf %309, %306 : vector<2x64xf32>
    %311 = arith.addf %308, %310 : vector<2x64xf32>
    %312 = vector.extract_strided_slice %304 {offsets = [0, 128], sizes = [2, 64], strides = [1, 1]} : vector<2x192xf32> to vector<2x64xf32>
    %313 = math.tanh %311 : vector<2x64xf32>
    %314 = arith.mulf %312, %313 : vector<2x64xf32>
    %315 = vector.extract_strided_slice %314 {offsets = [0, 0], sizes = [2, 32], strides = [1, 1]} : vector<2x64xf32> to vector<2x32xf32>
    %316 = vector.extract_strided_slice %314 {offsets = [0, 32], sizes = [2, 32], strides = [1, 1]} : vector<2x64xf32> to vector<2x32xf32>
    %317 = vector.extract_strided_slice %229 {offsets = [8, 0], sizes = [2, 256], strides = [1, 1]} : vector<16x256xf32> to vector<2x256xf32>
    %cst_112 = arith.constant dense<0.000000e+00> : vector<2x256xf32>
    %318 = tpu.matmul %314, %230, %cst_112 {dimension_numbers = #tpu.dot_dimension_numbers<[1], [0], [0], [1], [0, 0, 1, 1], [], []>} : vector<2x64xf32>, vector<64x256xf32>, vector<2x256xf32> -> vector<2x256xf32>
    %319 = arith.addf %317, %318 : vector<2x256xf32>
    %320 = vector.extract_strided_slice %319 {offsets = [0, 0], sizes = [2, 192], strides = [1, 1]} : vector<2x256xf32> to vector<2x192xf32>
    %321 = arith.negf %320 : vector<2x192xf32>
    %322 = math.exp %321 : vector<2x192xf32>
    %cst_113 = arith.constant 1.000000e+00 : f32
    %323 = vector.broadcast %cst_113 : f32 to vector<2x192xf32>
    %324 = arith.addf %323, %322 : vector<2x192xf32>
    %325 = arith.divf %323, %324 : vector<2x192xf32>
    %326 = vector.extract_strided_slice %319 {offsets = [0, 192], sizes = [2, 64], strides = [1, 1]} : vector<2x256xf32> to vector<2x64xf32>
    %327 = math.tanh %326 : vector<2x64xf32>
    %328 = vector.extract_strided_slice %325 {offsets = [0, 64], sizes = [2, 64], strides = [1, 1]} : vector<2x192xf32> to vector<2x64xf32>
    %329 = arith.mulf %328, %311 : vector<2x64xf32>
    %330 = vector.extract_strided_slice %325 {offsets = [0, 0], sizes = [2, 64], strides = [1, 1]} : vector<2x192xf32> to vector<2x64xf32>
    %331 = arith.mulf %330, %327 : vector<2x64xf32>
    %332 = arith.addf %329, %331 : vector<2x64xf32>
    %333 = vector.extract_strided_slice %325 {offsets = [0, 128], sizes = [2, 64], strides = [1, 1]} : vector<2x192xf32> to vector<2x64xf32>
    %334 = math.tanh %332 : vector<2x64xf32>
    %335 = arith.mulf %333, %334 : vector<2x64xf32>
    %336 = vector.extract_strided_slice %335 {offsets = [0, 0], sizes = [2, 32], strides = [1, 1]} : vector<2x64xf32> to vector<2x32xf32>
    %337 = vector.extract_strided_slice %335 {offsets = [0, 32], sizes = [2, 32], strides = [1, 1]} : vector<2x64xf32> to vector<2x32xf32>
    %338 = vector.extract_strided_slice %229 {offsets = [10, 0], sizes = [2, 256], strides = [1, 1]} : vector<16x256xf32> to vector<2x256xf32>
    %cst_114 = arith.constant dense<0.000000e+00> : vector<2x256xf32>
    %339 = tpu.matmul %335, %230, %cst_114 {dimension_numbers = #tpu.dot_dimension_numbers<[1], [0], [0], [1], [0, 0, 1, 1], [], []>} : vector<2x64xf32>, vector<64x256xf32>, vector<2x256xf32> -> vector<2x256xf32>
    %340 = arith.addf %338, %339 : vector<2x256xf32>
    %341 = vector.extract_strided_slice %340 {offsets = [0, 0], sizes = [2, 192], strides = [1, 1]} : vector<2x256xf32> to vector<2x192xf32>
    %342 = arith.negf %341 : vector<2x192xf32>
    %343 = math.exp %342 : vector<2x192xf32>
    %cst_115 = arith.constant 1.000000e+00 : f32
    %344 = vector.broadcast %cst_115 : f32 to vector<2x192xf32>
    %345 = arith.addf %344, %343 : vector<2x192xf32>
    %346 = arith.divf %344, %345 : vector<2x192xf32>
    %347 = vector.extract_strided_slice %340 {offsets = [0, 192], sizes = [2, 64], strides = [1, 1]} : vector<2x256xf32> to vector<2x64xf32>
    %348 = math.tanh %347 : vector<2x64xf32>
    %349 = vector.extract_strided_slice %346 {offsets = [0, 64], sizes = [2, 64], strides = [1, 1]} : vector<2x192xf32> to vector<2x64xf32>
    %350 = arith.mulf %349, %332 : vector<2x64xf32>
    %351 = vector.extract_strided_slice %346 {offsets = [0, 0], sizes = [2, 64], strides = [1, 1]} : vector<2x192xf32> to vector<2x64xf32>
    %352 = arith.mulf %351, %348 : vector<2x64xf32>
    %353 = arith.addf %350, %352 : vector<2x64xf32>
    %354 = vector.extract_strided_slice %346 {offsets = [0, 128], sizes = [2, 64], strides = [1, 1]} : vector<2x192xf32> to vector<2x64xf32>
    %355 = math.tanh %353 : vector<2x64xf32>
    %356 = arith.mulf %354, %355 : vector<2x64xf32>
    %357 = vector.extract_strided_slice %356 {offsets = [0, 0], sizes = [2, 32], strides = [1, 1]} : vector<2x64xf32> to vector<2x32xf32>
    %358 = vector.extract_strided_slice %356 {offsets = [0, 32], sizes = [2, 32], strides = [1, 1]} : vector<2x64xf32> to vector<2x32xf32>
    %359 = vector.extract_strided_slice %229 {offsets = [12, 0], sizes = [2, 256], strides = [1, 1]} : vector<16x256xf32> to vector<2x256xf32>
    %cst_116 = arith.constant dense<0.000000e+00> : vector<2x256xf32>
    %360 = tpu.matmul %356, %230, %cst_116 {dimension_numbers = #tpu.dot_dimension_numbers<[1], [0], [0], [1], [0, 0, 1, 1], [], []>} : vector<2x64xf32>, vector<64x256xf32>, vector<2x256xf32> -> vector<2x256xf32>
    %361 = arith.addf %359, %360 : vector<2x256xf32>
    %362 = vector.extract_strided_slice %361 {offsets = [0, 0], sizes = [2, 192], strides = [1, 1]} : vector<2x256xf32> to vector<2x192xf32>
    %363 = arith.negf %362 : vector<2x192xf32>
    %364 = math.exp %363 : vector<2x192xf32>
    %cst_117 = arith.constant 1.000000e+00 : f32
    %365 = vector.broadcast %cst_117 : f32 to vector<2x192xf32>
    %366 = arith.addf %365, %364 : vector<2x192xf32>
    %367 = arith.divf %365, %366 : vector<2x192xf32>
    %368 = vector.extract_strided_slice %361 {offsets = [0, 192], sizes = [2, 64], strides = [1, 1]} : vector<2x256xf32> to vector<2x64xf32>
    %369 = math.tanh %368 : vector<2x64xf32>
    %370 = vector.extract_strided_slice %367 {offsets = [0, 64], sizes = [2, 64], strides = [1, 1]} : vector<2x192xf32> to vector<2x64xf32>
    %371 = arith.mulf %370, %353 : vector<2x64xf32>
    %372 = vector.extract_strided_slice %367 {offsets = [0, 0], sizes = [2, 64], strides = [1, 1]} : vector<2x192xf32> to vector<2x64xf32>
    %373 = arith.mulf %372, %369 : vector<2x64xf32>
    %374 = arith.addf %371, %373 : vector<2x64xf32>
    %375 = vector.extract_strided_slice %367 {offsets = [0, 128], sizes = [2, 64], strides = [1, 1]} : vector<2x192xf32> to vector<2x64xf32>
    %376 = math.tanh %374 : vector<2x64xf32>
    %377 = arith.mulf %375, %376 : vector<2x64xf32>
    %378 = vector.extract_strided_slice %377 {offsets = [0, 0], sizes = [2, 32], strides = [1, 1]} : vector<2x64xf32> to vector<2x32xf32>
    %379 = vector.extract_strided_slice %377 {offsets = [0, 32], sizes = [2, 32], strides = [1, 1]} : vector<2x64xf32> to vector<2x32xf32>
    %380 = vector.extract_strided_slice %229 {offsets = [14, 0], sizes = [2, 256], strides = [1, 1]} : vector<16x256xf32> to vector<2x256xf32>
    %cst_118 = arith.constant dense<0.000000e+00> : vector<2x256xf32>
    %381 = tpu.matmul %377, %230, %cst_118 {dimension_numbers = #tpu.dot_dimension_numbers<[1], [0], [0], [1], [0, 0, 1, 1], [], []>} : vector<2x64xf32>, vector<64x256xf32>, vector<2x256xf32> -> vector<2x256xf32>
    %382 = arith.addf %380, %381 : vector<2x256xf32>
    %383 = vector.extract_strided_slice %382 {offsets = [0, 0], sizes = [2, 192], strides = [1, 1]} : vector<2x256xf32> to vector<2x192xf32>
    %384 = arith.negf %383 : vector<2x192xf32>
    %385 = math.exp %384 : vector<2x192xf32>
    %cst_119 = arith.constant 1.000000e+00 : f32
    %386 = vector.broadcast %cst_119 : f32 to vector<2x192xf32>
    %387 = arith.addf %386, %385 : vector<2x192xf32>
    %388 = arith.divf %386, %387 : vector<2x192xf32>
    %389 = vector.extract_strided_slice %382 {offsets = [0, 192], sizes = [2, 64], strides = [1, 1]} : vector<2x256xf32> to vector<2x64xf32>
    %390 = math.tanh %389 : vector<2x64xf32>
    %391 = vector.extract_strided_slice %388 {offsets = [0, 64], sizes = [2, 64], strides = [1, 1]} : vector<2x192xf32> to vector<2x64xf32>
    %392 = arith.mulf %391, %374 : vector<2x64xf32>
    %393 = vector.extract_strided_slice %388 {offsets = [0, 0], sizes = [2, 64], strides = [1, 1]} : vector<2x192xf32> to vector<2x64xf32>
    %394 = arith.mulf %393, %390 : vector<2x64xf32>
    %395 = arith.addf %392, %394 : vector<2x64xf32>
    %396 = vector.extract_strided_slice %388 {offsets = [0, 128], sizes = [2, 64], strides = [1, 1]} : vector<2x192xf32> to vector<2x64xf32>
    %397 = math.tanh %395 : vector<2x64xf32>
    %398 = arith.mulf %396, %397 : vector<2x64xf32>
    %399 = vector.extract_strided_slice %398 {offsets = [0, 0], sizes = [2, 32], strides = [1, 1]} : vector<2x64xf32> to vector<2x32xf32>
    %400 = vector.extract_strided_slice %398 {offsets = [0, 32], sizes = [2, 32], strides = [1, 1]} : vector<2x64xf32> to vector<2x32xf32>
    %401 = tpu.concatenate %252, %273, %294, %315, %336, %357, %378, %399 in 0 : vector<2x32xf32>, vector<2x32xf32>, vector<2x32xf32>, vector<2x32xf32>, vector<2x32xf32>, vector<2x32xf32>, vector<2x32xf32>, vector<2x32xf32> -> vector<16x32xf32>
    %402 = tpu.concatenate %400, %379, %358, %337, %316, %295, %274, %253 in 0 : vector<2x32xf32>, vector<2x32xf32>, vector<2x32xf32>, vector<2x32xf32>, vector<2x32xf32>, vector<2x32xf32>, vector<2x32xf32>, vector<2x32xf32> -> vector<16x32xf32>
    %403 = tpu.concatenate %401, %402 in 1 : vector<16x32xf32>, vector<16x32xf32> -> vector<16x64xf32>
    %cst_120 = arith.constant dense<0.000000e+00> : vector<16xf32>
    %404 = vector.multi_reduction <add>, %403, %cst_120 [1] : vector<16x64xf32> to vector<16xf32>
    %405 = vector.shape_cast %404 : vector<16xf32> to vector<16x1xf32>
    %cst_121 = arith.constant 6.400000e+01 : f32
    %406 = vector.broadcast %cst_121 : f32 to vector<16x1xf32>
    %407 = arith.divf %405, %406 : vector<16x1xf32>
    %408 = vector.broadcast %407 : vector<16x1xf32> to vector<16x64xf32>
    %409 = arith.subf %403, %408 : vector<16x64xf32>
    %410 = arith.mulf %409, %409 : vector<16x64xf32>
    %cst_122 = arith.constant dense<0.000000e+00> : vector<16xf32>
    %411 = vector.multi_reduction <add>, %410, %cst_122 [1] : vector<16x64xf32> to vector<16xf32>
    %412 = vector.shape_cast %411 : vector<16xf32> to vector<16x1xf32>
    %cst_123 = arith.constant 6.400000e+01 : f32
    %413 = vector.broadcast %cst_123 : f32 to vector<16x1xf32>
    %414 = arith.divf %412, %413 : vector<16x1xf32>
    %415 = vector.broadcast %407 : vector<16x1xf32> to vector<16x64xf32>
    %416 = arith.subf %403, %415 : vector<16x64xf32>
    %cst_124 = arith.constant 9.99999974E-6 : f32
    %417 = vector.broadcast %cst_124 : f32 to vector<16x1xf32>
    %418 = arith.addf %414, %417 : vector<16x1xf32>
    %419 = math.rsqrt %418 : vector<16x1xf32>
    %420 = vector.broadcast %419 : vector<16x1xf32> to vector<16x64xf32>
    %421 = arith.mulf %416, %420 : vector<16x64xf32>
    %c0_125 = arith.constant 0 : index
    %c0_126 = arith.constant 0 : index
    %422 = vector.load %arg14[%c0_125, %c0_126] : memref<1x64xf32, #tpu.memory_space<vmem>>, vector<1x64xf32>
    %423 = vector.broadcast %422 : vector<1x64xf32> to vector<16x64xf32>
    %424 = arith.mulf %421, %423 : vector<16x64xf32>
    %c0_127 = arith.constant 0 : index
    %c0_128 = arith.constant 0 : index
    %425 = vector.load %arg15[%c0_127, %c0_128] : memref<1x64xf32, #tpu.memory_space<vmem>>, vector<1x64xf32>
    %426 = vector.broadcast %425 : vector<1x64xf32> to vector<16x64xf32>
    %427 = arith.addf %424, %426 : vector<16x64xf32>
    %428 = arith.truncf %427 : vector<16x64xf32> to vector<16x64xbf16>
    %c0_129 = arith.constant 0 : index
    %c0_130 = arith.constant 0 : index
    %429 = vector.load %arg16[%c0_129, %c0_130] : memref<64x256xbf16, #tpu.memory_space<vmem>>, vector<64x256xbf16>
    %cst_131 = arith.constant dense<0.000000e+00> : vector<16x256xf32>
    %430 = tpu.matmul %428, %429, %cst_131 {dimension_numbers = #tpu.dot_dimension_numbers<[1], [0], [0], [1], [0, 0, 1, 1], [], []>} : vector<16x64xbf16>, vector<64x256xbf16>, vector<16x256xf32> -> vector<16x256xf32>
    %c0_132 = arith.constant 0 : index
    %c0_133 = arith.constant 0 : index
    %431 = vector.load %arg17[%c0_132, %c0_133] : memref<1x256xf32, #tpu.memory_space<vmem>>, vector<1x256xf32>
    %432 = vector.broadcast %431 : vector<1x256xf32> to vector<16x256xf32>
    %433 = arith.addf %430, %432 : vector<16x256xf32>
    %c0_134 = arith.constant 0 : index
    %c0_135 = arith.constant 0 : index
    %434 = vector.load %arg3[%c0_134, %c0_135] : memref<16x16xf32, #tpu.memory_space<vmem>>, vector<16x16xf32>
    %cst_136 = arith.constant dense<0.000000e+00> : vector<16x256xf32>
    %435 = tpu.matmul %434, %433, %cst_136 {dimension_numbers = #tpu.dot_dimension_numbers<[1], [0], [0], [1], [0, 0, 1, 1], [], []>} : vector<16x16xf32>, vector<16x256xf32>, vector<16x256xf32> -> vector<16x256xf32>
    %436 = arith.select %219, %433, %435 : vector<16x256xi1>, vector<16x256xf32>
    %c0_137 = arith.constant 0 : index
    %c0_138 = arith.constant 0 : index
    %437 = vector.load %arg18[%c0_137, %c0_138] : memref<64x256xf32, #tpu.memory_space<vmem>>, vector<64x256xf32>
    %cst_139 = arith.constant 0.000000e+00 : f32
    %438 = vector.broadcast %cst_139 : f32 to vector<2x64xf32>
    %cst_140 = arith.constant 0.000000e+00 : f32
    %439 = vector.broadcast %cst_140 : f32 to vector<2x64xf32>
    %440 = vector.extract_strided_slice %436 {offsets = [0, 0], sizes = [2, 256], strides = [1, 1]} : vector<16x256xf32> to vector<2x256xf32>
    %cst_141 = arith.constant dense<0.000000e+00> : vector<2x256xf32>
    %441 = tpu.matmul %438, %437, %cst_141 {dimension_numbers = #tpu.dot_dimension_numbers<[1], [0], [0], [1], [0, 0, 1, 1], [], []>} : vector<2x64xf32>, vector<64x256xf32>, vector<2x256xf32> -> vector<2x256xf32>
    %442 = arith.addf %440, %441 : vector<2x256xf32>
    %443 = vector.extract_strided_slice %442 {offsets = [0, 0], sizes = [2, 192], strides = [1, 1]} : vector<2x256xf32> to vector<2x192xf32>
    %444 = arith.negf %443 : vector<2x192xf32>
    %445 = math.exp %444 : vector<2x192xf32>
    %cst_142 = arith.constant 1.000000e+00 : f32
    %446 = vector.broadcast %cst_142 : f32 to vector<2x192xf32>
    %447 = arith.addf %446, %445 : vector<2x192xf32>
    %448 = arith.divf %446, %447 : vector<2x192xf32>
    %449 = vector.extract_strided_slice %442 {offsets = [0, 192], sizes = [2, 64], strides = [1, 1]} : vector<2x256xf32> to vector<2x64xf32>
    %450 = math.tanh %449 : vector<2x64xf32>
    %451 = vector.extract_strided_slice %448 {offsets = [0, 64], sizes = [2, 64], strides = [1, 1]} : vector<2x192xf32> to vector<2x64xf32>
    %452 = arith.mulf %451, %439 : vector<2x64xf32>
    %453 = vector.extract_strided_slice %448 {offsets = [0, 0], sizes = [2, 64], strides = [1, 1]} : vector<2x192xf32> to vector<2x64xf32>
    %454 = arith.mulf %453, %450 : vector<2x64xf32>
    %455 = arith.addf %452, %454 : vector<2x64xf32>
    %456 = vector.extract_strided_slice %448 {offsets = [0, 128], sizes = [2, 64], strides = [1, 1]} : vector<2x192xf32> to vector<2x64xf32>
    %457 = math.tanh %455 : vector<2x64xf32>
    %458 = arith.mulf %456, %457 : vector<2x64xf32>
    %459 = vector.extract_strided_slice %458 {offsets = [0, 0], sizes = [2, 32], strides = [1, 1]} : vector<2x64xf32> to vector<2x32xf32>
    %460 = vector.extract_strided_slice %458 {offsets = [0, 32], sizes = [2, 32], strides = [1, 1]} : vector<2x64xf32> to vector<2x32xf32>
    %461 = vector.extract_strided_slice %436 {offsets = [2, 0], sizes = [2, 256], strides = [1, 1]} : vector<16x256xf32> to vector<2x256xf32>
    %cst_143 = arith.constant dense<0.000000e+00> : vector<2x256xf32>
    %462 = tpu.matmul %458, %437, %cst_143 {dimension_numbers = #tpu.dot_dimension_numbers<[1], [0], [0], [1], [0, 0, 1, 1], [], []>} : vector<2x64xf32>, vector<64x256xf32>, vector<2x256xf32> -> vector<2x256xf32>
    %463 = arith.addf %461, %462 : vector<2x256xf32>
    %464 = vector.extract_strided_slice %463 {offsets = [0, 0], sizes = [2, 192], strides = [1, 1]} : vector<2x256xf32> to vector<2x192xf32>
    %465 = arith.negf %464 : vector<2x192xf32>
    %466 = math.exp %465 : vector<2x192xf32>
    %cst_144 = arith.constant 1.000000e+00 : f32
    %467 = vector.broadcast %cst_144 : f32 to vector<2x192xf32>
    %468 = arith.addf %467, %466 : vector<2x192xf32>
    %469 = arith.divf %467, %468 : vector<2x192xf32>
    %470 = vector.extract_strided_slice %463 {offsets = [0, 192], sizes = [2, 64], strides = [1, 1]} : vector<2x256xf32> to vector<2x64xf32>
    %471 = math.tanh %470 : vector<2x64xf32>
    %472 = vector.extract_strided_slice %469 {offsets = [0, 64], sizes = [2, 64], strides = [1, 1]} : vector<2x192xf32> to vector<2x64xf32>
    %473 = arith.mulf %472, %455 : vector<2x64xf32>
    %474 = vector.extract_strided_slice %469 {offsets = [0, 0], sizes = [2, 64], strides = [1, 1]} : vector<2x192xf32> to vector<2x64xf32>
    %475 = arith.mulf %474, %471 : vector<2x64xf32>
    %476 = arith.addf %473, %475 : vector<2x64xf32>
    %477 = vector.extract_strided_slice %469 {offsets = [0, 128], sizes = [2, 64], strides = [1, 1]} : vector<2x192xf32> to vector<2x64xf32>
    %478 = math.tanh %476 : vector<2x64xf32>
    %479 = arith.mulf %477, %478 : vector<2x64xf32>
    %480 = vector.extract_strided_slice %479 {offsets = [0, 0], sizes = [2, 32], strides = [1, 1]} : vector<2x64xf32> to vector<2x32xf32>
    %481 = vector.extract_strided_slice %479 {offsets = [0, 32], sizes = [2, 32], strides = [1, 1]} : vector<2x64xf32> to vector<2x32xf32>
    %482 = vector.extract_strided_slice %436 {offsets = [4, 0], sizes = [2, 256], strides = [1, 1]} : vector<16x256xf32> to vector<2x256xf32>
    %cst_145 = arith.constant dense<0.000000e+00> : vector<2x256xf32>
    %483 = tpu.matmul %479, %437, %cst_145 {dimension_numbers = #tpu.dot_dimension_numbers<[1], [0], [0], [1], [0, 0, 1, 1], [], []>} : vector<2x64xf32>, vector<64x256xf32>, vector<2x256xf32> -> vector<2x256xf32>
    %484 = arith.addf %482, %483 : vector<2x256xf32>
    %485 = vector.extract_strided_slice %484 {offsets = [0, 0], sizes = [2, 192], strides = [1, 1]} : vector<2x256xf32> to vector<2x192xf32>
    %486 = arith.negf %485 : vector<2x192xf32>
    %487 = math.exp %486 : vector<2x192xf32>
    %cst_146 = arith.constant 1.000000e+00 : f32
    %488 = vector.broadcast %cst_146 : f32 to vector<2x192xf32>
    %489 = arith.addf %488, %487 : vector<2x192xf32>
    %490 = arith.divf %488, %489 : vector<2x192xf32>
    %491 = vector.extract_strided_slice %484 {offsets = [0, 192], sizes = [2, 64], strides = [1, 1]} : vector<2x256xf32> to vector<2x64xf32>
    %492 = math.tanh %491 : vector<2x64xf32>
    %493 = vector.extract_strided_slice %490 {offsets = [0, 64], sizes = [2, 64], strides = [1, 1]} : vector<2x192xf32> to vector<2x64xf32>
    %494 = arith.mulf %493, %476 : vector<2x64xf32>
    %495 = vector.extract_strided_slice %490 {offsets = [0, 0], sizes = [2, 64], strides = [1, 1]} : vector<2x192xf32> to vector<2x64xf32>
    %496 = arith.mulf %495, %492 : vector<2x64xf32>
    %497 = arith.addf %494, %496 : vector<2x64xf32>
    %498 = vector.extract_strided_slice %490 {offsets = [0, 128], sizes = [2, 64], strides = [1, 1]} : vector<2x192xf32> to vector<2x64xf32>
    %499 = math.tanh %497 : vector<2x64xf32>
    %500 = arith.mulf %498, %499 : vector<2x64xf32>
    %501 = vector.extract_strided_slice %500 {offsets = [0, 0], sizes = [2, 32], strides = [1, 1]} : vector<2x64xf32> to vector<2x32xf32>
    %502 = vector.extract_strided_slice %500 {offsets = [0, 32], sizes = [2, 32], strides = [1, 1]} : vector<2x64xf32> to vector<2x32xf32>
    %503 = vector.extract_strided_slice %436 {offsets = [6, 0], sizes = [2, 256], strides = [1, 1]} : vector<16x256xf32> to vector<2x256xf32>
    %cst_147 = arith.constant dense<0.000000e+00> : vector<2x256xf32>
    %504 = tpu.matmul %500, %437, %cst_147 {dimension_numbers = #tpu.dot_dimension_numbers<[1], [0], [0], [1], [0, 0, 1, 1], [], []>} : vector<2x64xf32>, vector<64x256xf32>, vector<2x256xf32> -> vector<2x256xf32>
    %505 = arith.addf %503, %504 : vector<2x256xf32>
    %506 = vector.extract_strided_slice %505 {offsets = [0, 0], sizes = [2, 192], strides = [1, 1]} : vector<2x256xf32> to vector<2x192xf32>
    %507 = arith.negf %506 : vector<2x192xf32>
    %508 = math.exp %507 : vector<2x192xf32>
    %cst_148 = arith.constant 1.000000e+00 : f32
    %509 = vector.broadcast %cst_148 : f32 to vector<2x192xf32>
    %510 = arith.addf %509, %508 : vector<2x192xf32>
    %511 = arith.divf %509, %510 : vector<2x192xf32>
    %512 = vector.extract_strided_slice %505 {offsets = [0, 192], sizes = [2, 64], strides = [1, 1]} : vector<2x256xf32> to vector<2x64xf32>
    %513 = math.tanh %512 : vector<2x64xf32>
    %514 = vector.extract_strided_slice %511 {offsets = [0, 64], sizes = [2, 64], strides = [1, 1]} : vector<2x192xf32> to vector<2x64xf32>
    %515 = arith.mulf %514, %497 : vector<2x64xf32>
    %516 = vector.extract_strided_slice %511 {offsets = [0, 0], sizes = [2, 64], strides = [1, 1]} : vector<2x192xf32> to vector<2x64xf32>
    %517 = arith.mulf %516, %513 : vector<2x64xf32>
    %518 = arith.addf %515, %517 : vector<2x64xf32>
    %519 = vector.extract_strided_slice %511 {offsets = [0, 128], sizes = [2, 64], strides = [1, 1]} : vector<2x192xf32> to vector<2x64xf32>
    %520 = math.tanh %518 : vector<2x64xf32>
    %521 = arith.mulf %519, %520 : vector<2x64xf32>
    %522 = vector.extract_strided_slice %521 {offsets = [0, 0], sizes = [2, 32], strides = [1, 1]} : vector<2x64xf32> to vector<2x32xf32>
    %523 = vector.extract_strided_slice %521 {offsets = [0, 32], sizes = [2, 32], strides = [1, 1]} : vector<2x64xf32> to vector<2x32xf32>
    %524 = vector.extract_strided_slice %436 {offsets = [8, 0], sizes = [2, 256], strides = [1, 1]} : vector<16x256xf32> to vector<2x256xf32>
    %cst_149 = arith.constant dense<0.000000e+00> : vector<2x256xf32>
    %525 = tpu.matmul %521, %437, %cst_149 {dimension_numbers = #tpu.dot_dimension_numbers<[1], [0], [0], [1], [0, 0, 1, 1], [], []>} : vector<2x64xf32>, vector<64x256xf32>, vector<2x256xf32> -> vector<2x256xf32>
    %526 = arith.addf %524, %525 : vector<2x256xf32>
    %527 = vector.extract_strided_slice %526 {offsets = [0, 0], sizes = [2, 192], strides = [1, 1]} : vector<2x256xf32> to vector<2x192xf32>
    %528 = arith.negf %527 : vector<2x192xf32>
    %529 = math.exp %528 : vector<2x192xf32>
    %cst_150 = arith.constant 1.000000e+00 : f32
    %530 = vector.broadcast %cst_150 : f32 to vector<2x192xf32>
    %531 = arith.addf %530, %529 : vector<2x192xf32>
    %532 = arith.divf %530, %531 : vector<2x192xf32>
    %533 = vector.extract_strided_slice %526 {offsets = [0, 192], sizes = [2, 64], strides = [1, 1]} : vector<2x256xf32> to vector<2x64xf32>
    %534 = math.tanh %533 : vector<2x64xf32>
    %535 = vector.extract_strided_slice %532 {offsets = [0, 64], sizes = [2, 64], strides = [1, 1]} : vector<2x192xf32> to vector<2x64xf32>
    %536 = arith.mulf %535, %518 : vector<2x64xf32>
    %537 = vector.extract_strided_slice %532 {offsets = [0, 0], sizes = [2, 64], strides = [1, 1]} : vector<2x192xf32> to vector<2x64xf32>
    %538 = arith.mulf %537, %534 : vector<2x64xf32>
    %539 = arith.addf %536, %538 : vector<2x64xf32>
    %540 = vector.extract_strided_slice %532 {offsets = [0, 128], sizes = [2, 64], strides = [1, 1]} : vector<2x192xf32> to vector<2x64xf32>
    %541 = math.tanh %539 : vector<2x64xf32>
    %542 = arith.mulf %540, %541 : vector<2x64xf32>
    %543 = vector.extract_strided_slice %542 {offsets = [0, 0], sizes = [2, 32], strides = [1, 1]} : vector<2x64xf32> to vector<2x32xf32>
    %544 = vector.extract_strided_slice %542 {offsets = [0, 32], sizes = [2, 32], strides = [1, 1]} : vector<2x64xf32> to vector<2x32xf32>
    %545 = vector.extract_strided_slice %436 {offsets = [10, 0], sizes = [2, 256], strides = [1, 1]} : vector<16x256xf32> to vector<2x256xf32>
    %cst_151 = arith.constant dense<0.000000e+00> : vector<2x256xf32>
    %546 = tpu.matmul %542, %437, %cst_151 {dimension_numbers = #tpu.dot_dimension_numbers<[1], [0], [0], [1], [0, 0, 1, 1], [], []>} : vector<2x64xf32>, vector<64x256xf32>, vector<2x256xf32> -> vector<2x256xf32>
    %547 = arith.addf %545, %546 : vector<2x256xf32>
    %548 = vector.extract_strided_slice %547 {offsets = [0, 0], sizes = [2, 192], strides = [1, 1]} : vector<2x256xf32> to vector<2x192xf32>
    %549 = arith.negf %548 : vector<2x192xf32>
    %550 = math.exp %549 : vector<2x192xf32>
    %cst_152 = arith.constant 1.000000e+00 : f32
    %551 = vector.broadcast %cst_152 : f32 to vector<2x192xf32>
    %552 = arith.addf %551, %550 : vector<2x192xf32>
    %553 = arith.divf %551, %552 : vector<2x192xf32>
    %554 = vector.extract_strided_slice %547 {offsets = [0, 192], sizes = [2, 64], strides = [1, 1]} : vector<2x256xf32> to vector<2x64xf32>
    %555 = math.tanh %554 : vector<2x64xf32>
    %556 = vector.extract_strided_slice %553 {offsets = [0, 64], sizes = [2, 64], strides = [1, 1]} : vector<2x192xf32> to vector<2x64xf32>
    %557 = arith.mulf %556, %539 : vector<2x64xf32>
    %558 = vector.extract_strided_slice %553 {offsets = [0, 0], sizes = [2, 64], strides = [1, 1]} : vector<2x192xf32> to vector<2x64xf32>
    %559 = arith.mulf %558, %555 : vector<2x64xf32>
    %560 = arith.addf %557, %559 : vector<2x64xf32>
    %561 = vector.extract_strided_slice %553 {offsets = [0, 128], sizes = [2, 64], strides = [1, 1]} : vector<2x192xf32> to vector<2x64xf32>
    %562 = math.tanh %560 : vector<2x64xf32>
    %563 = arith.mulf %561, %562 : vector<2x64xf32>
    %564 = vector.extract_strided_slice %563 {offsets = [0, 0], sizes = [2, 32], strides = [1, 1]} : vector<2x64xf32> to vector<2x32xf32>
    %565 = vector.extract_strided_slice %563 {offsets = [0, 32], sizes = [2, 32], strides = [1, 1]} : vector<2x64xf32> to vector<2x32xf32>
    %566 = vector.extract_strided_slice %436 {offsets = [12, 0], sizes = [2, 256], strides = [1, 1]} : vector<16x256xf32> to vector<2x256xf32>
    %cst_153 = arith.constant dense<0.000000e+00> : vector<2x256xf32>
    %567 = tpu.matmul %563, %437, %cst_153 {dimension_numbers = #tpu.dot_dimension_numbers<[1], [0], [0], [1], [0, 0, 1, 1], [], []>} : vector<2x64xf32>, vector<64x256xf32>, vector<2x256xf32> -> vector<2x256xf32>
    %568 = arith.addf %566, %567 : vector<2x256xf32>
    %569 = vector.extract_strided_slice %568 {offsets = [0, 0], sizes = [2, 192], strides = [1, 1]} : vector<2x256xf32> to vector<2x192xf32>
    %570 = arith.negf %569 : vector<2x192xf32>
    %571 = math.exp %570 : vector<2x192xf32>
    %cst_154 = arith.constant 1.000000e+00 : f32
    %572 = vector.broadcast %cst_154 : f32 to vector<2x192xf32>
    %573 = arith.addf %572, %571 : vector<2x192xf32>
    %574 = arith.divf %572, %573 : vector<2x192xf32>
    %575 = vector.extract_strided_slice %568 {offsets = [0, 192], sizes = [2, 64], strides = [1, 1]} : vector<2x256xf32> to vector<2x64xf32>
    %576 = math.tanh %575 : vector<2x64xf32>
    %577 = vector.extract_strided_slice %574 {offsets = [0, 64], sizes = [2, 64], strides = [1, 1]} : vector<2x192xf32> to vector<2x64xf32>
    %578 = arith.mulf %577, %560 : vector<2x64xf32>
    %579 = vector.extract_strided_slice %574 {offsets = [0, 0], sizes = [2, 64], strides = [1, 1]} : vector<2x192xf32> to vector<2x64xf32>
    %580 = arith.mulf %579, %576 : vector<2x64xf32>
    %581 = arith.addf %578, %580 : vector<2x64xf32>
    %582 = vector.extract_strided_slice %574 {offsets = [0, 128], sizes = [2, 64], strides = [1, 1]} : vector<2x192xf32> to vector<2x64xf32>
    %583 = math.tanh %581 : vector<2x64xf32>
    %584 = arith.mulf %582, %583 : vector<2x64xf32>
    %585 = vector.extract_strided_slice %584 {offsets = [0, 0], sizes = [2, 32], strides = [1, 1]} : vector<2x64xf32> to vector<2x32xf32>
    %586 = vector.extract_strided_slice %584 {offsets = [0, 32], sizes = [2, 32], strides = [1, 1]} : vector<2x64xf32> to vector<2x32xf32>
    %587 = vector.extract_strided_slice %436 {offsets = [14, 0], sizes = [2, 256], strides = [1, 1]} : vector<16x256xf32> to vector<2x256xf32>
    %cst_155 = arith.constant dense<0.000000e+00> : vector<2x256xf32>
    %588 = tpu.matmul %584, %437, %cst_155 {dimension_numbers = #tpu.dot_dimension_numbers<[1], [0], [0], [1], [0, 0, 1, 1], [], []>} : vector<2x64xf32>, vector<64x256xf32>, vector<2x256xf32> -> vector<2x256xf32>
    %589 = arith.addf %587, %588 : vector<2x256xf32>
    %590 = vector.extract_strided_slice %589 {offsets = [0, 0], sizes = [2, 192], strides = [1, 1]} : vector<2x256xf32> to vector<2x192xf32>
    %591 = arith.negf %590 : vector<2x192xf32>
    %592 = math.exp %591 : vector<2x192xf32>
    %cst_156 = arith.constant 1.000000e+00 : f32
    %593 = vector.broadcast %cst_156 : f32 to vector<2x192xf32>
    %594 = arith.addf %593, %592 : vector<2x192xf32>
    %595 = arith.divf %593, %594 : vector<2x192xf32>
    %596 = vector.extract_strided_slice %589 {offsets = [0, 192], sizes = [2, 64], strides = [1, 1]} : vector<2x256xf32> to vector<2x64xf32>
    %597 = math.tanh %596 : vector<2x64xf32>
    %598 = vector.extract_strided_slice %595 {offsets = [0, 64], sizes = [2, 64], strides = [1, 1]} : vector<2x192xf32> to vector<2x64xf32>
    %599 = arith.mulf %598, %581 : vector<2x64xf32>
    %600 = vector.extract_strided_slice %595 {offsets = [0, 0], sizes = [2, 64], strides = [1, 1]} : vector<2x192xf32> to vector<2x64xf32>
    %601 = arith.mulf %600, %597 : vector<2x64xf32>
    %602 = arith.addf %599, %601 : vector<2x64xf32>
    %603 = vector.extract_strided_slice %595 {offsets = [0, 128], sizes = [2, 64], strides = [1, 1]} : vector<2x192xf32> to vector<2x64xf32>
    %604 = math.tanh %602 : vector<2x64xf32>
    %605 = arith.mulf %603, %604 : vector<2x64xf32>
    %606 = vector.extract_strided_slice %605 {offsets = [0, 0], sizes = [2, 32], strides = [1, 1]} : vector<2x64xf32> to vector<2x32xf32>
    %607 = vector.extract_strided_slice %605 {offsets = [0, 32], sizes = [2, 32], strides = [1, 1]} : vector<2x64xf32> to vector<2x32xf32>
    %608 = tpu.concatenate %459, %480, %501, %522, %543, %564, %585, %606 in 0 : vector<2x32xf32>, vector<2x32xf32>, vector<2x32xf32>, vector<2x32xf32>, vector<2x32xf32>, vector<2x32xf32>, vector<2x32xf32>, vector<2x32xf32> -> vector<16x32xf32>
    %609 = tpu.concatenate %607, %586, %565, %544, %523, %502, %481, %460 in 0 : vector<2x32xf32>, vector<2x32xf32>, vector<2x32xf32>, vector<2x32xf32>, vector<2x32xf32>, vector<2x32xf32>, vector<2x32xf32>, vector<2x32xf32> -> vector<16x32xf32>
    %610 = tpu.concatenate %608, %609 in 1 : vector<16x32xf32>, vector<16x32xf32> -> vector<16x64xf32>
    %c0_157 = arith.constant 0 : index
    %c0_158 = arith.constant 0 : index
    %611 = vector.load %arg19[%c0_157, %c0_158] : memref<64x32xf32, #tpu.memory_space<vmem>>, vector<64x32xf32>
    %cst_159 = arith.constant dense<0.000000e+00> : vector<16x32xf32>
    %612 = tpu.matmul %610, %611, %cst_159 {dimension_numbers = #tpu.dot_dimension_numbers<[1], [0], [0], [1], [0, 0, 1, 1], [], []>} : vector<16x64xf32>, vector<64x32xf32>, vector<16x32xf32> -> vector<16x32xf32>
    %c0_160 = arith.constant 0 : index
    %c0_161 = arith.constant 0 : index
    %613 = vector.load %arg20[%c0_160, %c0_161] : memref<1x32xf32, #tpu.memory_space<vmem>>, vector<1x32xf32>
    %614 = vector.broadcast %613 : vector<1x32xf32> to vector<16x32xf32>
    %615 = arith.addf %612, %614 : vector<16x32xf32>
    %cst_162 = arith.constant 0.000000e+00 : f32
    %616 = vector.broadcast %cst_162 : f32 to vector<16x32xf32>
    %617 = arith.maximumf %615, %616 : vector<16x32xf32>
    %c0_163 = arith.constant 0 : index
    %c0_164 = arith.constant 0 : index
    %618 = vector.load %arg21[%c0_163, %c0_164] : memref<32x128xf32, #tpu.memory_space<vmem>>, vector<32x128xf32>
    %cst_165 = arith.constant dense<0.000000e+00> : vector<16x128xf32>
    %619 = tpu.matmul %617, %618, %cst_165 {dimension_numbers = #tpu.dot_dimension_numbers<[1], [0], [0], [1], [0, 0, 1, 1], [], []>} : vector<16x32xf32>, vector<32x128xf32>, vector<16x128xf32> -> vector<16x128xf32>
    %c0_166 = arith.constant 0 : index
    %c0_167 = arith.constant 0 : index
    %620 = vector.load %arg22[%c0_166, %c0_167] : memref<1x128xf32, #tpu.memory_space<vmem>>, vector<1x128xf32>
    %621 = vector.broadcast %620 : vector<1x128xf32> to vector<16x128xf32>
    %622 = arith.addf %619, %621 : vector<16x128xf32>
    %c0_168 = arith.constant 0 : index
    %c0_169 = arith.constant 0 : index
    %623 = vector.load %arg23[%c0_168, %c0_169] : memref<16x128xf32, #tpu.memory_space<vmem>>, vector<16x128xf32>
    tpu.vector_store %arg23[%c0_168, %c0_169], %622 {strides = array<i32>} : memref<16x128xf32, #tpu.memory_space<vmem>>, vector<16x128xf32>,
    return
  }
}

</mosaic_0001>

<bundles_post_ra>
// kernel: forward.1
= control target key start
LH: loop header
LB: loop body
LE: loop exit
PB: predicated region body
PF: predicated region fallthrough
CT: control target
= control target key end

     0   :  { %s8992_s0 = inlined_call_operand.hbm [shape: f32[32,32], index: 0, kind: input, shape index: {}]   ;;  %s8993_s1 = inlined_call_operand.vmem [shape: f32[32,1], index: 1, kind: input, shape index: {}]   ;;  %s8994_s2 = inlined_call_operand.hbm [shape: f32[16,32], index: 2, kind: input, shape index: {}]   ;;  %s8995_s3 = inlined_call_operand.vmem [shape: f32[16,16], index: 3, kind: input, shape index: {}]   ;;  %s8996_s4 = inlined_call_operand.hbm [shape: bf16[3,32,256], index: 4, kind: input, shape index: {}]   ;;  %s8997_s5 = inlined_call_operand.hbm [shape: f32[1,256], index: 5, kind: input, shape index: {}]   ;;  %s8998_s6 = inlined_call_operand.hbm [shape: bf16[3,256,256], index: 6, kind: input, shape index: {}]   ;;  %s8999_s7 = inlined_call_operand.hbm [shape: f32[1,256], index: 7, kind: input, shape index: {}]   ;;  %s9000_s8 = inlined_call_operand.hbm [shape: bf16[3,256,256], index: 8, kind: input, shape index: {}]   ;;  %s9001_s9 = inlined_call_operand.hbm [shape: f32[1,256], index: 9, kind: input, shape index: {}]   ;;  %s9002_s10 = inlined_call_operand.hbm [shape: bf16[256,256], index: 10, kind: input, shape index: {}]   ;;  %s9003_s11 = inlined_call_operand.hbm [shape: f32[1,256], index: 11, kind: input, shape index: {}]   ;;  %s9004_s12 = inlined_call_operand.hbm [shape: f32[1,256], index: 12, kind: input, shape index: {}]   ;;  %s9005_s13 = inlined_call_operand.vmem [shape: f32[64,256], index: 13, kind: input, shape index: {}]   ;;  %s9006_s14 = inlined_call_operand.vmem [shape: f32[1,64], index: 14, kind: input, shape index: {}]   ;;  %s9007_s15 = inlined_call_operand.hbm [shape: f32[1,64], index: 15, kind: input, shape index: {}]   ;;  %s9008_s16 = inlined_call_operand.vmem [shape: bf16[64,256], index: 16, kind: input, shape index: {}]   ;;  %s9009_s17 = inlined_call_operand.hbm [shape: f32[1,256], index: 17, kind: input, shape index: {}]   ;;  %s9010_s18 = inlined_call_operand.hbm [shape: f32[64,256], index: 18, kind: input, shape index: {}]   ;;  %s9011_s19 = inlined_call_operand.vmem [shape: f32[64,32], index: 19, kind: input, shape index: {}]   ;;  %s9012_s20 = inlined_call_operand.hbm [shape: f32[1,32], index: 20, kind: input, shape index: {}]   ;;  %s9013_s21 = inlined_call_operand.hbm [shape: f32[32,128], index: 21, kind: input, shape index: {}]   ;;  %s9014_s22 = inlined_call_operand.hbm [shape: f32[1,128], index: 22, kind: input, shape index: {}]   ;;  %s9015_s23 = inlined_call_operand.hbm [shape: f32[16,128], index: 23, kind: output, shape index: {}]  }
   0x1   :  { %9031 = sst [smem:[#allocation40_spill]] %s8992_s0 }
   0x2   :  { %9032 = sst [smem:[#allocation41_spill]] %s8993_s1 }
   0x3   :  { %9033 = sst [smem:[#allocation42_spill]] %s8994_s2 }
   0x4   :  { %9034 = sst [smem:[#allocation43_spill]] %s8995_s3 }
   0x5   :  { %9035 = sst [smem:[#allocation44_spill]] %s8996_s4 }
   0x6   :  { %9036 = sst [smem:[#allocation45_spill]] %s8997_s5 }
   0x7   :  { %9037 = sst [smem:[#allocation46_spill]] %s8998_s6 }
   0x8   :  { %9038 = sst [smem:[#allocation47_spill]] %s8999_s7 }
   0x9   :  { %9039 = sst [smem:[#allocation48_spill]] %s9015_s23 }
   0xa   :  { %28 = vsyncpa [#allocation3], 0 }
   0xb   :  { %29 = vsyncpa [#allocation6], 0 }
   0xc   :  { %30 = vsyncpa [#allocation9], 0 }
   0xd   :  { %31 = vsyncpa [#allocation12], 0 }
   0xe   :  { %32 = vsyncpa [#allocation15], 0 }
   0xf   :  { %33 = vsyncpa [#allocation18], 0 }
  0x10   :  { %34 = vsyncpa [#allocation21], 0 }
  0x11   :  { %35 = vsyncpa [#allocation24], 0 }
  0x12   :  { %36 = vsyncpa [#allocation27], 0 }
  0x13   :  { %37 = vsyncpa [#allocation4], 0  ;;  %s7414_s4 = smov [#allocation5]   ;;  %s7415_s24 = smov [#allocation8]  }
  0x14   :  { %s57_s30 = sshll.u32 %s7414_s4, 4  ;;  %s84_s25 = sshll.u32 %s7415_s24, 4  ;;  %s58_s30 = int_to_ptr.vmem [resolvable:$true] %s57_s30  ;;  %s85_s25 = int_to_ptr.vmem [resolvable:$true] %s84_s25 }
  0x15   :  { %s9040_s26 = sld [smem:[#allocation42_spill]] }
  0x1b   :  { %s6998_s2 = scalar_lea.hbm %s9040_s26, 256 }
  0x1c   :  { %p6999_p0 = scmp.ne.s32.totalorder %s9040_s26, %s6998_s2  ;;  %p7002_p1 = scmp.lt.u32.totalorder %s6998_s2, %s9040_s26 }
  0x1e   :  { %p7004_p2 = pnand %p7002_p1, %p6999_p0 }
  0x20   :  { %7007 = shalt.err (!%p7004_p2)
}
  0x21   :  { %s7008_s29 = scalar_lea.vmem %s58_s30, 256  ;;  %p7013_p4 = scmp.lt.s32.totalorder %s58_s30, %s58_s30 }
  0x22   :  { %p7009_p3 = scmp.ne.s32.totalorder %s58_s30, %s7008_s29  ;;  %p7014_p5 = scmp.lt.s32.totalorder %s7008_s29, %s7008_s29 }
  0x24   :  { %p7015_p6 = por %p7014_p5, %p7013_p4 }
  0x26   :  { %p7016_p7 = pnand %p7015_p6, %p7009_p3 }
  0x28   :  { %7019 = shalt.err (!%p7016_p7)
}
  0x29   :  { %s9025_s3 = smov 128   ;;  %s9027_s0 = smov 8  }
  0x2a   :  { %63 = dma.hbm_to_vmem [thread:$0]  %s9040_s26, 256, %s58_s30, [#allocation6], %s9025_s3, %s9025_s3, %s9027_s0  }
  0x2b   :  { %s9041_s2 = sld [smem:[#allocation45_spill]] }
  0x31   :  { %s7020_s6 = scalar_lea.hbm %s9041_s2, 32 }
  0x32   :  { %p7021_p8 = scmp.ne.s32.totalorder %s9041_s2, %s7020_s6  ;;  %p7024_p9 = scmp.lt.u32.totalorder %s7020_s6, %s9041_s2 }
  0x34   :  { %p7026_p10 = pnand %p7024_p9, %p7021_p8 }
  0x36   :  { %7029 = shalt.err (!%p7026_p10)
}
  0x37   :  { %s7030_s23 = scalar_lea.vmem %s85_s25, 32  ;;  %p7035_p12 = scmp.lt.s32.totalorder %s85_s25, %s85_s25 }
  0x38   :  { %p7031_p11 = scmp.ne.s32.totalorder %s85_s25, %s7030_s23  ;;  %p7036_p13 = scmp.lt.s32.totalorder %s7030_s23, %s7030_s23 }
  0x3a   :  { %p7037_p0 = por %p7036_p13, %p7035_p12 }
  0x3c   :  { %p7038_p1 = pnand %p7037_p0, %p7031_p11 }
  0x3e   :  { %7041 = shalt.err (!%p7038_p1)
}
  0x3f   :  { %87 = dma.hbm_to_vmem [thread:$0]  %s9041_s2, 32, %s85_s25, [#allocation9]  }
  0x40   :  { %s7418_s4 = smov [#allocation11]   ;;  %s7419_s5 = smov [#allocation14]  }
  0x41   :  { %s106_s24 = sshll.u32 %s7418_s4, 4  ;;  %s128_s1 = sshll.u32 %s7419_s5, 4  ;;  %s107_s24 = int_to_ptr.vmem [resolvable:$true] %s106_s24  ;;  %s129_s1 = int_to_ptr.vmem [resolvable:$true] %s128_s1 }
  0x42   :  { %s9042_s7 = sld [smem:[#allocation47_spill]] }
  0x48   :  { %s7042_s28 = scalar_lea.hbm %s9042_s7, 32 }
  0x49   :  { %p7043_p2 = scmp.ne.s32.totalorder %s9042_s7, %s7042_s28  ;;  %p7046_p3 = scmp.lt.u32.totalorder %s7042_s28, %s9042_s7 }
  0x4b   :  { %p7048_p4 = pnand %p7046_p3, %p7043_p2 }
  0x4d   :  { %7051 = shalt.err (!%p7048_p4)
}
  0x4e   :  { %s7052_s25 = scalar_lea.vmem %s107_s24, 32  ;;  %p7057_p6 = scmp.lt.s32.totalorder %s107_s24, %s107_s24 }
  0x4f   :  { %p7053_p5 = scmp.ne.s32.totalorder %s107_s24, %s7052_s25  ;;  %p7058_p7 = scmp.lt.s32.totalorder %s7052_s25, %s7052_s25 }
  0x51   :  { %p7059_p8 = por %p7058_p7, %p7057_p6 }
  0x53   :  { %p7060_p9 = pnand %p7059_p8, %p7053_p5 }
  0x55   :  { %7063 = shalt.err (!%p7060_p9)
}
  0x56   :  { %109 = dma.hbm_to_vmem [thread:$0]  %s9042_s7, 32, %s107_s24, [#allocation12]  }
  0x57   :  { %s7064_s4 = scalar_lea.hbm %s9001_s9, 32 }
  0x58   :  { %p7065_p10 = scmp.ne.s32.totalorder %s9001_s9, %s7064_s4  ;;  %p7068_p11 = scmp.lt.u32.totalorder %s7064_s4, %s9001_s9 }
  0x5a   :  { %p7070_p12 = pnand %p7068_p11, %p7065_p10 }
  0x5c   :  { %7073 = shalt.err (!%p7070_p12)
}
  0x5d   :  { %s7074_s28 = scalar_lea.vmem %s129_s1, 32  ;;  %p7079_p0 = scmp.lt.s32.totalorder %s129_s1, %s129_s1 }
  0x5e   :  { %p7075_p13 = scmp.ne.s32.totalorder %s129_s1, %s7074_s28  ;;  %p7080_p1 = scmp.lt.s32.totalorder %s7074_s28, %s7074_s28 }
  0x60   :  { %p7081_p2 = por %p7080_p1, %p7079_p0 }
  0x62   :  { %p7082_p3 = pnand %p7081_p2, %p7075_p13 }
  0x64   :  { %7085 = shalt.err (!%p7082_p3)
}
  0x65   :  { %131 = dma.hbm_to_vmem [thread:$0]  %s9001_s9, 32, %s129_s1, [#allocation15]  }
  0x66   :  { %s7420_s29 = smov [#allocation17]   ;;  %s7421_s25 = smov [#allocation20]  }
  0x67   :  { %s150_s23 = sshll.u32 %s7420_s29, 4  ;;  %s174_s2 = sshll.u32 %s7421_s25, 4  ;;  %s151_s23 = int_to_ptr.vmem [resolvable:$true] %s150_s23  ;;  %s175_s2 = int_to_ptr.vmem [resolvable:$true] %s174_s2 }
  0x68   :  { %s7086_s3 = scalar_lea.hbm %s9003_s11, 32 }
  0x69   :  { %p7087_p4 = scmp.ne.s32.totalorder %s9003_s11, %s7086_s3  ;;  %p7090_p5 = scmp.lt.u32.totalorder %s7086_s3, %s9003_s11 }
  0x6b   :  { %p7092_p6 = pnand %p7090_p5, %p7087_p4 }
  0x6d   :  { %7095 = shalt.err (!%p7092_p6)
}
  0x6e   :  { %s7096_s9 = scalar_lea.vmem %s151_s23, 32  ;;  %p7101_p8 = scmp.lt.s32.totalorder %s151_s23, %s151_s23 }
  0x6f   :  { %p7097_p7 = scmp.ne.s32.totalorder %s151_s23, %s7096_s9  ;;  %p7102_p9 = scmp.lt.s32.totalorder %s7096_s9, %s7096_s9 }
  0x71   :  { %p7103_p10 = por %p7102_p9, %p7101_p8 }
  0x73   :  { %p7104_p11 = pnand %p7103_p10, %p7097_p7 }
  0x75   :  { %7107 = shalt.err (!%p7104_p11)
}
  0x76   :  { %153 = dma.hbm_to_vmem [thread:$0]  %s9003_s11, 32, %s151_s23, [#allocation18]  }
  0x77   :  { %s7108_s7 = scalar_lea.hbm %s9007_s15, 16 }
  0x78   :  { %p7109_p12 = scmp.ne.s32.totalorder %s9007_s15, %s7108_s7  ;;  %p7112_p13 = scmp.lt.u32.totalorder %s7108_s7, %s9007_s15 }
  0x7a   :  { %p7114_p0 = pnand %p7112_p13, %p7109_p12 }
  0x7c   :  { %7117 = shalt.err (!%p7114_p0)
}
  0x7d   :  { %s7118_s3 = scalar_lea.vmem %s175_s2, 16  ;;  %s7122_s4 = scalar_lea.vmem %s175_s2, 32 }
  0x7e   :  { %p7119_p1 = scmp.ne.s32.totalorder %s175_s2, %s7118_s3  ;;  %p7123_p2 = scmp.lt.s32.totalorder %s175_s2, %s175_s2 }
  0x7f   :  { %p7124_p3 = scmp.lt.s32.totalorder %s7122_s4, %s7118_s3 }
  0x81   :  { %p7125_p4 = por %p7124_p3, %p7123_p2 }
  0x83   :  { %p7126_p5 = pnand %p7125_p4, %p7119_p1 }
  0x85   :  { %7129 = shalt.err (!%p7126_p5)
}
  0x86   :  { %177 = dma.hbm_to_vmem [thread:$0]  %s9007_s15, 16, %s175_s2, [#allocation21]  }
  0x87   :  { %s7422_s5 = smov [#allocation23]   ;;  %s7130_s1 = scalar_lea.hbm %s9010_s18, 2048 }
  0x88   :  { %s195_s0 = sshll.u32 %s7422_s5, 4  ;;  %p7131_p6 = scmp.ne.s32.totalorder %s9010_s18, %s7130_s1  ;;  %s196_s0 = int_to_ptr.vmem [resolvable:$true] %s195_s0 }
  0x89   :  { %p7134_p7 = scmp.lt.u32.totalorder %s7130_s1, %s9010_s18 }
  0x8b   :  { %p7136_p8 = pnand %p7134_p7, %p7131_p6 }
  0x8d   :  { %7139 = shalt.err (!%p7136_p8)
}
  0x8e   :  { %s7140_s29 = scalar_lea.vmem %s196_s0, 2048  ;;  %p7145_p10 = scmp.lt.s32.totalorder %s196_s0, %s196_s0 }
  0x8f   :  { %p7141_p9 = scmp.ne.s32.totalorder %s196_s0, %s7140_s29  ;;  %p7146_p11 = scmp.lt.s32.totalorder %s7140_s29, %s7140_s29 }
  0x91   :  { %p7147_p12 = por %p7146_p11, %p7145_p10 }
  0x93   :  { %p7148_p13 = pnand %p7147_p12, %p7141_p9 }
  0x95   :  { %7151 = shalt.err (!%p7148_p13)
}
  0x96   :  { %s7423_s15 = smov 256   ;;  %s7424_s2 = smov 16  }
  0x97   :  { %201 = dma.hbm_to_vmem [thread:$0]  %s9010_s18, 2048, %s196_s0, [#allocation24], %s7423_s15, %s7423_s15, %s7424_s2  }
  0x98   :  { %s7425_s26 = smov [#allocation26]   ;;  %s7426_s4 = smov [#allocation2]  }
  0x99   :  { %s219_s3 = sshll.u32 %s7425_s26, 4  ;;  %s43_s11 = sshll.u32 %s7426_s4, 4  ;;  %s220_s3 = int_to_ptr.vmem [resolvable:$true] %s219_s3  ;;  %s44_s11 = int_to_ptr.vmem [resolvable:$true] %s43_s11 }
  0x9a   :  { %s7152_s6 = scalar_lea.hbm %s9013_s21, 512 }
  0x9b   :  { %p7153_p0 = scmp.ne.s32.totalorder %s9013_s21, %s7152_s6  ;;  %p7156_p1 = scmp.lt.u32.totalorder %s7152_s6, %s9013_s21 }
  0x9d   :  { %p7158_p2 = pnand %p7156_p1, %p7153_p0 }
  0x9f   :  { %7161 = shalt.err (!%p7158_p2)
}
  0xa0   :  { %s7162_s18 = scalar_lea.vmem %s220_s3, 512  ;;  %p7167_p4 = scmp.lt.s32.totalorder %s220_s3, %s220_s3 }
  0xa1   :  { %p7163_p3 = scmp.ne.s32.totalorder %s220_s3, %s7162_s18  ;;  %p7168_p5 = scmp.lt.s32.totalorder %s7162_s18, %s7162_s18 }
  0xa3   :  { %p7169_p6 = por %p7168_p5, %p7167_p4 }
  0xa5   :  { %p7170_p7 = pnand %p7169_p6, %p7163_p3 }
  0xa7   :  { %7173 = shalt.err (!%p7170_p7)
}
  0xa8   :  { %s9043_s0 = smov 8   ;;  %s9044_s24 = smov 128  }
  0xa9   :  { %225 = dma.hbm_to_vmem [thread:$0]  %s9013_s21, 512, %s220_s3, [#allocation27], %s9044_s24, %s9044_s24, %s9043_s0  }
  0xaa   :  { %s9045_s25 = sld [smem:[#allocation40_spill]] }
  0xb0   :  { %s7174_s30 = scalar_lea.hbm %s9045_s25, 512 }
  0xb1   :  { %p7175_p8 = scmp.ne.s32.totalorder %s9045_s25, %s7174_s30  ;;  %p7178_p9 = scmp.lt.u32.totalorder %s7174_s30, %s9045_s25 }
  0xb3   :  { %p7180_p10 = pnand %p7178_p9, %p7175_p8 }
  0xb5   :  { %7183 = shalt.err (!%p7180_p10)
}
  0xb6   :  { %s7184_s6 = scalar_lea.vmem %s44_s11, 512  ;;  %p7189_p12 = scmp.lt.s32.totalorder %s44_s11, %s44_s11 }
  0xb7   :  { %p7185_p11 = scmp.ne.s32.totalorder %s44_s11, %s7184_s6  ;;  %p7190_p13 = scmp.lt.s32.totalorder %s7184_s6, %s7184_s6 }
  0xb9   :  { %p7191_p0 = por %p7190_p13, %p7189_p12 }
  0xbb   :  { %p7192_p1 = pnand %p7191_p0, %p7185_p11 }
  0xbd   :  { %7195 = shalt.err (!%p7192_p1)
}
  0xbe   :  { %49 = dma.hbm_to_vmem [thread:$0]  %s9045_s25, 512, %s44_s11, [#allocation3], %s9044_s24, %s9044_s24, %s9043_s0  }
  0xbf   :  { %s7427_s9 = smov [#allocation7]   ;;  %s7428_s27 = smov [#allocation10]  }
  0xc0   :  { %s71_s1 = sshll.u32 %s7427_s9, 4  ;;  %s93_s28 = sshll.u32 %s7428_s27, 4  ;;  %s72_s1 = int_to_ptr.vmem [resolvable:$true] %s71_s1  ;;  %s94_s28 = int_to_ptr.vmem [resolvable:$true] %s93_s28 }
  0xc1   :  { %s9046_s29 = sld [smem:[#allocation44_spill]] }
  0xc7   :  { %s7196_s15 = scalar_lea.hbm %s9046_s29, 1536 }
  0xc8   :  { %p7197_p2 = scmp.ne.s32.totalorder %s9046_s29, %s7196_s15  ;;  %p7200_p3 = scmp.lt.u32.totalorder %s7196_s15, %s9046_s29 }
  0xca   :  { %p7202_p4 = pnand %p7200_p3, %p7197_p2 }
  0xcc   :  { %7205 = shalt.err (!%p7202_p4)
}
  0xcd   :  { %s7206_s11 = scalar_lea.vmem %s72_s1, 1536  ;;  %p7211_p6 = scmp.lt.s32.totalorder %s72_s1, %s72_s1 }
  0xce   :  { %p7207_p5 = scmp.ne.s32.totalorder %s72_s1, %s7206_s11  ;;  %p7212_p7 = scmp.lt.s32.totalorder %s7206_s11, %s7206_s11 }
  0xd0   :  { %p7213_p8 = por %p7212_p7, %p7211_p6 }
  0xd2   :  { %p7214_p9 = pnand %p7213_p8, %p7207_p5 }
  0xd4   :  { %7217 = shalt.err (!%p7214_p9)
}
  0xd5   :  { %77 = dma.hbm_to_vmem [thread:$0]  %s9046_s29, 1536, %s72_s1, [#allocation6], %s9044_s24, %s9044_s24, %s9043_s0  }
  0xd6   :  { %s9047_s21 = sld [smem:[#allocation46_spill]] }
  0xdc   :  { %s7218_s3 = scalar_lea.hbm %s9047_s21, 12288 }
  0xdd   :  { %p7219_p10 = scmp.ne.s32.totalorder %s9047_s21, %s7218_s3  ;;  %p7222_p11 = scmp.lt.u32.totalorder %s7218_s3, %s9047_s21 }
  0xdf   :  { %p7224_p12 = pnand %p7222_p11, %p7219_p10 }
  0xe1   :  { %7227 = shalt.err (!%p7224_p12)
}
  0xe2   :  { %s7228_s15 = scalar_lea.vmem %s94_s28, 12288  ;;  %p7233_p0 = scmp.lt.s32.totalorder %s94_s28, %s94_s28 }
  0xe3   :  { %p7229_p13 = scmp.ne.s32.totalorder %s94_s28, %s7228_s15  ;;  %p7234_p1 = scmp.lt.s32.totalorder %s7228_s15, %s7228_s15 }
  0xe5   :  { %p7235_p2 = por %p7234_p1, %p7233_p0 }
  0xe7   :  { %p7236_p3 = pnand %p7235_p2, %p7229_p13 }
  0xe9   :  { %7239 = shalt.err (!%p7236_p3)
}
  0xea   :  { %99 = dma.hbm_to_vmem [thread:$0]  %s9047_s21, 12288, %s94_s28, [#allocation9], %s9044_s24, %s9044_s24, %s9043_s0  }
  0xeb   :  { %s7429_s2 = smov [#allocation13]   ;;  %s7430_s26 = smov [#allocation16]  }
  0xec   :  { %s115_s30 = sshll.u32 %s7429_s2, 4  ;;  %s137_s4 = sshll.u32 %s7430_s26, 4  ;;  %s116_s30 = int_to_ptr.vmem [resolvable:$true] %s115_s30  ;;  %s138_s4 = int_to_ptr.vmem [resolvable:$true] %s137_s4 }
  0xed   :  { %s7240_s23 = scalar_lea.hbm %s9000_s8, 12288 }
  0xee   :  { %p7241_p4 = scmp.ne.s32.totalorder %s9000_s8, %s7240_s23  ;;  %p7244_p5 = scmp.lt.u32.totalorder %s7240_s23, %s9000_s8 }
  0xf0   :  { %p7246_p6 = pnand %p7244_p5, %p7241_p4 }
  0xf2   :  { %7249 = shalt.err (!%p7246_p6)
}
  0xf3   :  { %s7250_s28 = scalar_lea.vmem %s116_s30, 12288  ;;  %p7255_p8 = scmp.lt.s32.totalorder %s116_s30, %s116_s30 }
  0xf4   :  { %p7251_p7 = scmp.ne.s32.totalorder %s116_s30, %s7250_s28  ;;  %p7256_p9 = scmp.lt.s32.totalorder %s7250_s28, %s7250_s28 }
  0xf6   :  { %p7257_p10 = por %p7256_p9, %p7255_p8 }
  0xf8   :  { %p7258_p11 = pnand %p7257_p10, %p7251_p7 }
  0xfa   :  { %7261 = shalt.err (!%p7258_p11)
}
  0xfb   :  { %121 = dma.hbm_to_vmem [thread:$0]  %s9000_s8, 12288, %s116_s30, [#allocation12], %s9044_s24, %s9044_s24, %s9043_s0  }
  0xfc   :  { %s7262_s15 = scalar_lea.hbm %s9002_s10, 4096 }
  0xfd   :  { %p7263_p12 = scmp.ne.s32.totalorder %s9002_s10, %s7262_s15  ;;  %p7266_p13 = scmp.lt.u32.totalorder %s7262_s15, %s9002_s10 }
  0xff   :  { %p7268_p0 = pnand %p7266_p13, %p7263_p12 }
 0x101   :  { %7271 = shalt.err (!%p7268_p0)
}
 0x102   :  { %s7272_s11 = scalar_lea.vmem %s138_s4, 4096  ;;  %p7277_p2 = scmp.lt.s32.totalorder %s138_s4, %s138_s4 }
 0x103   :  { %p7273_p1 = scmp.ne.s32.totalorder %s138_s4, %s7272_s11  ;;  %p7278_p3 = scmp.lt.s32.totalorder %s7272_s11, %s7272_s11 }
 0x105   :  { %p7279_p4 = por %p7278_p3, %p7277_p2 }
 0x107   :  { %p7280_p5 = pnand %p7279_p4, %p7273_p1 }
 0x109   :  { %7283 = shalt.err (!%p7280_p5)
}
 0x10a   :  { %143 = dma.hbm_to_vmem [thread:$0]  %s9002_s10, 4096, %s138_s4, [#allocation15], %s9044_s24, %s9044_s24, %s9043_s0  }
 0x10b   :  { %s7431_s25 = smov [#allocation19]   ;;  %s7432_s5 = smov [#allocation22]  }
 0x10c   :  { %s160_s23 = sshll.u32 %s7431_s25, 4  ;;  %s186_s6 = sshll.u32 %s7432_s5, 4  ;;  %s161_s23 = int_to_ptr.vmem [resolvable:$true] %s160_s23  ;;  %s187_s6 = int_to_ptr.vmem [resolvable:$true] %s186_s6 }
 0x10d   :  { %s7284_s28 = scalar_lea.hbm %s9004_s12, 32 }
 0x10e   :  { %p7285_p6 = scmp.ne.s32.totalorder %s9004_s12, %s7284_s28  ;;  %p7288_p7 = scmp.lt.u32.totalorder %s7284_s28, %s9004_s12 }
 0x110   :  { %p7290_p8 = pnand %p7288_p7, %p7285_p6 }
 0x112   :  { %7293 = shalt.err (!%p7290_p8)
}
 0x113   :  { %s7294_s10 = scalar_lea.vmem %s161_s23, 32  ;;  %p7299_p10 = scmp.lt.s32.totalorder %s161_s23, %s161_s23 }
 0x114   :  { %p7295_p9 = scmp.ne.s32.totalorder %s161_s23, %s7294_s10  ;;  %p7300_p11 = scmp.lt.s32.totalorder %s7294_s10, %s7294_s10 }
 0x116   :  { %p7301_p12 = por %p7300_p11, %p7299_p10 }
 0x118   :  { %p7302_p13 = pnand %p7301_p12, %p7295_p9 }
 0x11a   :  { %7305 = shalt.err (!%p7302_p13)
}
 0x11b   :  { %163 = dma.hbm_to_vmem [thread:$0]  %s9004_s12, 32, %s161_s23, [#allocation18]  }
 0x11c   :  { %s7306_s2 = scalar_lea.hbm %s9009_s17, 32 }
 0x11d   :  { %p7307_p0 = scmp.ne.s32.totalorder %s9009_s17, %s7306_s2  ;;  %p7310_p1 = scmp.lt.u32.totalorder %s7306_s2, %s9009_s17 }
 0x11f   :  { %p7312_p2 = pnand %p7310_p1, %p7307_p0 }
 0x121   :  { %7315 = shalt.err (!%p7312_p2)
}
 0x122   :  { %s7316_s25 = scalar_lea.vmem %s187_s6, 32  ;;  %p7321_p4 = scmp.lt.s32.totalorder %s187_s6, %s187_s6 }
 0x123   :  { %p7317_p3 = scmp.ne.s32.totalorder %s187_s6, %s7316_s25  ;;  %p7322_p5 = scmp.lt.s32.totalorder %s7316_s25, %s7316_s25 }
 0x125   :  { %p7323_p6 = por %p7322_p5, %p7321_p4 }
 0x127   :  { %p7324_p7 = pnand %p7323_p6, %p7317_p3 }
 0x129   :  { %7327 = shalt.err (!%p7324_p7)
}
 0x12a   :  { %189 = dma.hbm_to_vmem [thread:$0]  %s9009_s17, 32, %s187_s6, [#allocation21]  }
 0x12b   :  { %s7433_s5 = smov [#allocation25]   ;;  %s7434_s9 = smov [#allocation28]  }
 0x12c   :  { %s210_s3 = sshll.u32 %s7433_s5, 4  ;;  %s232_s28 = sshll.u32 %s7434_s9, 4  ;;  %s211_s3 = int_to_ptr.vmem [resolvable:$true] %s210_s3  ;;  %s233_s28 = int_to_ptr.vmem [resolvable:$true] %s232_s28 }
 0x12d   :  { %s7328_s18 = scalar_lea.hbm %s9012_s20, 16 }
 0x12e   :  { %p7329_p8 = scmp.ne.s32.totalorder %s9012_s20, %s7328_s18  ;;  %p7332_p9 = scmp.lt.u32.totalorder %s7328_s18, %s9012_s20 }
 0x130   :  { %p7334_p10 = pnand %p7332_p9, %p7329_p8 }
 0x132   :  { %7337 = shalt.err (!%p7334_p10)
}
 0x133   :  { %s7338_s17 = scalar_lea.vmem %s211_s3, 16  ;;  %s7342_s6 = scalar_lea.vmem %s211_s3, 32 }
 0x134   :  { %p7339_p11 = scmp.ne.s32.totalorder %s211_s3, %s7338_s17  ;;  %p7343_p12 = scmp.lt.s32.totalorder %s211_s3, %s211_s3 }
 0x135   :  { %p7344_p13 = scmp.lt.s32.totalorder %s7342_s6, %s7338_s17 }
 0x137   :  { %p7345_p0 = por %p7344_p13, %p7343_p12 }
 0x139   :  { %p7346_p1 = pnand %p7345_p0, %p7339_p11 }
 0x13b   :  { %7349 = shalt.err (!%p7346_p1)
}
 0x13c   :  { %213 = dma.hbm_to_vmem [thread:$0]  %s9012_s20, 16, %s211_s3, [#allocation24]  }
 0x13d   :  { %s7350_s11 = scalar_lea.hbm %s9014_s22, 16 }
 0x13e   :  { %p7351_p2 = scmp.ne.s32.totalorder %s9014_s22, %s7350_s11  ;;  %p7354_p3 = scmp.lt.u32.totalorder %s7350_s11, %s9014_s22 }
 0x140   :  { %p7356_p4 = pnand %p7354_p3, %p7351_p2 }
 0x142   :  { %7359 = shalt.err (!%p7356_p4)
}
 0x143   :  { %s7360_s23 = scalar_lea.vmem %s233_s28, 16  ;;  %s7364_s5 = scalar_lea.vmem %s233_s28, 32 }
 0x144   :  { %p7361_p5 = scmp.ne.s32.totalorder %s233_s28, %s7360_s23  ;;  %p7365_p6 = scmp.lt.s32.totalorder %s233_s28, %s233_s28 }
 0x145   :  { %p7366_p7 = scmp.lt.s32.totalorder %s7364_s5, %s7360_s23 }
 0x147   :  { %p7367_p8 = por %p7366_p7, %p7365_p6 }
 0x149   :  { %p7368_p9 = pnand %p7367_p8, %p7361_p5 }
 0x14b   :  { %7371 = shalt.err (!%p7368_p9)
}
 0x14c   :  { %235 = dma.hbm_to_vmem [thread:$0]  %s9014_s22, 16, %s233_s28, [#allocation27]  }
 0x14d   :  { %7394 = dma.done.wait [#allocation3], 512  }
 0x14e   :  { %7395 = vsyncadd [#allocation3], 4294966784 }
 0x14f   :  { %7396 = dma.done.wait [#allocation6], 1792  }
 0x150   :  { %7397 = vsyncadd [#allocation6], 4294965504 }
 0x151   :  { %7398 = dma.done.wait [#allocation9], 12320  }
 0x152   :  { %7399 = vsyncadd [#allocation9], 4294954976 }
 0x153   :  { %7400 = dma.done.wait [#allocation12], 12320  }
 0x154   :  { %7401 = vsyncadd [#allocation12], 4294954976 }
 0x155   :  { %7402 = dma.done.wait [#allocation15], 4128  }
 0x156   :  { %7403 = vsyncadd [#allocation15], 4294963168 }
 0x157   :  { %7404 = dma.done.wait [#allocation18], 64  }
 0x158   :  { %7405 = vsyncadd [#allocation18], 4294967232 }
 0x159   :  { %7406 = dma.done.wait [#allocation21], 48  }
 0x15a   :  { %7407 = vsyncadd [#allocation21], 4294967248 }
 0x15b   :  { %7408 = dma.done.wait [#allocation24], 2064  }
 0x15c   :  { %7409 = vsyncadd [#allocation24], 4294965232 }
 0x15d   :  { %7410 = dma.done.wait [#allocation27], 528  }
 0x15e   :  { %7411 = vsyncadd [#allocation27], 4294966768  ;;  %v7435_v0 = vmov 0   ;;  %v290_v1 = vlaneseq  ;;  %v6436_v3 = vld [vmem:[#allocation7 + $0x24] ss:$8 sps:$4 sm:$0xff]   ;;  %v351_v7 = vld [vmem:[#allocation2] sm:$0xff] }
 0x15f   :  { %507 = vmatprep.mubr.bf16.mxu0 %v7435_v0  ;;  %6434 = vset.pattern.permute.xlu0 %v7435_v0  ;;  %v6438_v4 = vld [vmem:[#allocation7 + $0x20] ss:$8 sps:$4 sm:$0xff]   ;;  %v6439_v5 = vld [vmem:[#allocation7 + $0x34] ss:$8 sps:$4 sm:$0xff]   ;;  %v6441_v6 = vld [vmem:[#allocation7 + $0x30] ss:$8 sps:$4 sm:$0xff]  }
 0x160   :  { %6435 = vset.pattern.permute.xlu1 %v7435_v0  ;;  %v7791_v2 = vshrl.u32 %v290_v1, 7  ;;  %475 = vmatprep.subr.bf16.mxu0 %v6436_v3  ;;  %v352_v8 = vld [vmem:[#allocation2 + $0x8] sm:$0xff]  ;;  %v6444_v10 = vld [vmem:[#allocation7 + $0x4] ss:$8 sps:$4 sm:$0xff]   ;;  %vm9029_vm0 = vcmask 261120   ;;  %vm7436_vm2 = vmmov 0  }
 0x161   :  { %476 = vmatpush1.bf16.msra.mxu0 %v6438_v4  ;;  %v7794_v11 = vpack.c.bf16 %v352_v8, %v351_v7  ;;  %v6442_v13 = vld [vmem:[#allocation7] ss:$8 sps:$4 sm:$0xff]   ;;  %v6447_v16 = vld [vmem:[#allocation7 + $0x14] ss:$8 sps:$4 sm:$0xff]   ;;  %vm7802_vm3 = vmpackc.low %vm7436_vm2, %vm7436_vm2  ;;  %vm357_vm5 = vsmask.f32 256 }
 0x162   :  { %v299_v9 = vand.u32 15, %v7791_v2  ;;  %477 = vmatprep.subr.bf16.mxu0 %v6439_v5  ;;  %v293_v12 = vadd.s32 16, %v7791_v2  ;;  %v353_v18 = vld [vmem:[#allocation2 + $0x10] sm:$0xff]  ;;  %v354_v19 = vld [vmem:[#allocation2 + $0x18] sm:$0xff]  ;;  %v6445_v20 = vld [vmem:[#allocation7 + $0x10] ss:$8 sps:$4 sm:$0xff]  }
 0x163   :  { %v359_v15 = vshrl.u32 %v7794_v11, 16  ;;  %v6450_v22 = vld [vmem:[#allocation7 + $0x44] ss:$8 sps:$4 sm:$0xff]   ;;  %v362_v24 = vshll.u32 %v7794_v11, 16  ;;  %vm9030_vm6 = vcmask 1040384   ;;  %v7819_v28 = vsel %vm7802_vm3, 65537, %v7435_v0 }
 0x164   :  { %vm7797_vm1 = vcmp.eq.s32.totalorder %v299_v9, 0  ;;  %v313_v21 = vand.u32 15, %v293_v12  ;;  %v6454_v23 = vld [vmem:[#allocation10 + $0x104] ss:$8 sps:$4 sm:$0xff]   ;;  %v6456_v26 = vld [vmem:[#allocation10 + $0x100] ss:$8 sps:$4 sm:$0xff]   ;;  %v7821_v30 = vpack.c.bf16 %v354_v19, %v353_v18  ;;  %vm7831_vm8 = vmand %vm9030_vm6, %vm357_vm5 }
 0x165   :  { %478 = vmatpush1.bf16.msra.mxu0 %v6441_v6  ;;  %vm386_vm4 = vmpackc.low %vm7797_vm1, %vm7797_vm1  ;;  %v361_v25 = vrot.slane %v359_v15, 7  ;;  %1008 = vmatprep.subr.bf16.mxu1 %v6454_v23  ;;  %v6457_v29 = vld [vmem:[#allocation10 + $0x114] ss:$8 sps:$4 sm:$0xff]   ;;  %v292_v32 = vadd.s32 8, %v7791_v2  ;;  %v6459_v33 = vld [vmem:[#allocation10 + $0x110] ss:$8 sps:$4 sm:$0xff]  }
 0x166   :  { %554 = vmatprep.subr.bf16.mxu0 %v6444_v10  ;;  %v390_v27 = vsel %vm386_vm4, 65537, %v7435_v0  ;;  %vm7823_vm7 = vcmp.eq.s32.totalorder %v313_v21, 0  ;;  %1009 = vmatpush1.bf16.msra.mxu1 %v6456_v26  ;;  %v6460_v34 = vld [vmem:[#allocation10 + $0x124] ss:$8 sps:$4 sm:$0xff]   ;;  %v366_v35 = vshrl.u32 %v7821_v30, 16  ;;  %v294_v39 = vadd.s32 24, %v7791_v2 }
 0x167   :  { %1010 = vmatprep.subr.bf16.mxu1 %v6457_v29  ;;  %v364_v36 = vor.u32 %v362_v24, %v361_v25  ;;  %v5602_v38 = vcombine.low %v390_v27, %v7819_v28  ;;  %vm388_vm9 = vmpackc.low %vm7823_vm7, %vm7823_vm7  ;;  %v306_v40 = vand.u32 15, %v292_v32  ;;  %v6462_v41 = vld [vmem:[#allocation10 + $0x120] ss:$8 sps:$4 sm:$0xff]   ;;  %v6463_v42 = vld [vmem:[#allocation10 + $0x134] ss:$8 sps:$4 sm:$0xff]   ;;  %v369_v46 = vshll.u32 %v7821_v30, 16 }
 0x168   :  { %5610 = vmatmul.mubr.msk.bf16.vlgmr.msra.gmra.mrb[0].mxu0 %vm9029_vm0, %v7794_v11  ;;  %v368_v45 = vrot.slane %v366_v35, 7  ;;  %v392_v47 = vsel %vm388_vm9, 65537, %v7435_v0  ;;  %v320_v48 = vand.u32 15, %v294_v39  ;;  %v6465_v50 = vld [vmem:[#allocation10 + $0x130] ss:$8 sps:$4 sm:$0xff]   ;;  %v405_v61 = vrot.slane %v362_v24, 1 }
 0x169   :  { %517 = vmatprep.mubr.bf16.mxu0 %v7435_v0  ;;  %555 = vmatpush1.bf16.msra.mxu0 %v6442_v13  ;;  %v377_v43 = vsel %vm7831_vm8, 0, %v364_v36  ;;  %vm7845_vm10 = vcmp.ne.s16.totalorder %v5602_v38, 0  ;;  %vm7853_vm11 = vcmp.eq.s32.totalorder %v306_v40, 15  ;;  %v6448_v52 = vld [vmem:[#allocation7 + $0x40] ss:$8 sps:$4 sm:$0xff]   ;;  %v5603_v54 = vcombine.low %v392_v47, %v7819_v28  ;;  %s7437_s22 = smov 1  }
 0x16a   :  { %556 = vmatprep.subr.bf16.mxu0 %v6447_v16  ;;  %1011 = vmatpush1.bf16.msra.mxu1 %v6459_v33  ;;  %v402_v51 = vsel %vm7845_vm10, 0, %v377_v43  ;;  %v371_v53 = vor.u32 %v369_v46, %v368_v45  ;;  %v6453_v55 = vld [vmem:[#allocation7 + $0x54] ss:$8 sps:$4 sm:$0xff]   ;;  %v6466_v56 = vld [vmem:[#allocation10 + $0x144] ss:$8 sps:$4 sm:$0xff]   ;;  %vm424_vm12 = vmpackc.low %vm7853_vm11, %vm7853_vm11  ;;  %vm7863_vm13 = vcmp.eq.s32.totalorder %v320_v48, 15  ;;  %v406_v8 = vor.u32 %v405_v61, %v359_v15 }
 0x16b   :  { %1012 = vmatprep.subr.bf16.mxu1 %v6460_v34  ;;  %v6451_v57 = vld [vmem:[#allocation7 + $0x50] ss:$8 sps:$4 sm:$0xff]   ;;  %v6468_v59 = vld [vmem:[#allocation10 + $0x140] ss:$8 sps:$4 sm:$0xff]   ;;  %vm7870_vm14 = vcmp.ne.s16.totalorder %v5603_v54, 0  ;;  %vm426_vm15 = vmpackc.low %vm7863_vm13, %vm7863_vm13  ;;  %v428_v3 = vsel %vm424_vm12, 65537, %v7435_v0 }
 0x16c   :  { %v6469_v60 = vld [vmem:[#allocation10 + $0x154] ss:$8 sps:$4 sm:$0xff]   ;;  %v372_v62 = vsel %vm357_vm5, %v361_v25, %v371_v53  ;;  %v6471_v4 = vld [vmem:[#allocation10 + $0x150] ss:$8 sps:$4 sm:$0xff]   ;;  %v6472_v5 = vld [vmem:[#allocation10 + $0x164] ss:$8 sps:$4 sm:$0xff]   ;;  %v5604_v9 = vcombine.low %v7819_v28, %v428_v3 }
 0x16d   :  { %557 = vmatpush1.bf16.msra.mxu0 %v6445_v20  ;;  %vm412_vm2 = vcmask 1047552   ;;  %v403_v6 = vsel %vm7870_vm14, 0, %v372_v62  ;;  %v407_v7 = vrot.slane %v369_v46, 1  ;;  %vm404_vm3 = vsmask.f32 7424  ;;  %s7438_s9 = smov 127  }
 0x16e   :  { %638 = vmatprep.subr.bf16.mxu0 %v6450_v22  ;;  %1013 = vmatpush1.bf16.msra.mxu1 %v6462_v41  ;;  %v6474_v10 = vld [vmem:[#allocation10 + $0x160] ss:$8 sps:$4 sm:$0xff]   ;;  %vm7884_vm4 = vmand %vm412_vm2, %vm404_vm3  ;;  %v6475_v13 = vld [vmem:[#allocation10 + $0x174] ss:$8 sps:$4 sm:$0xff]   ;;  %vm7891_vm9 = vcmp.ne.s16.totalorder %v5604_v9, 0  ;;  %v430_v17 = vsel %vm426_vm15, 65537, %v7435_v0 }
 0x16f   :  { %1014 = vmatprep.subr.bf16.mxu1 %v6463_v42  ;;  %v408_v16 = vsel %vm404_vm3, %v406_v8, %v407_v7  ;;  %v6477_v15 = vld [vmem:[#allocation10 + $0x170] ss:$8 sps:$4 sm:$0xff]   ;;  %v6478_v18 = vld [vmem:[#allocation10 + $0x184] ss:$8 sps:$4 sm:$0xff]   ;;  %v409_v20 = vor.u32 %v407_v7, %v366_v35  ;;  %v5605_v21 = vcombine.low %v7819_v28, %v430_v17  ;;  %v6480_v22 = vld [vmem:[#allocation10 + $0x180] ss:$8 sps:$4 sm:$0xff]  }
 0x170   :  { %5611 = vmatmul.mubr.msk.bf16.gmra.mrb[4].mxu0 %vm9029_vm0, %v7821_v30  ;;  %v439_v19 = vsel %vm7891_vm9, 0, %v408_v16  ;;  %v6481_v23 = vld [vmem:[#allocation10 + $0x194] ss:$8 sps:$4 sm:$0xff]   ;;  %v6483_v26 = vld [vmem:[#allocation10 + $0x190] ss:$8 sps:$4 sm:$0xff]   ;;  %v7918_v43 = vsub.s32 1, %v7791_v2  ;;  %vm5688_vm15 = vmneg %vm7845_vm10 }
 0x171   :  { %586 = vmatprep.mubr.bf16.mxu0 %v7435_v0  ;;  %v414_v24 = vsel %vm7884_vm4, %v409_v20, 0  ;;  %vm7910_vm12 = vcmp.ne.s16.totalorder %v5605_v21, 0  ;;  %v6484_v27 = vld [vmem:[#allocation10 + $0x1a4] ss:$8 sps:$4 sm:$0xff]   ;;  %v6486_v29 = vld [vmem:[#allocation10 + $0x1a0] ss:$8 sps:$4 sm:$0xff]   ;;  %vm5692_vm2 = vmneg %vm7870_vm14 }
 0x172   :  { %1015 = vmatpush1.bf16.msra.mxu1 %v6465_v50  ;;  %v440_v28 = vsel %vm7910_vm12, 0, %v414_v24  ;;  %v6487_v30 = vld [vmem:[#allocation10 + $0x1b4] ss:$8 sps:$4 sm:$0xff]   ;;  %v6489_v32 = vld [vmem:[#allocation10 + $0x1b0] ss:$8 sps:$4 sm:$0xff]   ;;  %v7921_v46 = vsub.s32 0, %v7791_v2  ;;  %vm5732_vm6 = vmneg %vm7910_vm12 }
 0x173   :  { %1016 = vmatprep.subr.bf16.mxu1 %v6466_v56  ;;  %v6490_v33 = vld [vmem:[#allocation10 + $0x1c4] ss:$8 sps:$4 sm:$0xff]   ;;  %v6492_v34 = vld [vmem:[#allocation10 + $0x1c0] ss:$8 sps:$4 sm:$0xff]   ;;  %v6493_v35 = vld [vmem:[#allocation10 + $0x1d4] ss:$8 sps:$4 sm:$0xff]  }
 0x174   :  { %v6495_v36 = vld [vmem:[#allocation10 + $0x1d0] ss:$8 sps:$4 sm:$0xff]   ;;  %v6496_v38 = vld [vmem:[#allocation10 + $0x1e4] ss:$8 sps:$4 sm:$0xff]   ;;  %v6498_v39 = vld [vmem:[#allocation10 + $0x1e0] ss:$8 sps:$4 sm:$0xff]  }
 0x175   :  { %v6499_v40 = vld [vmem:[#allocation10 + $0x1f4] ss:$8 sps:$4 sm:$0xff]   ;;  %v6501_v41 = vld [vmem:[#allocation10 + $0x1f0] ss:$8 sps:$4 sm:$0xff]   ;;  %v6504_v42 = vld [vmem:[#allocation10 + $0x4] ss:$8 sps:$4 sm:$0xff]  }
 0x176   :  { %1017 = vmatpush1.bf16.msra.mxu1 %v6468_v59  ;;  %v699_v45 = vld [vmem:[#allocation8] sm:$0x3]  ;;  %v6502_v59 = vld [vmem:[#allocation10] ss:$8 sps:$4 sm:$0xff]   ;;  %s9078_s27 = sld [smem:[#allocation41_spill]]  ;;  %s9095_s25 = sld [smem:[#allocation43_spill]] }
 0x177   :  { %1018 = vmatprep.subr.bf16.mxu1 %v6469_v60  ;;  %v708_v48 = vrot.slane %v699_v45, %v7918_v43  ;;  %v704_v50 = vrot.slane %v699_v45, %v7921_v46  ;;  %v6507_v61 = vld [vmem:[#allocation10 + $0x14] ss:$8 sps:$4 sm:$0xff]   ;;  %v6508_v20 = vld [vmem:[#allocation10 + $0x20] ss:$8 sps:$4 sm:$0xff]   ;;  %v6742_v58 = vld [vmem:[#allocation16] ss:$8 sps:$4 sm:$0xff]  }
 0x178   :  { %5616 = vmatmul.mubr.msk.bf16.vlgmr.msra.gmra.mrb[0].mxu0 %vm9029_vm0, %v402_v51  ;;  %v6598_v24 = vld [vmem:[#allocation13 + $0x100] ss:$8 sps:$4 sm:$0xff]   ;;  %v6525_v45 = vld [vmem:[#allocation10 + $0x74] ss:$8 sps:$4 sm:$0xff]   ;;  %v6714_v63 = vld [vmem:[#allocation13 + $0x264] ss:$8 sps:$4 sm:$0xff]  }
 0x179   :  { %596 = vmatprep.mubr.bf16.mxu0 %v7435_v0  ;;  %639 = vmatpush1.bf16.msra.mxu0 %v6448_v52  ;;  %v2373_v11 = vld [vmem:[#allocation14] sm:$0x3]  ;;  %s7440_s5 = smov 64  }
 0x17a   :  { %640 = vmatprep.subr.bf16.mxu0 %v6453_v55  ;;  %1019 = vmatpush1.bf16.msra.mxu1 %v6471_v4 }
 0x17b   :  { %1020 = vmatprep.subr.bf16.mxu1 %v6472_v5 }
 0x17d   :  { %641 = vmatpush1.bf16.msra.mxu0 %v6451_v57 }
 0x17e   :  { %1021 = vmatpush1.bf16.msra.mxu1 %v6474_v10 }
 0x17f   :  { %1022 = vmatprep.subr.bf16.mxu1 %v6475_v13  ;;  %v6510_v13 = vld [vmem:[#allocation10 + $0x24] ss:$8 sps:$4 sm:$0xff]  }
 0x180   :  { %5617 = vmatmul.mubr.msk.bf16.gmra.mrb[4].mxu0 %vm9029_vm0, %v403_v6  ;;  %v6505_v6 = vld [vmem:[#allocation10 + $0x10] ss:$8 sps:$4 sm:$0xff]  }
 0x181   :  { %670 = vmatprep.mubr.bf16.mxu0 %v7435_v0 }
 0x182   :  { %1023 = vmatpush1.bf16.msra.mxu1 %v6477_v15 }
 0x183   :  { %1024 = vmatprep.subr.bf16.mxu1 %v6478_v18 }
 0x186   :  { %1025 = vmatpush1.bf16.msra.mxu1 %v6480_v22  ;;  %v6513_v22 = vld [vmem:[#allocation10 + $0x34] ss:$8 sps:$4 sm:$0xff]  }
 0x187   :  { %1026 = vmatprep.subr.bf16.mxu1 %v6481_v23 }
 0x188   :  { %5622 = vmatmul.mubr.msk.bf16.vlgmr.msra.gmra.mrb[0].mxu0 %vm9029_vm0, %v439_v19 }
 0x189   :  { %680 = vmatprep.mubr.bf16.mxu0 %v7435_v0 }
 0x18a   :  { %1027 = vmatpush1.bf16.msra.mxu1 %v6483_v26  ;;  %v6600_v26 = vld [vmem:[#allocation13 + $0x104] ss:$8 sps:$4 sm:$0xff]  }
 0x18b   :  { %1028 = vmatprep.subr.bf16.mxu1 %v6484_v27  ;;  %v6511_v27 = vld [vmem:[#allocation10 + $0x30] ss:$8 sps:$4 sm:$0xff]   ;;  %1853 = vmatprep.subr.bf16.mxu0 %v6600_v26  ;;  %v6540_v26 = vld [vmem:[#allocation10 + $0xc4] ss:$8 sps:$4 sm:$0xff]  }
 0x18c   :  { %1854 = vmatpush1.bf16.msra.mxu0 %v6598_v24  ;;  %v6535_v24 = vld [vmem:[#allocation10 + $0xb0] ss:$8 sps:$4 sm:$0xff]  }
 0x18e   :  { %1029 = vmatpush1.bf16.msra.mxu1 %v6486_v29  ;;  %v6516_v29 = vld [vmem:[#allocation10 + $0x44] ss:$8 sps:$4 sm:$0xff]  }
 0x18f   :  { %1030 = vmatprep.subr.bf16.mxu1 %v6487_v30  ;;  %v6601_v30 = vld [vmem:[#allocation13 + $0x110] ss:$8 sps:$4 sm:$0xff]  }
 0x190   :  { %5623 = vmatmul.mubr.msk.bf16.gmra.mrb[4].mxu0 %vm9029_vm0, %v440_v28  ;;  %v6603_v28 = vld [vmem:[#allocation13 + $0x114] ss:$8 sps:$4 sm:$0xff]   ;;  %vm5728_vm0 = vmneg %vm7891_vm9 }
 0x191   :  { %1855 = vmatprep.subr.bf16.mxu0 %v6603_v28  ;;  %v6630_v28 = vld [vmem:[#allocation13 + $0x1a4] ss:$8 sps:$4 sm:$0xff]  }
 0x192   :  { %1031 = vmatpush1.bf16.msra.mxu1 %v6489_v32  ;;  %v6606_v32 = vld [vmem:[#allocation13 + $0x124] ss:$8 sps:$4 sm:$0xff]   ;;  %1856 = vmatpush1.bf16.msra.mxu0 %v6601_v30  ;;  %v6543_v30 = vld [vmem:[#allocation10 + $0xd4] ss:$8 sps:$4 sm:$0xff]  }
 0x193   :  { %1032 = vmatprep.subr.bf16.mxu1 %v6490_v33  ;;  %v6514_v33 = vld [vmem:[#allocation10 + $0x40] ss:$8 sps:$4 sm:$0xff]   ;;  %1857 = vmatprep.subr.bf16.mxu0 %v6606_v32 }
 0x194   :  { %v6628_v32 = vld [vmem:[#allocation13 + $0x1a0] ss:$8 sps:$4 sm:$0xff]  }
 0x196   :  { %1033 = vmatpush1.bf16.msra.mxu1 %v6492_v34  ;;  %v6519_v34 = vld [vmem:[#allocation10 + $0x54] ss:$8 sps:$4 sm:$0xff]  }
 0x197   :  { %1034 = vmatprep.subr.bf16.mxu1 %v6493_v35  ;;  %v6604_v35 = vld [vmem:[#allocation13 + $0x120] ss:$8 sps:$4 sm:$0xff]  }
 0x198   :  { %1858 = vmatpush1.bf16.msra.mxu0 %v6604_v35  ;;  %v6546_v35 = vld [vmem:[#allocation10 + $0xe4] ss:$8 sps:$4 sm:$0xff]  }
 0x19a   :  { %1035 = vmatpush1.bf16.msra.mxu1 %v6495_v36  ;;  %v6609_v36 = vld [vmem:[#allocation13 + $0x134] ss:$8 sps:$4 sm:$0xff]  }
 0x19b   :  { %1036 = vmatprep.subr.bf16.mxu1 %v6496_v38  ;;  %v6517_v38 = vld [vmem:[#allocation10 + $0x50] ss:$8 sps:$4 sm:$0xff]   ;;  %1859 = vmatprep.subr.bf16.mxu0 %v6609_v36 }
 0x19e   :  { %1037 = vmatpush1.bf16.msra.mxu1 %v6498_v39  ;;  %v6522_v39 = vld [vmem:[#allocation10 + $0x64] ss:$8 sps:$4 sm:$0xff]  }
 0x19f   :  { %1038 = vmatprep.subr.bf16.mxu1 %v6499_v40  ;;  %v6607_v40 = vld [vmem:[#allocation13 + $0x130] ss:$8 sps:$4 sm:$0xff]  }
 0x1a0   :  { %1860 = vmatpush1.bf16.msra.mxu0 %v6607_v40  ;;  %v6636_v40 = vld [vmem:[#allocation13 + $0x1c4] ss:$8 sps:$4 sm:$0xff]  }
 0x1a2   :  { %1039 = vmatpush1.bf16.msra.mxu1 %v6501_v41  ;;  %v6612_v41 = vld [vmem:[#allocation13 + $0x144] ss:$8 sps:$4 sm:$0xff]  }
 0x1a3   :  { %1221 = vmatprep.subr.bf16.mxu1 %v6504_v42  ;;  %v6520_v42 = vld [vmem:[#allocation10 + $0x60] ss:$8 sps:$4 sm:$0xff]   ;;  %1861 = vmatprep.subr.bf16.mxu0 %v6612_v41 }
 0x1a4   :  { %v6544_v41 = vld [vmem:[#allocation10 + $0xe0] ss:$8 sps:$4 sm:$0xff]  }
 0x25b   :  { %v672_v47 = vpop.f32.mrb[0].mxu0 }
 0x25c   :  { %v674_v51 = vpop.f32.mrb[1].mxu0  ;;  %v7931_v57 = vadd.f32 %v704_v50, %v672_v47  ;;  %v6610_v47 = vld [vmem:[#allocation13 + $0x140] ss:$8 sps:$4 sm:$0xff]  }
 0x25d   :  { %v676_v52 = vpop.f32.mrb[2].mxu0  ;;  %v7927_v55 = vadd.f32 %v708_v48, %v674_v51  ;;  %v6528_v51 = vld [vmem:[#allocation10 + $0x84] ss:$8 sps:$4 sm:$0xff]   ;;  %1862 = vmatpush1.bf16.msra.mxu0 %v6610_v47 }
 0x25e   :  { %v7925_v53 = vadd.f32 %v704_v50, %v676_v52  ;;  %v678_v54 = vpop.f32.mrb[3].mxu0  ;;  %v6613_v52 = vld [vmem:[#allocation13 + $0x150] ss:$8 sps:$4 sm:$0xff]   ;;  %v6634_v47 = vld [vmem:[#allocation13 + $0x1c0] ss:$8 sps:$4 sm:$0xff]  }
 0x25f   :  { %v7929_v56 = vadd.f32 %v708_v48, %v678_v54  ;;  %v6618_v54 = vld [vmem:[#allocation13 + $0x164] ss:$8 sps:$4 sm:$0xff]  }
 0x260   :  { %v7939_v60 = vpack.c.bf16 %v7925_v53, %v7931_v57 }
 0x261   :  { %v7935_v2 = vpack.c.bf16 %v7929_v56, %v7927_v55 }
 0x262   :  { %v724_v36 = vshrl.u32 %v7939_v60, 16 }
 0x263   :  { %v731_v62 = vshrl.u32 %v7935_v2, 16  ;;  %v682_v3 = vpop.f32.mrb[4].mxu0  ;;  %1040 = vmatprep.mubr.bf16.mxu1 %v7935_v2  ;;  %v734_v8 = vshll.u32 %v7935_v2, 16  ;;  %v6559_v2 = vld [vmem:[#allocation10 + $0x230] ss:$8 sps:$4 sm:$0xff]  }
 0x264   :  { %v684_v4 = vpop.f32.mrb[5].mxu0  ;;  %1041 = vmatmul.mubr.bf16.vlgmr.msra.gmra.mrb[0].mxu1 %v7939_v60  ;;  %v7955_v17 = vadd.f32 %v704_v50, %v682_v3  ;;  %v6616_v3 = vld [vmem:[#allocation13 + $0x160] ss:$8 sps:$4 sm:$0xff]  }
 0x265   :  { %1222 = vmatpush1.bf16.msra.mxu1 %v6502_v59  ;;  %v686_v5 = vpop.f32.mrb[6].mxu0  ;;  %v7946_v7 = vrot.slane %v731_v62, 7  ;;  %v7951_v16 = vadd.f32 %v708_v48, %v684_v4  ;;  %v6526_v59 = vld [vmem:[#allocation10 + $0x80] ss:$8 sps:$4 sm:$0xff]  }
 0x266   :  { %v7949_v9 = vadd.f32 %v704_v50, %v686_v5  ;;  %v688_v10 = vpop.f32.mrb[7].mxu0  ;;  %1223 = vmatprep.subr.bf16.mxu1 %v6507_v61  ;;  %v6523_v50 = vld [vmem:[#allocation10 + $0x70] ss:$8 sps:$4 sm:$0xff]   ;;  %v6531_v61 = vld [vmem:[#allocation10 + $0x94] ss:$8 sps:$4 sm:$0xff]  }
 0x267   :  { %v7953_v15 = vadd.f32 %v708_v48, %v688_v10  ;;  %v736_v18 = vor.u32 %v734_v8, %v7946_v7  ;;  %v6615_v48 = vld [vmem:[#allocation13 + $0x154] ss:$8 sps:$4 sm:$0xff]   ;;  %v6619_v10 = vld [vmem:[#allocation13 + $0x170] ss:$8 sps:$4 sm:$0xff]  }
 0x268   :  { %v7966_v21 = vpack.c.bf16 %v7949_v9, %v7955_v17  ;;  %1863 = vmatprep.subr.bf16.mxu0 %v6615_v48  ;;  %v6621_v4 = vld [vmem:[#allocation13 + $0x174] ss:$8 sps:$4 sm:$0xff]  }
 0x269   :  { %v7962_v19 = vpack.c.bf16 %v7953_v15, %v7951_v16  ;;  %1224 = vmatpush1.bf16.msra.mxu1 %v6505_v6  ;;  %v758_v23 = vsel %vm7831_vm8, 0, %v736_v18  ;;  %1864 = vmatpush1.bf16.msra.mxu0 %v6613_v52  ;;  %v6529_v5 = vld [vmem:[#allocation10 + $0x90] ss:$8 sps:$4 sm:$0xff]   ;;  %v6534_v6 = vld [vmem:[#allocation10 + $0xa4] ss:$8 sps:$4 sm:$0xff]  }
 0x26a   :  { %1225 = vmatprep.subr.bf16.mxu1 %v6510_v13  ;;  %1865 = vmatprep.subr.bf16.mxu0 %v6618_v54  ;;  %v6624_v13 = vld [vmem:[#allocation13 + $0x184] ss:$8 sps:$4 sm:$0xff]  }
 0x26b   :  { %1050 = vmatprep.mubr.bf16.mxu1 %v7962_v19  ;;  %v6532_v18 = vld [vmem:[#allocation10 + $0xa0] ss:$8 sps:$4 sm:$0xff]   ;;  %v749_v52 = vshll.u32 %v7962_v19, 16  ;;  %v6552_v54 = vld [vmem:[#allocation10 + $0x204] ss:$8 sps:$4 sm:$0xff]  }
 0x26c   :  { %1051 = vmatmul.mubr.bf16.gmra.mrb[4].mxu1 %v7966_v21 }
 0x26d   :  { %1226 = vmatpush1.bf16.msra.mxu1 %v6508_v20  ;;  %5689 = vmatprep.mubr.msk.bf16.mxu1 %vm5688_vm15, %v758_v23  ;;  %v6537_v20 = vld [vmem:[#allocation10 + $0xb4] ss:$8 sps:$4 sm:$0xff]  }
 0x26e   :  { %1227 = vmatprep.subr.bf16.mxu1 %v6513_v22  ;;  %1866 = vmatpush1.bf16.msra.mxu0 %v6616_v3  ;;  %v6622_v22 = vld [vmem:[#allocation13 + $0x180] ss:$8 sps:$4 sm:$0xff]   ;;  %v6627_v23 = vld [vmem:[#allocation13 + $0x194] ss:$8 sps:$4 sm:$0xff]  }
 0x26f   :  { %1867 = vmatprep.subr.bf16.mxu0 %v6621_v4  ;;  %v6550_v4 = vld [vmem:[#allocation10 + $0x200] ss:$8 sps:$4 sm:$0xff]  }
 0x271   :  { %1228 = vmatpush1.bf16.msra.mxu1 %v6511_v27  ;;  %v6625_v27 = vld [vmem:[#allocation13 + $0x190] ss:$8 sps:$4 sm:$0xff]  }
 0x272   :  { %1229 = vmatprep.subr.bf16.mxu1 %v6516_v29  ;;  %1868 = vmatpush1.bf16.msra.mxu0 %v6619_v10  ;;  %v6538_v29 = vld [vmem:[#allocation10 + $0xc0] ss:$8 sps:$4 sm:$0xff]  }
 0x273   :  { %1869 = vmatprep.subr.bf16.mxu0 %v6624_v13 }
 0x275   :  { %1230 = vmatpush1.bf16.msra.mxu1 %v6514_v33  ;;  %v6633_v33 = vld [vmem:[#allocation13 + $0x1b4] ss:$8 sps:$4 sm:$0xff]  }
 0x276   :  { %1231 = vmatprep.subr.bf16.mxu1 %v6519_v34  ;;  %1870 = vmatpush1.bf16.msra.mxu0 %v6622_v22  ;;  %v6541_v34 = vld [vmem:[#allocation10 + $0xd0] ss:$8 sps:$4 sm:$0xff]   ;;  %v767_v22 = vrot.slane %v734_v8, 1 }
 0x277   :  { %1871 = vmatprep.subr.bf16.mxu0 %v6627_v23  ;;  %v6558_v23 = vld [vmem:[#allocation10 + $0x224] ss:$8 sps:$4 sm:$0xff]  }
 0x279   :  { %1232 = vmatpush1.bf16.msra.mxu1 %v6517_v38  ;;  %v6631_v38 = vld [vmem:[#allocation13 + $0x1b0] ss:$8 sps:$4 sm:$0xff]  }
 0x27a   :  { %1233 = vmatprep.subr.bf16.mxu1 %v6522_v39  ;;  %1872 = vmatpush1.bf16.msra.mxu0 %v6625_v27  ;;  %v746_v39 = vshrl.u32 %v7962_v19, 16  ;;  %v768_v27 = vor.u32 %v767_v22, %v731_v62  ;;  %v6564_v62 = vld [vmem:[#allocation10 + $0x244] ss:$8 sps:$4 sm:$0xff]   ;;  %v6595_v22 = vld [vmem:[#allocation10 + $0x2f0] ss:$8 sps:$4 sm:$0xff]  }
 0x27b   :  { %1873 = vmatprep.subr.bf16.mxu0 %v6630_v28  ;;  %v6561_v28 = vld [vmem:[#allocation10 + $0x234] ss:$8 sps:$4 sm:$0xff]  }
 0x27c   :  { %v748_v48 = vrot.slane %v746_v39, 7 }
 0x27d   :  { %1234 = vmatpush1.bf16.msra.mxu1 %v6520_v42  ;;  %v6549_v42 = vld [vmem:[#allocation10 + $0xf4] ss:$8 sps:$4 sm:$0xff]  }
 0x27e   :  { %1235 = vmatprep.subr.bf16.mxu1 %v6525_v45  ;;  %1874 = vmatpush1.bf16.msra.mxu0 %v6628_v32  ;;  %v726_v45 = vrot.slane %v724_v36, 7  ;;  %v751_v3 = vor.u32 %v749_v52, %v748_v48  ;;  %v6567_v32 = vld [vmem:[#allocation10 + $0x254] ss:$8 sps:$4 sm:$0xff]   ;;  %v6582_v48 = vld [vmem:[#allocation10 + $0x2a4] ss:$8 sps:$4 sm:$0xff]  }
 0x27f   :  { %1875 = vmatprep.subr.bf16.mxu0 %v6633_v33  ;;  %v6565_v33 = vld [vmem:[#allocation10 + $0x250] ss:$8 sps:$4 sm:$0xff]  }
 0x280   :  { %v752_v13 = vsel %vm357_vm5, %v7946_v7, %v751_v3  ;;  %v6556_v7 = vld [vmem:[#allocation10 + $0x220] ss:$8 sps:$4 sm:$0xff]  }
 0x281   :  { %1236 = vmatpush1.bf16.msra.mxu1 %v6523_v50  ;;  %v727_v50 = vshll.u32 %v7939_v60, 16  ;;  %v6586_v3 = vld [vmem:[#allocation10 + $0x2c0] ss:$8 sps:$4 sm:$0xff]  }
 0x282   :  { %1237 = vmatprep.subr.bf16.mxu1 %v6528_v51  ;;  %1876 = vmatpush1.bf16.msra.mxu0 %v6631_v38  ;;  %v6547_v51 = vld [vmem:[#allocation10 + $0xf0] ss:$8 sps:$4 sm:$0xff]   ;;  %v6573_v38 = vld [vmem:[#allocation10 + $0x274] ss:$8 sps:$4 sm:$0xff]  }
 0x283   :  { %1877 = vmatprep.subr.bf16.mxu0 %v6636_v40  ;;  %v6571_v40 = vld [vmem:[#allocation10 + $0x270] ss:$8 sps:$4 sm:$0xff]  }
 0x285   :  { %1238 = vmatpush1.bf16.msra.mxu1 %v6526_v59  ;;  %v729_v59 = vor.u32 %v727_v50, %v726_v45 }
 0x286   :  { %1239 = vmatprep.subr.bf16.mxu1 %v6531_v61  ;;  %v738_v61 = vshrl.u32 %v7966_v21, 16  ;;  %1878 = vmatpush1.bf16.msra.mxu0 %v6634_v47  ;;  %v6577_v47 = vld [vmem:[#allocation10 + $0x290] ss:$8 sps:$4 sm:$0xff]  }
 0x287   :  { %v757_v10 = vsel %vm7831_vm8, 0, %v729_v59  ;;  %v6588_v59 = vld [vmem:[#allocation10 + $0x2c4] ss:$8 sps:$4 sm:$0xff]  }
 0x289   :  { %1240 = vmatpush1.bf16.msra.mxu1 %v6529_v5  ;;  %v6555_v5 = vld [vmem:[#allocation10 + $0x214] ss:$8 sps:$4 sm:$0xff]  }
 0x28a   :  { %1241 = vmatprep.subr.bf16.mxu1 %v6534_v6  ;;  %v740_v6 = vrot.slane %v738_v61, 7 }
 0x28d   :  { %1242 = vmatpush1.bf16.msra.mxu1 %v6532_v18  ;;  %v741_v18 = vshll.u32 %v7966_v21, 16  ;;  %v6648_v21 = vld [vmem:[#allocation13 + $0x4] ss:$8 sps:$4 sm:$0xff]  }
 0x28e   :  { %1243 = vmatprep.subr.bf16.mxu1 %v6537_v20  ;;  %v6553_v20 = vld [vmem:[#allocation10 + $0x210] ss:$8 sps:$4 sm:$0xff]  }
 0x291   :  { %1244 = vmatpush1.bf16.msra.mxu1 %v6535_v24  ;;  %v743_v24 = vor.u32 %v741_v18, %v740_v6  ;;  %v6594_v6 = vld [vmem:[#allocation10 + $0x2e4] ss:$8 sps:$4 sm:$0xff]  }
 0x292   :  { %1245 = vmatprep.subr.bf16.mxu1 %v6540_v26  ;;  %v8007_v26 = vrot.slane %v749_v52, 1  ;;  %v6585_v52 = vld [vmem:[#allocation10 + $0x2b4] ss:$8 sps:$4 sm:$0xff]  }
 0x294   :  { %v770_v8 = vsel %vm404_vm3, %v768_v27, %v8007_v26 }
 0x295   :  { %1246 = vmatpush1.bf16.msra.mxu1 %v6538_v29  ;;  %v744_v29 = vsel %vm357_vm5, %v726_v45, %v743_v24  ;;  %v6579_v45 = vld [vmem:[#allocation10 + $0x294] ss:$8 sps:$4 sm:$0xff]   ;;  %v772_v24 = vor.u32 %v8007_v26, %v746_v39  ;;  %v6640_v26 = vld [vmem:[#allocation13 + $0x1e0] ss:$8 sps:$4 sm:$0xff]  }
 0x296   :  { %1247 = vmatprep.subr.bf16.mxu1 %v6543_v30  ;;  %v6562_v30 = vld [vmem:[#allocation10 + $0x240] ss:$8 sps:$4 sm:$0xff]   ;;  %v6637_v39 = vld [vmem:[#allocation13 + $0x1d0] ss:$8 sps:$4 sm:$0xff]  }
 0x299   :  { %1248 = vmatpush1.bf16.msra.mxu1 %v6541_v34  ;;  %v6570_v34 = vld [vmem:[#allocation10 + $0x264] ss:$8 sps:$4 sm:$0xff]  }
 0x29a   :  { %1249 = vmatprep.subr.bf16.mxu1 %v6546_v35  ;;  %v6568_v35 = vld [vmem:[#allocation10 + $0x260] ss:$8 sps:$4 sm:$0xff]  }
 0x29d   :  { %1250 = vmatpush1.bf16.msra.mxu1 %v6544_v41  ;;  %v6576_v41 = vld [vmem:[#allocation10 + $0x284] ss:$8 sps:$4 sm:$0xff]  }
 0x29e   :  { %1251 = vmatprep.subr.bf16.mxu1 %v6549_v42  ;;  %v6574_v42 = vld [vmem:[#allocation10 + $0x280] ss:$8 sps:$4 sm:$0xff]  }
 0x2a1   :  { %1252 = vmatpush1.bf16.msra.mxu1 %v6547_v51  ;;  %v6580_v51 = vld [vmem:[#allocation10 + $0x2a0] ss:$8 sps:$4 sm:$0xff]  }
 0x2a2   :  { %1467 = vmatprep.subr.bf16.mxu1 %v6552_v54  ;;  %v6583_v54 = vld [vmem:[#allocation10 + $0x2b0] ss:$8 sps:$4 sm:$0xff]  }
 0x2a4   :  { %5691 = vmatmul.mubr.msk.bf16.vlgmr.msra.gmra.mrb[0].mxu1 %vm5688_vm15, %v757_v10  ;;  %v6592_v10 = vld [vmem:[#allocation10 + $0x2e0] ss:$8 sps:$4 sm:$0xff]  }
 0x2a5   :  { %5693 = vmatprep.mubr.msk.bf16.mxu1 %vm5692_vm2, %v752_v13  ;;  %1468 = vmatpush1.bf16.msra.mxu1 %v6550_v4  ;;  %v6591_v4 = vld [vmem:[#allocation10 + $0x2d4] ss:$8 sps:$4 sm:$0xff]  }
 0x2a6   :  { %1469 = vmatprep.subr.bf16.mxu1 %v6555_v5  ;;  %v6589_v5 = vld [vmem:[#allocation10 + $0x2d0] ss:$8 sps:$4 sm:$0xff]   ;;  %v6597_v13 = vld [vmem:[#allocation10 + $0x2f4] ss:$8 sps:$4 sm:$0xff]  }
 0x2a9   :  { %1470 = vmatpush1.bf16.msra.mxu1 %v6553_v20  ;;  %v763_v20 = vrot.slane %v727_v50, 1  ;;  %v778_v50 = vsel %vm7884_vm4, %v772_v24, 0 }
 0x2aa   :  { %1471 = vmatprep.subr.bf16.mxu1 %v6558_v23  ;;  %v765_v23 = vrot.slane %v741_v18, 1  ;;  %v6642_v18 = vld [vmem:[#allocation13 + $0x1e4] ss:$8 sps:$4 sm:$0xff]  }
 0x2ac   :  { %5695 = vmatmul.mubr.msk.bf16.gmra.mrb[4].mxu1 %vm5692_vm2, %v744_v29  ;;  %v771_v60 = vor.u32 %v765_v23, %v738_v61  ;;  %v6643_v29 = vld [vmem:[#allocation13 + $0x1f0] ss:$8 sps:$4 sm:$0xff]   ;;  %v1528_v61 = vld [vmem:[#allocation11] sm:$0x3] }
 0x2ad   :  { %1472 = vmatpush1.bf16.msra.mxu1 %v6556_v7  ;;  %5729 = vmatprep.mubr.msk.bf16.mxu1 %vm5728_vm0, %v770_v8  ;;  %v764_v7 = vor.u32 %v763_v20, %v724_v36  ;;  %v6639_v36 = vld [vmem:[#allocation13 + $0x1d4] ss:$8 sps:$4 sm:$0xff]   ;;  %v1533_v8 = vrot.slane %v1528_v61, %v7921_v46 }
 0x2ae   :  { %1473 = vmatprep.subr.bf16.mxu1 %v6561_v28  ;;  %v777_v19 = vsel %vm7884_vm4, %v771_v60, 0  ;;  %1879 = vmatprep.subr.bf16.mxu0 %v6639_v36  ;;  %v6645_v28 = vld [vmem:[#allocation13 + $0x1f4] ss:$8 sps:$4 sm:$0xff]   ;;  %v6654_v36 = vld [vmem:[#allocation13 + $0x24] ss:$8 sps:$4 sm:$0xff]  }
 0x2af   :  { %v766_v27 = vsel %vm404_vm3, %v764_v7, %v765_v23  ;;  %1880 = vmatpush1.bf16.msra.mxu0 %v6637_v39  ;;  %v6651_v20 = vld [vmem:[#allocation13 + $0x14] ss:$8 sps:$4 sm:$0xff]  }
 0x2b0   :  { %1881 = vmatprep.subr.bf16.mxu0 %v6642_v18 }
 0x2b1   :  { %1474 = vmatpush1.bf16.msra.mxu1 %v6559_v2  ;;  %v1537_v2 = vrot.slane %v1528_v61, %v7918_v43  ;;  %v6655_v61 = vld [vmem:[#allocation13 + $0x30] ss:$8 sps:$4 sm:$0xff]  }
 0x2b2   :  { %1475 = vmatprep.subr.bf16.mxu1 %v6564_v62 }
 0x2b3   :  { %1882 = vmatpush1.bf16.msra.mxu0 %v6640_v26 }
 0x2b4   :  { %1883 = vmatprep.subr.bf16.mxu0 %v6645_v28 }
 0x2b5   :  { %1476 = vmatpush1.bf16.msra.mxu1 %v6562_v30 }
 0x2b6   :  { %1477 = vmatprep.subr.bf16.mxu1 %v6567_v32 }
 0x2b7   :  { %1884 = vmatpush1.bf16.msra.mxu0 %v6643_v29 }
 0x2b8   :  { %2066 = vmatprep.subr.bf16.mxu0 %v6648_v21  ;;  %v6652_v21 = vld [vmem:[#allocation13 + $0x20] ss:$8 sps:$4 sm:$0xff]  }
 0x2b9   :  { %1478 = vmatpush1.bf16.msra.mxu1 %v6565_v33 }
 0x2ba   :  { %1479 = vmatprep.subr.bf16.mxu1 %v6570_v34 }
 0x2bd   :  { %1480 = vmatpush1.bf16.msra.mxu1 %v6568_v35 }
 0x2be   :  { %1481 = vmatprep.subr.bf16.mxu1 %v6573_v38 }
 0x2c1   :  { %1482 = vmatpush1.bf16.msra.mxu1 %v6571_v40 }
 0x2c2   :  { %1483 = vmatprep.subr.bf16.mxu1 %v6576_v41 }
 0x2c5   :  { %1484 = vmatpush1.bf16.msra.mxu1 %v6574_v42 }
 0x2c6   :  { %1485 = vmatprep.subr.bf16.mxu1 %v6579_v45 }
 0x2c9   :  { %1486 = vmatpush1.bf16.msra.mxu1 %v6577_v47 }
 0x2ca   :  { %1487 = vmatprep.subr.bf16.mxu1 %v6582_v48 }
 0x2cd   :  { %1488 = vmatpush1.bf16.msra.mxu1 %v6580_v51 }
 0x2ce   :  { %1489 = vmatprep.subr.bf16.mxu1 %v6585_v52 }
 0x2d1   :  { %1490 = vmatpush1.bf16.msra.mxu1 %v6583_v54 }
 0x2d2   :  { %1491 = vmatprep.subr.bf16.mxu1 %v6588_v59 }
 0x2d5   :  { %1492 = vmatpush1.bf16.msra.mxu1 %v6586_v3 }
 0x2d6   :  { %1493 = vmatprep.subr.bf16.mxu1 %v6591_v4 }
 0x2d9   :  { %1494 = vmatpush1.bf16.msra.mxu1 %v6589_v5 }
 0x2da   :  { %1495 = vmatprep.subr.bf16.mxu1 %v6594_v6 }
 0x2dd   :  { %1496 = vmatpush1.bf16.msra.mxu1 %v6592_v10 }
 0x2de   :  { %1497 = vmatprep.subr.bf16.mxu1 %v6597_v13 }
 0x2e1   :  { %1498 = vmatpush1.bf16.msra.mxu1 %v6595_v22 }
 0x2e4   :  { %5731 = vmatmul.mubr.msk.bf16.vlgmr.msra.gmra.mrb[0].mxu1 %vm5728_vm0, %v766_v27 }
 0x2e5   :  { %5733 = vmatprep.mubr.msk.bf16.mxu1 %vm5732_vm6, %v778_v50  ;;  %v6649_v50 = vld [vmem:[#allocation13 + $0x10] ss:$8 sps:$4 sm:$0xff]  }
 0x2ec   :  { %5735 = vmatmul.mubr.msk.bf16.gmra.mrb[4].mxu1 %vm5732_vm6, %v777_v19 }
 0x3b7   :  { %v1501_v62 = vpop.f32.mrb[0].mxu1 }
 0x3b8   :  { %v1540_v30 = vadd.f32 %v1533_v8, %v1501_v62  ;;  %v1503_v32 = vpop.f32.mrb[1].mxu1  ;;  %v6663_v62 = vld [vmem:[#allocation13 + $0x54] ss:$8 sps:$4 sm:$0xff]  }
 0x3b9   :  { %v1541_v33 = vadd.f32 %v1537_v2, %v1503_v32  ;;  %v1505_v34 = vpop.f32.mrb[2].mxu1  ;;  %v6666_v32 = vld [vmem:[#allocation13 + $0x64] ss:$8 sps:$4 sm:$0xff]  }
 0x3ba   :  { %v1542_v35 = vadd.f32 %v1533_v8, %v1505_v34  ;;  %v1507_v38 = vpop.f32.mrb[3].mxu1  ;;  %v1548_v42 = vmax.f32 %v1540_v30, 0.0  ;;  %v6661_v30 = vld [vmem:[#allocation13 + $0x50] ss:$8 sps:$4 sm:$0xff]   ;;  %v6669_v34 = vld [vmem:[#allocation13 + $0x74] ss:$8 sps:$4 sm:$0xff]  }
 0x3bb   :  { %v1549_v40 = vmax.f32 %v1541_v33, 0.0  ;;  %v1543_v41 = vadd.f32 %v1537_v2, %v1507_v38  ;;  %v6664_v33 = vld [vmem:[#allocation13 + $0x60] ss:$8 sps:$4 sm:$0xff]   ;;  %v6672_v38 = vld [vmem:[#allocation13 + $0x84] ss:$8 sps:$4 sm:$0xff]  }
 0x3bc   :  { %v1550_v45 = vmax.f32 %v1542_v35, 0.0  ;;  %v8061_v59 = vadd.f32 %v1548_v42, %v7931_v57  ;;  %v6667_v35 = vld [vmem:[#allocation13 + $0x70] ss:$8 sps:$4 sm:$0xff]  }
 0x3bd   :  { %v1551_v47 = vmax.f32 %v1543_v41, 0.0  ;;  %v8055_v51 = vadd.f32 %v1549_v40, %v7927_v55  ;;  %v6670_v40 = vld [vmem:[#allocation13 + $0x80] ss:$8 sps:$4 sm:$0xff]   ;;  %v6675_v41 = vld [vmem:[#allocation13 + $0x94] ss:$8 sps:$4 sm:$0xff]  }
 0x3be   :  { %v8052_v48 = vadd.f32 %v1550_v45, %v7925_v53  ;;  %v6646_v53 = vld [vmem:[#allocation13] ss:$8 sps:$4 sm:$0xff]   ;;  %v6673_v42 = vld [vmem:[#allocation13 + $0x90] ss:$8 sps:$4 sm:$0xff]   ;;  %v6678_v45 = vld [vmem:[#allocation13 + $0xa4] ss:$8 sps:$4 sm:$0xff]  }
 0x3bf   :  { %v8058_v52 = vadd.f32 %v1551_v47, %v7929_v56  ;;  %v1511_v54 = vpop.f32.mrb[4].mxu1  ;;  %v6676_v47 = vld [vmem:[#allocation13 + $0xa0] ss:$8 sps:$4 sm:$0xff]  }
 0x3c0   :  { %v1544_v3 = vadd.f32 %v1533_v8, %v1511_v54  ;;  %v1513_v4 = vpop.f32.mrb[5].mxu1  ;;  %v8069_v55 = vpack.c.bf16 %v8052_v48, %v8061_v59  ;;  %v6681_v54 = vld [vmem:[#allocation13 + $0xb4] ss:$8 sps:$4 sm:$0xff]  }
 0x3c1   :  { %v1545_v5 = vadd.f32 %v1537_v2, %v1513_v4  ;;  %v1515_v6 = vpop.f32.mrb[6].mxu1  ;;  %v8065_v10 = vpack.c.bf16 %v8058_v52, %v8055_v51  ;;  %v6684_v4 = vld [vmem:[#allocation13 + $0xc4] ss:$8 sps:$4 sm:$0xff]  }
 0x3c2   :  { %v1546_v13 = vadd.f32 %v1533_v8, %v1515_v6  ;;  %v1517_v56 = vpop.f32.mrb[7].mxu1  ;;  %v1552_v24 = vmax.f32 %v1544_v3, 0.0  ;;  %v6660_v8 = vld [vmem:[#allocation13 + $0x44] ss:$8 sps:$4 sm:$0xff]   ;;  %v6679_v3 = vld [vmem:[#allocation13 + $0xb0] ss:$8 sps:$4 sm:$0xff]  }
 0x3c3   :  { %v1553_v22 = vmax.f32 %v1545_v5, 0.0  ;;  %v1547_v23 = vadd.f32 %v1537_v2, %v1517_v56  ;;  %v1576_v57 = vshrl.u32 %v8065_v10, 16  ;;  %1885 = vmatprep.mubr.bf16.mxu0 %v8065_v10  ;;  %v1579_v39 = vshll.u32 %v8065_v10, 16  ;;  %v6658_v2 = vld [vmem:[#allocation13 + $0x40] ss:$8 sps:$4 sm:$0xff]  }
 0x3c4   :  { %v1554_v7 = vmax.f32 %v1546_v13, 0.0  ;;  %1886 = vmatmul.mubr.bf16.vlgmr.msra.gmra.mrb[8].mxu0 %v8069_v55  ;;  %v8089_v28 = vadd.f32 %v1552_v24, %v7955_v17  ;;  %v6682_v5 = vld [vmem:[#allocation13 + $0xc0] ss:$8 sps:$4 sm:$0xff]   ;;  %v6687_v6 = vld [vmem:[#allocation13 + $0xd4] ss:$8 sps:$4 sm:$0xff]   ;;  %v1569_v56 = vshrl.u32 %v8069_v55, 16 }
 0x3c5   :  { %v1555_v27 = vmax.f32 %v1547_v23, 0.0  ;;  %2067 = vmatpush1.bf16.msra.mxu0 %v6646_v53  ;;  %v8076_v60 = vrot.slane %v1576_v57, 7  ;;  %v8083_v18 = vadd.f32 %v1553_v22, %v7951_v16  ;;  %v6685_v53 = vld [vmem:[#allocation13 + $0xd0] ss:$8 sps:$4 sm:$0xff]   ;;  %v6690_v13 = vld [vmem:[#allocation13 + $0xe4] ss:$8 sps:$4 sm:$0xff]  }
 0x3c6   :  { %v8079_v19 = vadd.f32 %v1554_v7, %v7949_v9  ;;  %2068 = vmatprep.subr.bf16.mxu0 %v6651_v20  ;;  %v6688_v22 = vld [vmem:[#allocation13 + $0xe0] ss:$8 sps:$4 sm:$0xff]   ;;  %v6693_v23 = vld [vmem:[#allocation13 + $0xf4] ss:$8 sps:$4 sm:$0xff]   ;;  %v1571_v24 = vrot.slane %v1569_v56, 7  ;;  %v1612_v37 = vrot.slane %v1579_v39, 1 }
 0x3c7   :  { %v8086_v26 = vadd.f32 %v1555_v27, %v7953_v15  ;;  %v1581_v29 = vor.u32 %v1579_v39, %v8076_v60  ;;  %v6657_v15 = vld [vmem:[#allocation13 + $0x34] ss:$8 sps:$4 sm:$0xff]   ;;  %v1572_v27 = vshll.u32 %v8069_v55, 16  ;;  %v6706_v10 = vld [vmem:[#allocation13 + $0x240] ss:$8 sps:$4 sm:$0xff]  }
 0x3c8   :  { %v8100_v16 = vpack.c.bf16 %v8079_v19, %v8089_v28 }
 0x3c9   :  { %2069 = vmatpush1.bf16.msra.mxu0 %v6649_v50  ;;  %v8096_v9 = vpack.c.bf16 %v8086_v26, %v8083_v18  ;;  %v1603_v17 = vsel %vm7831_vm8, 0, %v1581_v29  ;;  %v6691_v50 = vld [vmem:[#allocation13 + $0xf0] ss:$8 sps:$4 sm:$0xff]   ;;  %v6696_v29 = vld [vmem:[#allocation13 + $0x204] ss:$8 sps:$4 sm:$0xff]  }
 0x3ca   :  { %2070 = vmatprep.subr.bf16.mxu0 %v6654_v36 }
 0x3cb   :  { %1895 = vmatprep.mubr.bf16.mxu0 %v8096_v9  ;;  %v1591_v20 = vshrl.u32 %v8096_v9, 16  ;;  %v1594_v36 = vshll.u32 %v8096_v9, 16 }
 0x3cc   :  { %1896 = vmatmul.mubr.bf16.gmra.mrb[12].mxu0 %v8100_v16 }
 0x3cd   :  { %2071 = vmatpush1.bf16.msra.mxu0 %v6652_v21  ;;  %5801 = vmatprep.mubr.msk.bf16.mxu0 %vm5688_vm15, %v1603_v17  ;;  %v1593_v7 = vrot.slane %v1591_v20, 7  ;;  %v1583_v21 = vshrl.u32 %v8100_v16, 16 }
 0x3ce   :  { %2072 = vmatprep.subr.bf16.mxu0 %v6657_v15  ;;  %v1574_v15 = vor.u32 %v1572_v27, %v1571_v24 }
 0x3cf   :  { %v1596_v17 = vor.u32 %v1594_v36, %v1593_v7  ;;  %v6727_v7 = vld [vmem:[#allocation13 + $0x2b0] ss:$8 sps:$4 sm:$0xff]  }
 0x3d1   :  { %2073 = vmatpush1.bf16.msra.mxu0 %v6655_v61  ;;  %v6694_v61 = vld [vmem:[#allocation13 + $0x200] ss:$8 sps:$4 sm:$0xff]  }
 0x3d2   :  { %2074 = vmatprep.subr.bf16.mxu0 %v6660_v8  ;;  %v6699_v8 = vld [vmem:[#allocation13 + $0x214] ss:$8 sps:$4 sm:$0xff]  }
 0x3d5   :  { %2075 = vmatpush1.bf16.msra.mxu0 %v6658_v2  ;;  %v1602_v2 = vsel %vm7831_vm8, 0, %v1574_v15  ;;  %v6733_v15 = vld [vmem:[#allocation13 + $0x2d0] ss:$8 sps:$4 sm:$0xff]  }
 0x3d6   :  { %2076 = vmatprep.subr.bf16.mxu0 %v6663_v62  ;;  %v1585_v62 = vrot.slane %v1583_v21, 7 }
 0x3d9   :  { %2077 = vmatpush1.bf16.msra.mxu0 %v6661_v30  ;;  %v1597_v30 = vsel %vm357_vm5, %v8076_v60, %v1596_v17  ;;  %v6700_v60 = vld [vmem:[#allocation13 + $0x220] ss:$8 sps:$4 sm:$0xff]   ;;  %v6738_v17 = vld [vmem:[#allocation13 + $0x2e4] ss:$8 sps:$4 sm:$0xff]  }
 0x3da   :  { %2078 = vmatprep.subr.bf16.mxu0 %v6666_v32  ;;  %v1586_v32 = vshll.u32 %v8100_v16, 16 }
 0x3dc   :  { %v1588_v44 = vor.u32 %v1586_v32, %v1585_v62  ;;  %v6739_v62 = vld [vmem:[#allocation13 + $0x2f0] ss:$8 sps:$4 sm:$0xff]  }
 0x3dd   :  { %2079 = vmatpush1.bf16.msra.mxu0 %v6664_v33  ;;  %v6697_v33 = vld [vmem:[#allocation13 + $0x210] ss:$8 sps:$4 sm:$0xff]  }
 0x3de   :  { %2080 = vmatprep.subr.bf16.mxu0 %v6669_v34  ;;  %v6702_v34 = vld [vmem:[#allocation13 + $0x224] ss:$8 sps:$4 sm:$0xff]  }
 0x3e1   :  { %2081 = vmatpush1.bf16.msra.mxu0 %v6667_v35  ;;  %v8137_v35 = vrot.slane %v1594_v36, 1  ;;  %v6730_v36 = vld [vmem:[#allocation13 + $0x2c0] ss:$8 sps:$4 sm:$0xff]  }
 0x3e2   :  { %2082 = vmatprep.subr.bf16.mxu0 %v6672_v38  ;;  %v1613_v38 = vor.u32 %v1612_v37, %v1576_v57  ;;  %v6711_v57 = vld [vmem:[#allocation13 + $0x254] ss:$8 sps:$4 sm:$0xff]  }
 0x3e4   :  { %v1615_v39 = vsel %vm404_vm3, %v1613_v38, %v8137_v35 }
 0x3e5   :  { %2083 = vmatpush1.bf16.msra.mxu0 %v6670_v40  ;;  %v6705_v40 = vld [vmem:[#allocation13 + $0x234] ss:$8 sps:$4 sm:$0xff]  }
 0x3e6   :  { %2084 = vmatprep.subr.bf16.mxu0 %v6675_v41  ;;  %v1589_v41 = vsel %vm357_vm5, %v1571_v24, %v1588_v44  ;;  %v6729_v24 = vld [vmem:[#allocation13 + $0x2b4] ss:$8 sps:$4 sm:$0xff]   ;;  %vm9070_vm5 = vcmask 1040384  }
 0x3e7   :  { %vm9072_vm8 = vmmov %vm9070_vm5 }
 0x3e8   :  { %vm9073_vm10 = vmmov %vm9070_vm5 }
 0x3e9   :  { %2085 = vmatpush1.bf16.msra.mxu0 %v6673_v42  ;;  %v6703_v42 = vld [vmem:[#allocation13 + $0x230] ss:$8 sps:$4 sm:$0xff]   ;;  %vm9074_vm14 = vmmov %vm9070_vm5 }
 0x3ea   :  { %2086 = vmatprep.subr.bf16.mxu0 %v6678_v45  ;;  %v6708_v45 = vld [vmem:[#allocation13 + $0x244] ss:$8 sps:$4 sm:$0xff]  }
 0x3ed   :  { %2087 = vmatpush1.bf16.msra.mxu0 %v6676_v47  ;;  %v6709_v47 = vld [vmem:[#allocation13 + $0x250] ss:$8 sps:$4 sm:$0xff]  }
 0x3ee   :  { %2088 = vmatprep.subr.bf16.mxu0 %v6681_v54  ;;  %v6712_v54 = vld [vmem:[#allocation13 + $0x260] ss:$8 sps:$4 sm:$0xff]  }
 0x3f1   :  { %2089 = vmatpush1.bf16.msra.mxu0 %v6679_v3  ;;  %v6717_v3 = vld [vmem:[#allocation13 + $0x274] ss:$8 sps:$4 sm:$0xff]  }
 0x3f2   :  { %2090 = vmatprep.subr.bf16.mxu0 %v6684_v4  ;;  %v6715_v4 = vld [vmem:[#allocation13 + $0x270] ss:$8 sps:$4 sm:$0xff]  }
 0x3f5   :  { %2091 = vmatpush1.bf16.msra.mxu0 %v6682_v5  ;;  %v6720_v5 = vld [vmem:[#allocation13 + $0x284] ss:$8 sps:$4 sm:$0xff]  }
 0x3f6   :  { %2092 = vmatprep.subr.bf16.mxu0 %v6687_v6  ;;  %v6718_v6 = vld [vmem:[#allocation13 + $0x280] ss:$8 sps:$4 sm:$0xff]  }
 0x3f9   :  { %2093 = vmatpush1.bf16.msra.mxu0 %v6685_v53  ;;  %v6723_v53 = vld [vmem:[#allocation13 + $0x294] ss:$8 sps:$4 sm:$0xff]  }
 0x3fa   :  { %2094 = vmatprep.subr.bf16.mxu0 %v6690_v13  ;;  %v6721_v13 = vld [vmem:[#allocation13 + $0x290] ss:$8 sps:$4 sm:$0xff]  }
 0x3fd   :  { %2095 = vmatpush1.bf16.msra.mxu0 %v6688_v22  ;;  %v6726_v22 = vld [vmem:[#allocation13 + $0x2a4] ss:$8 sps:$4 sm:$0xff]  }
 0x3fe   :  { %2096 = vmatprep.subr.bf16.mxu0 %v6693_v23  ;;  %v6724_v23 = vld [vmem:[#allocation13 + $0x2a0] ss:$8 sps:$4 sm:$0xff]  }
 0x401   :  { %2097 = vmatpush1.bf16.msra.mxu0 %v6691_v50  ;;  %v6732_v50 = vld [vmem:[#allocation13 + $0x2c4] ss:$8 sps:$4 sm:$0xff]  }
 0x402   :  { %2312 = vmatprep.subr.bf16.mxu0 %v6696_v29  ;;  %v6735_v29 = vld [vmem:[#allocation13 + $0x2d4] ss:$8 sps:$4 sm:$0xff]  }
 0x404   :  { %5803 = vmatmul.mubr.msk.bf16.vlgmr.msra.gmra.mrb[8].mxu0 %vm5688_vm15, %v1602_v2  ;;  %v1608_v2 = vrot.slane %v1572_v27, 1  ;;  %vm2552_vm15 = vcmask 7168  }
 0x405   :  { %5805 = vmatprep.mubr.msk.bf16.mxu0 %vm5692_vm2, %v1597_v30  ;;  %2313 = vmatpush1.bf16.msra.mxu0 %v6694_v61  ;;  %v6736_v61 = vld [vmem:[#allocation13 + $0x2e0] ss:$8 sps:$4 sm:$0xff]   ;;  %v1610_v30 = vrot.slane %v1586_v32, 1 }
 0x406   :  { %2314 = vmatprep.subr.bf16.mxu0 %v6699_v8  ;;  %v6741_v8 = vld [vmem:[#allocation13 + $0x2f4] ss:$8 sps:$4 sm:$0xff]   ;;  %v1609_v37 = vor.u32 %v1608_v2, %v1569_v56  ;;  %v2378_v56 = vrot.slane %v2373_v11, %v7921_v46 }
 0x407   :  { %v1616_v9 = vor.u32 %v1610_v30, %v1583_v21 }
 0x409   :  { %2315 = vmatpush1.bf16.msra.mxu0 %v6697_v33  ;;  %v1617_v33 = vor.u32 %v8137_v35, %v1591_v20  ;;  %v1622_v55 = vsel %vm7884_vm4, %v1616_v9, 0  ;;  %v2382_v20 = vrot.slane %v2373_v11, %v7918_v43 }
 0x40a   :  { %2316 = vmatprep.subr.bf16.mxu0 %v6702_v34  ;;  %v1611_v34 = vsel %vm404_vm3, %v1609_v37, %v1610_v30  ;;  %vm9075_vm3 = vmmov %vm9070_vm5 }
 0x40b   :  { %v1623_v27 = vsel %vm7884_vm4, %v1617_v33, 0  ;;  %vm9076_vm4 = vmmov %vm9075_vm3 }
 0x40c   :  { %5807 = vmatmul.mubr.msk.bf16.gmra.mrb[12].mxu0 %vm5692_vm2, %v1589_v41  ;;  %vm9077_vm9 = vmmov %vm9075_vm3 }
 0x40d   :  { %2317 = vmatpush1.bf16.msra.mxu0 %v6700_v60  ;;  %5841 = vmatprep.mubr.msk.bf16.mxu0 %vm5728_vm0, %v1615_v39  ;;  %vm9079_vm12 = vmmov %vm9075_vm3 }
 0x40e   :  { %2318 = vmatprep.subr.bf16.mxu0 %v6705_v40  ;;  %vm9080_vm2 = vmmov %vm9075_vm3 }
 0x411   :  { %2319 = vmatpush1.bf16.msra.mxu0 %v6703_v42 }
 0x412   :  { %2320 = vmatprep.subr.bf16.mxu0 %v6708_v45 }
 0x415   :  { %2321 = vmatpush1.bf16.msra.mxu0 %v6706_v10 }
 0x416   :  { %2322 = vmatprep.subr.bf16.mxu0 %v6711_v57 }
 0x419   :  { %2323 = vmatpush1.bf16.msra.mxu0 %v6709_v47 }
 0x41a   :  { %2324 = vmatprep.subr.bf16.mxu0 %v6714_v63 }
 0x41d   :  { %2325 = vmatpush1.bf16.msra.mxu0 %v6712_v54 }
 0x41e   :  { %2326 = vmatprep.subr.bf16.mxu0 %v6717_v3 }
 0x421   :  { %2327 = vmatpush1.bf16.msra.mxu0 %v6715_v4 }
 0x422   :  { %2328 = vmatprep.subr.bf16.mxu0 %v6720_v5 }
 0x425   :  { %2329 = vmatpush1.bf16.msra.mxu0 %v6718_v6 }
 0x426   :  { %2330 = vmatprep.subr.bf16.mxu0 %v6723_v53 }
 0x429   :  { %2331 = vmatpush1.bf16.msra.mxu0 %v6721_v13 }
 0x42a   :  { %2332 = vmatprep.subr.bf16.mxu0 %v6726_v22 }
 0x42d   :  { %2333 = vmatpush1.bf16.msra.mxu0 %v6724_v23 }
 0x42e   :  { %2334 = vmatprep.subr.bf16.mxu0 %v6729_v24 }
 0x431   :  { %2335 = vmatpush1.bf16.msra.mxu0 %v6727_v7 }
 0x432   :  { %2336 = vmatprep.subr.bf16.mxu0 %v6732_v50 }
 0x435   :  { %2337 = vmatpush1.bf16.msra.mxu0 %v6730_v36 }
 0x436   :  { %2338 = vmatprep.subr.bf16.mxu0 %v6735_v29 }
 0x439   :  { %2339 = vmatpush1.bf16.msra.mxu0 %v6733_v15 }
 0x43a   :  { %2340 = vmatprep.subr.bf16.mxu0 %v6738_v17 }
 0x43d   :  { %2341 = vmatpush1.bf16.msra.mxu0 %v6736_v61 }
 0x43e   :  { %2342 = vmatprep.subr.bf16.mxu0 %v6741_v8 }
 0x441   :  { %2343 = vmatpush1.bf16.msra.mxu0 %v6739_v62 }
 0x444   :  { %5843 = vmatmul.mubr.msk.bf16.vlgmr.msra.gmra.mrb[8].mxu0 %vm5728_vm0, %v1611_v34  ;;  %vm2450_vm0 = vcmask 1046528  }
 0x445   :  { %5845 = vmatprep.mubr.msk.bf16.mxu0 %vm5732_vm6, %v1623_v27 }
 0x44c   :  { %5847 = vmatmul.mubr.msk.bf16.gmra.mrb[12].mxu0 %vm5732_vm6, %v1622_v55  ;;  %vm9071_vm6 = vmmov %vm9070_vm5 }
 0x517   :  { %v2346_v32 = vpop.f32.mrb[8].mxu0 }
 0x518   :  { %v2385_v44 = vadd.f32 %v2378_v56, %v2346_v32  ;;  %v2348_v35 = vpop.f32.mrb[9].mxu0 }
 0x519   :  { %v2386_v60 = vadd.f32 %v2382_v20, %v2348_v35  ;;  %v2350_v38 = vpop.f32.mrb[10].mxu0 }
 0x51a   :  { %v2393_v40 = vmax.f32 %v2385_v44, 0.0  ;;  %v2387_v16 = vadd.f32 %v2378_v56, %v2350_v38  ;;  %v2352_v21 = vpop.f32.mrb[11].mxu0 }
 0x51b   :  { %v2394_v41 = vmax.f32 %v2386_v60, 0.0  ;;  %v2388_v12 = vadd.f32 %v2382_v20, %v2352_v21 }
 0x51c   :  { %v2401_v39 = vadd.f32 %v2393_v40, %v8061_v59  ;;  %v2395_v25 = vmax.f32 %v2387_v16, 0.0 }
 0x51d   :  { %v2402_v42 = vadd.f32 %v2394_v41, %v8055_v51  ;;  %v2396_v45 = vmax.f32 %v2388_v12, 0.0 }
 0x51e   :  { %v2418_v10 = vrot.slane %v2401_v39, 7  ;;  %v8180_v57 = vadd.f32 %v2395_v25, %v8052_v48  ;;  %v2451_v47 = vrot.slane %v2401_v39, 1 }
 0x51f   :  { %v2419_v63 = vrot.slane %v2402_v42, 7  ;;  %v2454_v54 = vrot.slane %v2402_v42, 1  ;;  %v8183_v3 = vadd.f32 %v2396_v45, %v8058_v52  ;;  %v2356_v4 = vpop.f32.mrb[12].mxu0 }
 0x520   :  { %v2440_v5 = vsel %vm9070_vm5, -1e+30, %v2418_v10  ;;  %v2420_v59 = vrot.slane %v8180_v57, 7  ;;  %v2452_v6 = vrot.slane %v8180_v57, 1  ;;  %v2389_v51 = vadd.f32 %v2378_v56, %v2356_v4  ;;  %v2358_v53 = vpop.f32.mrb[13].mxu0 }
 0x521   :  { %v2442_v48 = vsel %vm7797_vm1, -1e+30, %v2440_v5  ;;  %v2441_v13 = vsel %vm9071_vm6, -1e+30, %v2419_v63  ;;  %v2422_v22 = vrot.slane %v8183_v3, 7  ;;  %v2455_v23 = vrot.slane %v8183_v3, 1 }
 0x522   :  { %v2483_v52 = vmax.f32 %v2401_v39, %v2442_v48  ;;  %v2443_v24 = vsel %vm7797_vm1, -1e+30, %v2441_v13  ;;  %v2421_v7 = vsel %vm9072_vm8, %v2418_v10, %v2420_v59  ;;  %v2397_v50 = vmax.f32 %v2389_v51, 0.0  ;;  %v2360_v36 = vpop.f32.mrb[14].mxu0  ;;  %vm9085_vm8 = vmmov %vm9080_vm2 }
 0x523   :  { %v2484_v29 = vmax.f32 %v2402_v42, %v2443_v24  ;;  %v2485_v15 = vmax.f32 %v8180_v57, %v2421_v7  ;;  %v2423_v17 = vsel %vm9073_vm10, %v2419_v63, %v2422_v22  ;;  %v2390_v61 = vadd.f32 %v2382_v20, %v2358_v53  ;;  %v2362_v8 = vpop.f32.mrb[15].mxu0 }
 0x524   :  { %v2486_v2 = vmax.f32 %v8183_v3, %v2423_v17  ;;  %v2405_v62 = vadd.f32 %v2397_v50, %v8089_v28  ;;  %v2391_v30 = vadd.f32 %v2378_v56, %v2360_v36  ;;  %v2392_v33 = vadd.f32 %v2382_v20, %v2362_v8 }
 0x525   :  { %v2398_v37 = vmax.f32 %v2390_v61, 0.0  ;;  %v2453_v34 = vsel %vm2450_vm0, %v2451_v47, %v2452_v6  ;;  %v2456_v27 = vsel %vm2450_vm0, %v2454_v54, %v2455_v23  ;;  %v7439_v8 = vmov 0.0  }
 0x526   :  { %v2424_v9 = vrot.slane %v2405_v62, 7  ;;  %v2457_v55 = vrot.slane %v2405_v62, 1  ;;  %v2399_v11 = vmax.f32 %v2391_v30, 0.0  ;;  %v2400_v32 = vmax.f32 %v2392_v33, 0.0  ;;  %2708 = vmatprep.mubr.f32.mxu1 %v7439_v8  ;;  %3222 = vmatprep.mubr.f32.mxu0 %v7439_v8  ;;  %v2721_v30 = vld [vmem:[%s9078_s27] sm:$0xff] }
 0x527   :  { %v2406_v44 = vadd.f32 %v2398_v37, %v8083_v18  ;;  %v8203_v35 = vmax.f32 %v2483_v52, %v2453_v34  ;;  %v8205_v60 = vmax.f32 %v2484_v29, %v2456_v27  ;;  %v2722_v37 = vld [vmem:[%s9078_s27 + $0x8] sm:$0xff]  ;;  %v2723_v34 = vld [vmem:[%s9078_s27 + $0x10] sm:$0xff]  ;;  %v2729_v27 = vrot.slane %v2721_v30, 7 }
 0x528   :  { %v2425_v38 = vsel %vm9074_vm14, %v2420_v59, %v2424_v9  ;;  %v2407_v28 = vadd.f32 %v2399_v11, %v8079_v19  ;;  %v2408_v56 = vadd.f32 %v2400_v32, %v8086_v26  ;;  %v2458_v20 = vsel %vm2450_vm0, %v2452_v6, %v2457_v55 }
 0x529   :  { %v2446_v40 = vsel %vm7823_vm7, -1e+30, %v2425_v38  ;;  %v2426_v16 = vrot.slane %v2406_v44, 7  ;;  %v2459_v21 = vrot.slane %v2406_v44, 1  ;;  %v6394_v18 = vpack.i.bf16 %v8205_v60, %v8203_v35 }
 0x52a   :  { %v2487_v41 = vmax.f32 %v2405_v62, %v2446_v40  ;;  %v2428_v12 = vrot.slane %v2407_v28, 7  ;;  %v2461_v39 = vrot.slane %v2407_v28, 1  ;;  %v2430_v25 = vrot.slane %v2408_v56, 7 }
 0x52b   :  { %v2427_v42 = vsel %vm9075_vm3, %v2422_v22, %v2426_v16  ;;  %v2463_v45 = vrot.slane %v2408_v56, 1  ;;  %6395 = vrot.lane.b32.xlu0 %v6394_v18, %s7437_s22  ;;  %v2477_v19 = vsel %vm7853_vm11, -1e+30, %v2458_v20  ;;  %v2460_v26 = vsel %vm2450_vm0, %v2455_v23, %v2459_v21 }
 0x52c   :  { %v2447_v10 = vsel %vm7823_vm7, -1e+30, %v2427_v42  ;;  %v2429_v57 = vsel %vm9076_vm4, %v2424_v9, %v2428_v12  ;;  %v2473_v47 = vsel %vm2450_vm0, %v2461_v39, -1e+30  ;;  %v2431_v63 = vsel %vm9077_vm9, %v2426_v16, %v2430_v25 }
 0x52d   :  { %v2488_v54 = vmax.f32 %v2406_v44, %v2447_v10  ;;  %v2489_v3 = vmax.f32 %v2407_v28, %v2429_v57  ;;  %v2474_v4 = vsel %vm2450_vm0, %v2463_v45, -1e+30  ;;  %v2490_v5 = vmax.f32 %v2408_v56, %v2431_v63  ;;  %v8286_v56 = vld [vmem:[%s9078_s27 + $0x18] sm:$0xff] }
 0x52e   :  { %v8226_v59 = vmax.f32 %v2485_v15, %v2477_v19  ;;  %v2478_v6 = vsel %vm7853_vm11, -1e+30, %v2460_v26  ;;  %v2462_v51 = vsel %vm2450_vm0, %v2457_v55, %v2461_v39  ;;  %v2464_v53 = vsel %vm2450_vm0, %v2459_v21, %v2463_v45 }
 0x52f   :  { %v8232_v48 = vmax.f32 %v2486_v2, %v2478_v6  ;;  %v8234_v13 = vmax.f32 %v2487_v41, %v2462_v51  ;;  %v8236_v22 = vmax.f32 %v2488_v54, %v2464_v53  ;;  %v2481_v23 = vsel %vm7863_vm13, -1e+30, %v2473_v47  ;;  %v2636_v47 = vld [vmem:[#allocation5] sm:$0xff] }
 0x530   :  { %v6399_v52 = vpack.i.bf16 %v8226_v59, %v8203_v35  ;;  %v2482_v24 = vsel %vm7863_vm13, -1e+30, %v2474_v4  ;;  %v8244_v7 = vmax.f32 %v2489_v3, %v2481_v23  ;;  %v8266_v62 = vand.u32 127, %v290_v1 }
 0x531   :  { %v6404_v50 = vpack.i.bf16 %v8232_v48, %v8226_v59  ;;  %v8248_v36 = vmax.f32 %v2490_v5, %v2482_v24  ;;  %v6409_v29 = vpack.i.bf16 %v8232_v48, %v8205_v60  ;;  %v6414_v15 = vpack.i.bf16 %v8236_v22, %v8234_v13 }
 0x532   :  { %6400 = vrot.lane.b32.xlu1 %v6399_v52, %s7438_s9  ;;  %v6429_v2 = vpack.i.bf16 %v8244_v7, %v8234_v13  ;;  %v8272_v33 = vadd.s32 128, %v8266_v62  ;;  %v2730_v9 = vrot.slane %v2722_v37, 7  ;;  %v2506_v1 = vand.u32 31, %v8266_v62 }
 0x533   :  { %6405 = vrot.lane.b32.xlu0 %v6404_v50, %s7437_s22  ;;  %v6419_v17 = vpack.i.bf16 %v8248_v36, %v8244_v7  ;;  %v6424_v61 = vpack.i.bf16 %v8248_v36, %v8236_v22  ;;  %v2746_v11 = vrot.slane %v2722_v37, 1  ;;  %v2748_v32 = vrot.slane %v2723_v34, 1 }
 0x534   :  { %v2513_v55 = vand.u32 31, %v8272_v33  ;;  %v2732_v44 = vrot.slane %v2723_v34, 7  ;;  %v2740_v28 = vsel %vm9079_vm12, -1e+30, %v2729_v27  ;;  %v2731_v16 = vsel %vm9080_vm2, %v2729_v27, %v2730_v9 }
 0x535   :  { %vm8289_vm5 = vcmp.eq.s32.totalorder %v2506_v1, 0  ;;  %v2749_v41 = vsel %vm2450_vm0, %v2746_v11, %v2748_v32  ;;  %v2741_v12 = vsel %vm7797_vm1, -1e+30, %v2740_v28  ;;  %v2745_v39 = vrot.slane %v2721_v30, 1 }
 0x536   :  { %6410 = vrot.lane.b32.xlu1 %v6409_v29, %s7438_s9  ;;  %vm8293_vm6 = vcmp.eq.s32.totalorder %v2513_v55, 0  ;;  %v2733_v25 = vsel %vm9085_vm8, %v2730_v9, %v2732_v44  ;;  %v2750_v42 = vrot.slane %v8286_v56, 1  ;;  %v2762_v26 = vmax.f32 %v2722_v37, %v2731_v16 }
 0x537   :  { %6415 = vrot.lane.b32.xlu0 %v6414_v15, %s7437_s22  ;;  %v2734_v10 = vrot.slane %v8286_v56, 7  ;;  %v2758_v57 = vsel %vm7853_vm11, -1e+30, %v2749_v41  ;;  %vm8307_vm10 = vcmp.eq.s32.totalorder %v2506_v1, 31  ;;  %v8311_v14 = vmax.f32 %v2721_v30, %v2741_v12 }
 0x538   :  { %v2743_v63 = vsel %vm7823_vm7, -1e+30, %v2733_v25  ;;  %v8320_v5 = vsel %vm2450_vm0, %v2745_v39, %v2746_v11  ;;  %v8323_v49 = vsel %vm2450_vm0, %v2750_v42, -1e+30  ;;  %vm8325_vm1 = vcmp.eq.s32.totalorder %v2513_v55, 31  ;;  %vm9090_vm7 = vmmov %vm9080_vm2 }
 0x539   :  { %vm2595_vm11 = vcmask 1039360   ;;  %v8329_v31 = vmax.f32 %v2762_v26, %v2758_v57  ;;  %v8332_v53 = vsel %vm9090_vm7, %v2732_v44, %v2734_v10  ;;  %v8335_v24 = vsel %vm2450_vm0, %v2748_v32, %v2750_v42 }
 0x53a   :  { %6420 = vrot.lane.b32.xlu1 %v6419_v17, %s7437_s22  ;;  %v8337_v50 = vmax.f32 %v2723_v34, %v2743_v63  ;;  %v2765_v17 = vmax.f32 %v8311_v14, %v8320_v5  ;;  %vm9091_vm0 = vcmask 261120   ;;  %v2637_v14 = vld [vmem:[#allocation5 + $0x8] sm:$0xff]  ;;  %v6744_v5 = vld [vmem:[#allocation16 + $0x4] ss:$8 sps:$4 sm:$0xff]   ;;  %vm3151_vm4 = vcmask 130048  }
 0x53b   :  { %6425 = vrot.lane.b32.xlu0 %v6424_v61, %s7438_s9  ;;  %v2760_v61 = vsel %vm7863_vm13, -1e+30, %v8323_v49  ;;  %vm9092_vm14 = vmmov %vm9091_vm0  ;;  %v6747_v49 = vld [vmem:[#allocation16 + $0x14] ss:$8 sps:$4 sm:$0xff]   ;;  %vm4166_vm2 = vcmask 1041408  }
 0x53c   :  { %v2767_v51 = vmax.f32 %v8337_v50, %v8335_v24  ;;  %vm9093_vm3 = vmmov %vm9091_vm0  ;;  %v6750_v24 = vld [vmem:[#allocation16 + $0x24] ss:$8 sps:$4 sm:$0xff]   ;;  %v6748_v50 = vld [vmem:[#allocation16 + $0x20] ss:$8 sps:$4 sm:$0xff]  }
 0x53d   :  { %vm9094_vm13 = vmmov %vm9091_vm0 }
 0x53e   :  { %6430 = vrot.lane.b32.xlu1 %v6429_v2, %s7438_s9  ;;  %vm9100_vm8 = vmmov %vm9091_vm0 }
 0x53f   :  { %vm9104_vm7 = vmmov %vm9091_vm0 }
 0x59d   :  { %v6396_v38 = vpop.permute.xlu0 %6395 }
 0x59e   :  { %v6398_v20 = vunpack.i.h.bf16 %v6396_v38  ;;  %v6397_v40 = vunpack.i.l.bf16 %v6396_v38 }
 0x5a0   :  { %v2553_v45 = vsel %vm2552_vm15, %v6397_v40, %v6398_v20  ;;  %v2565_v19 = vsel %vm2552_vm15, -1e+30, %v6397_v40 }
 0x5a1   :  { %v2569_v54 = vsel %vm8289_vm5, -1e+30, %v2565_v19  ;;  %v2570_v3 = vsel %vm8293_vm6, -1e+30, %v2553_v45 }
 0x5a2   :  { %v2620_v29 = vmax.f32 %v8203_v35, %v2569_v54  ;;  %v2621_v15 = vmax.f32 %v8205_v60, %v2570_v3 }
 0x5a4   :  { %v6401_v4 = vpop.permute.xlu1 %6400 }
 0x5a5   :  { %v6406_v6 = vpop.permute.xlu0 %6405  ;;  %v6403_v2 = vunpack.i.h.bf16 %v6401_v4  ;;  %v6402_v30 = vunpack.i.l.bf16 %v6401_v4 }
 0x5a6   :  { %v6408_v23 = vunpack.i.h.bf16 %v6406_v6  ;;  %v6407_v52 = vunpack.i.l.bf16 %v6406_v6 }
 0x5a8   :  { %v2554_v37 = vsel %vm2552_vm15, %v6407_v52, %v6408_v23  ;;  %v2566_v27 = vsel %vm2552_vm15, -1e+30, %v6407_v52  ;;  %v6411_v9 = vpop.permute.xlu1 %6410  ;;  %v2764_v23 = vmax.f32 %v8286_v56, %v8332_v53 }
 0x5a9   :  { %v2571_v34 = vsel %vm8289_vm5, -1e+30, %v2566_v27  ;;  %v2572_v35 = vsel %vm8293_vm6, -1e+30, %v2554_v37  ;;  %v6413_v60 = vunpack.i.h.bf16 %v6411_v9  ;;  %v6412_v1 = vunpack.i.l.bf16 %v6411_v9  ;;  %v6416_v55 = vpop.permute.xlu0 %6415 }
 0x5aa   :  { %v2622_v11 = vmax.f32 %v8226_v59, %v2571_v34  ;;  %v2623_v32 = vmax.f32 %v8232_v48, %v2572_v35  ;;  %v6418_v44 = vunpack.i.h.bf16 %v6416_v55  ;;  %v6417_v38 = vunpack.i.l.bf16 %v6416_v55 }
 0x5ab   :  { %v2597_v28 = vsel %vm2595_vm11, %v6403_v2, %v6413_v60  ;;  %v2609_v20 = vsel %vm2595_vm11, %v6413_v60, -1e+30  ;;  %v2596_v40 = vsel %vm2595_vm11, %v6402_v30, %v6412_v1  ;;  %v2608_v16 = vsel %vm2595_vm11, %v6412_v1, -1e+30 }
 0x5ac   :  { %v2614_v41 = vsel %vm8307_vm10, -1e+30, %v2597_v28  ;;  %v2615_v12 = vsel %vm8325_vm1, -1e+30, %v2609_v20  ;;  %v2612_v59 = vsel %vm8307_vm10, -1e+30, %v2596_v40  ;;  %v2555_v48 = vsel %vm2552_vm15, %v6417_v38, %v6418_v44  ;;  %v6421_v39 = vpop.permute.xlu1 %6420 }
 0x5ad   :  { %v2613_v25 = vsel %vm8325_vm1, -1e+30, %v2608_v16  ;;  %v2628_v42 = vmax.f32 %v2620_v29, %v2612_v59  ;;  %v2630_v45 = vmax.f32 %v2622_v11, %v2614_v41  ;;  %v2631_v19 = vmax.f32 %v2623_v32, %v2615_v12  ;;  %v6426_v26 = vpop.permute.xlu0 %6425  ;;  %v6756_v59 = vld [vmem:[#allocation16 + $0x44] ss:$8 sps:$4 sm:$0xff]  }
 0x5ae   :  { %v2629_v10 = vmax.f32 %v2621_v15, %v2613_v25  ;;  %v2567_v57 = vsel %vm2552_vm15, -1e+30, %v6417_v38  ;;  %v2574_v63 = vsel %vm8293_vm6, -1e+30, %v2555_v48  ;;  %v6423_v54 = vunpack.i.h.bf16 %v6421_v39  ;;  %v6754_v48 = vld [vmem:[#allocation16 + $0x40] ss:$8 sps:$4 sm:$0xff]  }
 0x5af   :  { %v2573_v3 = vsel %vm8289_vm5, -1e+30, %v2567_v57  ;;  %v6422_v4 = vunpack.i.l.bf16 %v6421_v39  ;;  %v6428_v6 = vunpack.i.h.bf16 %v6426_v26  ;;  %v2625_v52 = vmax.f32 %v8236_v22, %v2574_v63  ;;  %v6759_v39 = vld [vmem:[#allocation16 + $0x54] ss:$8 sps:$4 sm:$0xff]   ;;  %v6757_v25 = vld [vmem:[#allocation16 + $0x50] ss:$8 sps:$4 sm:$0xff]  }
 0x5b0   :  { %v6427_v29 = vunpack.i.l.bf16 %v6426_v26  ;;  %v6431_v2 = vpop.permute.xlu1 %6430  ;;  %v6014_v30 = vpack.c.bf16 %v2631_v19, %v2629_v10  ;;  %v6016_v15 = vpack.c.bf16 %v2630_v45, %v2628_v42  ;;  %v2624_v21 = vmax.f32 %v8234_v13, %v2573_v3  ;;  %v6762_v42 = vld [vmem:[#allocation16 + $0x64] ss:$8 sps:$4 sm:$0xff]   ;;  %v6760_v45 = vld [vmem:[#allocation16 + $0x60] ss:$8 sps:$4 sm:$0xff]   ;;  %v6765_v19 = vld [vmem:[#allocation16 + $0x74] ss:$8 sps:$4 sm:$0xff]  }
 0x5b1   :  { %v2556_v37 = vsel %vm2552_vm15, %v6422_v4, %v6423_v54  ;;  %v2568_v27 = vsel %vm2552_vm15, -1e+30, %v6422_v4  ;;  %v2611_v9 = vsel %vm2595_vm11, %v6428_v6, -1e+30  ;;  %v6433_v34 = vunpack.i.h.bf16 %v6431_v2  ;;  %v6763_v26 = vld [vmem:[#allocation16 + $0x70] ss:$8 sps:$4 sm:$0xff]  }
 0x5b2   :  { %v2575_v35 = vsel %vm8289_vm5, -1e+30, %v2568_v27  ;;  %v2576_v60 = vsel %vm8293_vm6, -1e+30, %v2556_v37  ;;  %v2619_v22 = vsel %vm8325_vm1, -1e+30, %v2611_v9  ;;  %v6432_v56 = vunpack.i.l.bf16 %v6431_v2  ;;  %6015 = vmatprep.subr.bf16.mxu1 %v6014_v30 }
 0x5b3   :  { %v2626_v53 = vmax.f32 %v8244_v7, %v2575_v35  ;;  %v2610_v1 = vsel %vm2595_vm11, %v6427_v29, -1e+30  ;;  %v2627_v55 = vmax.f32 %v8248_v36, %v2576_v60  ;;  %v2599_v11 = vsel %vm2595_vm11, %v6433_v34, %v6428_v6  ;;  %6017 = vmatpush1.bf16.msra.mxu1 %v6016_v15  ;;  %v6768_v10 = vld [vmem:[#allocation16 + $0x84] ss:$8 sps:$4 sm:$0xff]   ;;  %v6766_v57 = vld [vmem:[#allocation16 + $0x80] ss:$8 sps:$4 sm:$0xff]  }
 0x5b4   :  { %v2617_v18 = vsel %vm8325_vm1, -1e+30, %v2610_v1  ;;  %v2618_v32 = vsel %vm8307_vm10, -1e+30, %v2599_v11  ;;  %v2598_v44 = vsel %vm2595_vm11, %v6432_v56, %v6427_v29  ;;  %v6022_v13 = vpack.c.bf16 %v8329_v31, %v2765_v17  ;;  %v6745_v31 = vld [vmem:[#allocation16 + $0x10] ss:$8 sps:$4 sm:$0xff]   ;;  %vm9102_vm1 = vmmov %vm9091_vm0 }
 0x5b5   :  { %v2633_v38 = vmax.f32 %v2625_v52, %v2617_v18  ;;  %v2635_v28 = vmax.f32 %v2627_v55, %v2619_v22  ;;  %v2616_v7 = vsel %vm8307_vm10, -1e+30, %v2598_v44  ;;  %v2634_v20 = vmax.f32 %v2626_v53, %v2618_v32  ;;  %v6753_v17 = vld [vmem:[#allocation16 + $0x34] ss:$8 sps:$4 sm:$0xff]   ;;  %v6769_v54 = vld [vmem:[#allocation16 + $0x90] ss:$8 sps:$4 sm:$0xff]   ;;  %vm9101_vm10 = vmmov %vm9091_vm0 }
 0x5b6   :  { %v2632_v36 = vmax.f32 %v2624_v21, %v2616_v7  ;;  %v2768_v16 = vmax.f32 %v2764_v23, %v2760_v61  ;;  %v6751_v61 = vld [vmem:[#allocation16 + $0x30] ss:$8 sps:$4 sm:$0xff]   ;;  %v6771_v63 = vld [vmem:[#allocation16 + $0x94] ss:$8 sps:$4 sm:$0xff]   ;;  %v6774_v3 = vld [vmem:[#allocation16 + $0xa4] ss:$8 sps:$4 sm:$0xff]  }
 0x5b7   :  { %v6018_v40 = vpack.c.bf16 %v2635_v28, %v2633_v38  ;;  %v6772_v4 = vld [vmem:[#allocation16 + $0xa0] ss:$8 sps:$4 sm:$0xff]   ;;  %v6777_v6 = vld [vmem:[#allocation16 + $0xb4] ss:$8 sps:$4 sm:$0xff]   ;;  %v6775_v23 = vld [vmem:[#allocation16 + $0xb0] ss:$8 sps:$4 sm:$0xff]  }
 0x5b8   :  { %v6020_v41 = vpack.c.bf16 %v2634_v20, %v2632_v36  ;;  %v6026_v12 = vpack.c.bf16 %v2768_v16, %v2767_v51  ;;  %v6780_v52 = vld [vmem:[#allocation16 + $0xc4] ss:$8 sps:$4 sm:$0xff]   ;;  %v6778_v29 = vld [vmem:[#allocation16 + $0xc0] ss:$8 sps:$4 sm:$0xff]   ;;  %v6783_v2 = vld [vmem:[#allocation16 + $0xd4] ss:$8 sps:$4 sm:$0xff]  }
 0x5b9   :  { %6019 = vmatprep.subr.bf16.mxu1 %v6018_v40  ;;  %v6781_v30 = vld [vmem:[#allocation16 + $0xd0] ss:$8 sps:$4 sm:$0xff]   ;;  %v6784_v15 = vld [vmem:[#allocation16 + $0xe0] ss:$8 sps:$4 sm:$0xff]   ;;  %v6786_v37 = vld [vmem:[#allocation16 + $0xe4] ss:$8 sps:$4 sm:$0xff]  }
 0x5ba   :  { %6021 = vmatpush1.bf16.msra.mxu1 %v6020_v41  ;;  %v6789_v27 = vld [vmem:[#allocation16 + $0xf4] ss:$8 sps:$4 sm:$0xff]   ;;  %v6787_v9 = vld [vmem:[#allocation16 + $0xf0] ss:$8 sps:$4 sm:$0xff]   ;;  %v3242_v21 = vld [vmem:[%s9005_s13 + $0x18] sm:$0xff]  ;;  %vm3255_vm15 = vcmask 523264  }
 0x5bb   :  { %6023 = vmatprep.subr.bf16.mxu1 %v6022_v13  ;;  %v3240_v11 = vld [vmem:[%s9005_s13 + $0x8] sm:$0xff]  ;;  %v3239_v32 = vld [vmem:[%s9005_s13] sm:$0xff]  ;;  %v3241_v44 = vld [vmem:[%s9005_s13 + $0x10] sm:$0xff]  ;;  %vm4168_vm5 = vcmask 1043456   ;;  %vm4170_vm6 = vcmask 1045504  }
 0x5bc   :  { %v8418_v18 = vpack.c.bf16 %v3242_v21, %v3240_v11  ;;  %v8426_v38 = vpack.c.bf16 %v3241_v44, %v3239_v32  ;;  %v3244_v28 = vld [vmem:[%s9005_s13 + $0x28] sm:$0xff]  ;;  %v3246_v7 = vld [vmem:[%s9005_s13 + $0x38] sm:$0xff]  ;;  %v3243_v36 = vld [vmem:[%s9005_s13 + $0x20] sm:$0xff] }
 0x5bd   :  { %5848 = vmatmul.mubr.msk.f32.vlgmr.msra.gmra.mrb[8].mxu1 %vm9091_vm0, %v2636_v47  ;;  %v8436_v20 = vpack.c.bf16 %v3246_v7, %v3244_v28  ;;  %v3245_v40 = vld [vmem:[%s9005_s13 + $0x30] sm:$0xff]  ;;  %v3248_v51 = vld [vmem:[%s9005_s13 + $0x48] sm:$0xff]  ;;  %v3250_v16 = vld [vmem:[%s9005_s13 + $0x58] sm:$0xff]  ;;  %v2874_v7 = vand.u32 63, %v8266_v62 }
 0x5be   :  { %2714 = vmatprep.mubr.f32.mxu1 %v7439_v8  ;;  %6025 = vmatpush3.bf16.msra.mxu1 %v6022_v13  ;;  %v8444_v13 = vpack.c.bf16 %v3245_v40, %v3243_v36  ;;  %v8452_v41 = vpack.c.bf16 %v3250_v16, %v3248_v51  ;;  %vm9103_vm11 = vmmov %vm9091_vm0 }
 0x5bf   :  { %6027 = vmatprep.subr.bf16.mxu1 %v6026_v12  ;;  %vm8546_vm12 = vcmp.lt.s32.totalorder %v2874_v7, 32 }
 0x5c1   :  { %5849 = vmatmul.mubr.msk.f32.gmra.mrb[10].mxu1 %vm9092_vm14, %v2637_v14 }
 0x5c2   :  { %6029 = vmatpush3.bf16.msra.mxu1 %v6026_v12  ;;  %5981 = vmatprep.mubr.msk.f32.mxu1 %vm9093_vm3, %v2636_v47  ;;  %v3247_v47 = vld [vmem:[%s9005_s13 + $0x40] sm:$0xff]  ;;  %v3249_v12 = vld [vmem:[%s9005_s13 + $0x50] sm:$0xff] }
 0x5c3   :  { %3090 = vmatprep.subr.bf16.mxu1 %v6744_v5  ;;  %v3252_v5 = vld [vmem:[%s9005_s13 + $0x68] sm:$0xff] }
 0x5c5   :  { %5982 = vmatmul.mubr.msk.f32.vlgmr.msra.gmra.mrb[12].mxu1 %vm9094_vm13, %v2637_v14  ;;  %v8463_v14 = vpack.c.bf16 %v3249_v12, %v3247_v47 }
 0x5c6   :  { %3091 = vmatpush1.bf16.msra.mxu1 %v6742_v58  ;;  %v3254_v58 = vld [vmem:[%s9005_s13 + $0x78] sm:$0xff] }
 0x5c7   :  { %3092 = vmatprep.subr.bf16.mxu1 %v6747_v49  ;;  %v8471_v49 = vpack.c.bf16 %v3254_v58, %v3252_v5 }
 0x5ca   :  { %3093 = vmatpush1.bf16.msra.mxu1 %v6745_v31  ;;  %v3251_v31 = vld [vmem:[%s9005_s13 + $0x60] sm:$0xff] }
 0x5cb   :  { %3094 = vmatprep.subr.bf16.mxu1 %v6750_v24  ;;  %v3253_v24 = vld [vmem:[%s9005_s13 + $0x70] sm:$0xff] }
 0x5ce   :  { %3095 = vmatpush1.bf16.msra.mxu1 %v6748_v50  ;;  %v8481_v50 = vpack.c.bf16 %v3253_v24, %v3251_v31 }
 0x5cf   :  { %3096 = vmatprep.subr.bf16.mxu1 %v6753_v17  ;;  %v2844_v17 = vld [vmem:[#allocation17] sm:$0x3] }
 0x5d2   :  { %3097 = vmatpush1.bf16.msra.mxu1 %v6751_v61  ;;  %v2863_v61 = vrot.slane %v2844_v17, %v7918_v43 }
 0x5d3   :  { %3098 = vmatprep.subr.bf16.mxu1 %v6756_v59  ;;  %v2859_v59 = vrot.slane %v2844_v17, %v7921_v46 }
 0x5d6   :  { %3099 = vmatpush1.bf16.msra.mxu1 %v6754_v48 }
 0x5d7   :  { %3100 = vmatprep.subr.bf16.mxu1 %v6759_v39 }
 0x5da   :  { %3101 = vmatpush1.bf16.msra.mxu1 %v6757_v25 }
 0x5db   :  { %3102 = vmatprep.subr.bf16.mxu1 %v6762_v42 }
 0x5de   :  { %3103 = vmatpush1.bf16.msra.mxu1 %v6760_v45 }
 0x5df   :  { %3104 = vmatprep.subr.bf16.mxu1 %v6765_v19  ;;  %v3133_v19 = vld [vmem:[#allocation19] sm:$0x3] }
 0x5e2   :  { %3105 = vmatpush1.bf16.msra.mxu1 %v6763_v26 }
 0x5e3   :  { %3106 = vmatprep.subr.bf16.mxu1 %v6768_v10 }
 0x5e6   :  { %3107 = vmatpush1.bf16.msra.mxu1 %v6766_v57 }
 0x5e7   :  { %3108 = vmatprep.subr.bf16.mxu1 %v6771_v63 }
 0x5ea   :  { %3109 = vmatpush1.bf16.msra.mxu1 %v6769_v54  ;;  %v3142_v54 = vrot.slane %v3133_v19, %v7918_v43 }
 0x5eb   :  { %3110 = vmatprep.subr.bf16.mxu1 %v6774_v3 }
 0x5ee   :  { %3111 = vmatpush1.bf16.msra.mxu1 %v6772_v4 }
 0x5ef   :  { %3112 = vmatprep.subr.bf16.mxu1 %v6777_v6  ;;  %v3138_v6 = vrot.slane %v3133_v19, %v7921_v46 }
 0x5f2   :  { %3113 = vmatpush1.bf16.msra.mxu1 %v6775_v23 }
 0x5f3   :  { %3114 = vmatprep.subr.bf16.mxu1 %v6780_v52 }
 0x5f6   :  { %3115 = vmatpush1.bf16.msra.mxu1 %v6778_v29 }
 0x5f7   :  { %3116 = vmatprep.subr.bf16.mxu1 %v6783_v2 }
 0x5fa   :  { %3117 = vmatpush1.bf16.msra.mxu1 %v6781_v30 }
 0x5fb   :  { %3118 = vmatprep.subr.bf16.mxu1 %v6786_v37 }
 0x5fe   :  { %3119 = vmatpush1.bf16.msra.mxu1 %v6784_v15 }
 0x5ff   :  { %3120 = vmatprep.subr.bf16.mxu1 %v6789_v27 }
 0x602   :  { %3121 = vmatpush1.bf16.msra.mxu1 %v6787_v9 }
 0x603   :  { %6083 = vmatprep.subr.bf16.mxu1 %v8418_v18 }
 0x690   :  { %v2710_v34 = vpop.f32.mrb[8].mxu1 }
 0x691   :  { %v2712_v35 = vpop.f32.mrb[9].mxu1 }
 0x694   :  { %v2716_v60 = vpop.f32.mrb[10].mxu1 }
 0x695   :  { %v2896_v22 = vpack.c.bf16 %v2716_v60, %v2710_v34  ;;  %v2718_v56 = vpop.f32.mrb[11].mxu1  ;;  %v8498_v34 = vld [vmem:[%s9095_s25] sm:$0xff] }
 0x696   :  { %v2897_v53 = vpack.c.bf16 %v2718_v56, %v2712_v35  ;;  %v8508_v35 = vld [vmem:[%s9095_s25 + $0x8] sm:$0xff] }
 0x698   :  { %3122 = vmatprep.mubr.bf16.mxu1 %v2897_v53  ;;  %v5983_v1 = vpop.f32.mrb[12].mxu1 }
 0x699   :  { %3123 = vmatmul.mubr.bf16.vlgmr.msra.gmra.mrb[16].mxu1 %v2896_v22  ;;  %v2835_v55 = vpop.f32.mrb[13].mxu1  ;;  %2852 = vperm.xlu1 %6435, %v5983_v1   ;;  %v2881_v1 = vand.u32 63, %v8272_v33 }
 0x69a   :  { %2847 = vperm.xlu0 %6434, %v2835_v55   ;;  %3661 = vmatprep.mubr.f32.mxu1 %v7439_v8 }
 0x69b   :  { %6085 = vmatpush1.bf16.msra.mxu1 %v8426_v38  ;;  %vm8535_vm9 = vcmp.lt.s32.totalorder %v2881_v1, 32 }
 0x69c   :  { %6087 = vmatprep.subr.bf16.mxu1 %v8436_v20 }
 0x69f   :  { %6089 = vmatpush1.bf16.msra.mxu1 %v8444_v13 }
 0x6a0   :  { %6091 = vmatprep.subr.bf16.mxu1 %v8452_v41 }
 0x6a3   :  { %6093 = vmatpush1.bf16.msra.mxu1 %v8463_v14 }
 0x6a4   :  { %6095 = vmatprep.subr.bf16.mxu1 %v8471_v49 }
 0x6a7   :  { %6097 = vmatpush1.bf16.msra.mxu1 %v8481_v50 }
 0x6a8   :  { %6115 = vmatprep.subr.bf16.mxu1 %v8418_v18 }
 0x718   :  { %v2853_v39 = vpop.permute.xlu1 %2852 }
 0x719   :  { %v2848_v48 = vpop.permute.xlu0 %2847  ;;  %v2868_v45 = vmul.f32 %v2859_v59, %v2853_v39  ;;  %v2869_v26 = vmul.f32 %v2863_v61, %v2853_v39 }
 0x71a   :  { %v2867_v25 = vmul.f32 %v2863_v61, %v2848_v48  ;;  %v2866_v42 = vmul.f32 %v2859_v59, %v2848_v48 }
 0x76c   :  { %v3124_v10 = vpop.f32.mrb[16].mxu1 }
 0x76d   :  { %v3126_v57 = vpop.f32.mrb[17].mxu1  ;;  %v3125_v4 = vadd.f32 %v3124_v10, %v2866_v42 }
 0x76e   :  { %v3127_v63 = vadd.f32 %v3126_v57, %v2867_v25  ;;  %v3128_v3 = vpop.f32.mrb[18].mxu1 }
 0x76f   :  { %v3129_v23 = vadd.f32 %v3128_v3, %v2868_v45  ;;  %v3130_v52 = vpop.f32.mrb[19].mxu1  ;;  %v3145_v37 = vadd.f32 %v3138_v6, %v3125_v4 }
 0x770   :  { %v3131_v29 = vadd.f32 %v3130_v52, %v2869_v26  ;;  %v3146_v30 = vadd.f32 %v3142_v54, %v3127_v63 }
 0x771   :  { %v8489_v2 = vadd.f32 %v3138_v6, %v3129_v23 }
 0x772   :  { %v8491_v15 = vadd.f32 %v3142_v54, %v3131_v29 }
 0x773   :  { %v6032_v9 = vpack.c.bf16 %v8489_v2, %v3145_v37 }
 0x774   :  { %v6030_v27 = vpack.c.bf16 %v8491_v15, %v3146_v30 }
 0x776   :  { %6031 = vmatprep.subr.bf16.mxu0 %v6030_v27 }
 0x777   :  { %6033 = vmatpush1.bf16.msra.mxu0 %v6032_v9 }
 0x778   :  { %6035 = vmatprep.subr.bf16.mxu0 %v8418_v18 }
 0x77a   :  { %5884 = vmatmul.mubr.msk.f32.vlgmr.msra.gmra.mrb[16].mxu0 %vm3151_vm4, %v8498_v34 }
 0x77b   :  { %6037 = vmatpush1.bf16.msra.mxu0 %v8426_v38  ;;  %3228 = vmatprep.mubr.f32.mxu0 %v7439_v8 }
 0x77c   :  { %6039 = vmatprep.subr.bf16.mxu0 %v8436_v20 }
 0x77e   :  { %5885 = vmatmul.mubr.msk.f32.gmra.mrb[18].mxu0 %vm3151_vm4, %v8508_v35 }
 0x77f   :  { %6041 = vmatpush1.bf16.msra.mxu0 %v8444_v13  ;;  %3323 = vmatprep.mubr.f32.mxu0 %v7439_v8 }
 0x780   :  { %6043 = vmatprep.subr.bf16.mxu0 %v8452_v41 }
 0x783   :  { %6045 = vmatpush1.bf16.msra.mxu0 %v8463_v14 }
 0x784   :  { %6047 = vmatprep.subr.bf16.mxu0 %v8471_v49 }
 0x787   :  { %6049 = vmatpush1.bf16.msra.mxu0 %v8481_v50 }
 0x788   :  { %6051 = vmatprep.subr.bf16.mxu0 %v8418_v18 }
 0x78a   :  { %3324 = vmatmul.mubr.f32.vlgmr.msra.gmra.mrb[20].mxu0 %v7439_v8 }
 0x78b   :  { %6053 = vmatpush1.bf16.msra.mxu0 %v8426_v38  ;;  %3429 = vmatprep.mubr.f32.mxu0 %v7439_v8 }
 0x78c   :  { %6055 = vmatprep.subr.bf16.mxu0 %v8436_v20 }
 0x78f   :  { %6057 = vmatpush1.bf16.msra.mxu0 %v8444_v13 }
 0x790   :  { %6059 = vmatprep.subr.bf16.mxu0 %v8452_v41 }
 0x793   :  { %6061 = vmatpush1.bf16.msra.mxu0 %v8463_v14 }
 0x794   :  { %6063 = vmatprep.subr.bf16.mxu0 %v8471_v49 }
 0x797   :  { %6065 = vmatpush1.bf16.msra.mxu0 %v8481_v50 }
 0x798   :  { %6067 = vmatprep.subr.bf16.mxu0 %v8418_v18 }
 0x84d   :  { %v3224_v60 = vpop.f32.mrb[16].mxu0 }
 0x84e   :  { %v3226_v22 = vpop.f32.mrb[17].mxu0  ;;  %v8552_v36 = vsel %vm8546_vm12, %v3145_v37, %v3224_v60 }
 0x84f   :  { %v8541_v21 = vsel %vm8535_vm9, %v3146_v30, %v3226_v22 }
 0x851   :  { %v8530_v56 = vpop.f32.mrb[18].mxu0 }
 0x852   :  { %v8532_v53 = vpop.f32.mrb[19].mxu0 }
 0x85d   :  { %v3325_v11 = vpop.f32.mrb[20].mxu0 }
 0x85e   :  { %v3327_v32 = vpop.f32.mrb[21].mxu0  ;;  %v3330_v40 = vadd.f32 %v3325_v11, %v8552_v36 }
 0x85f   :  { %v3331_v44 = vadd.f32 %v3327_v32, %v8541_v21 }
 0x860   :  { %v5886_v51 = vmul.f32 -1.442695, %v3330_v40 }
 0x861   :  { %6802 = vtanh.f32 %v3331_v44  ;;  %v5887_v61 = vmul.f32 -1.442695, %v3331_v44 }
 0x862   :  { %6804 = vpow2.f32 %v5886_v51 }
 0x86b   :  { %v6803_v28 = vpop.eup %6802 }
 0x86c   :  { %3347 = vrot.lane.b32.xlu1 %v6803_v28, %s7440_s5  ;;  %v6805_v16 = vpop.eup %6804 }
 0x86d   :  { %v3338_v47 = vadd.f32 1.0, %v6805_v16 }
 0x86f   :  { %6806 = vrcp.f32 %v3338_v47 }
 0x879   :  { %v6807_v12 = vpop.eup %6806 }
 0x87a   :  { %v3345_v62 = vmul.f32 0.0, %v6807_v12 }
 0x8de   :  { %v3348_v5 = vpop.permute.xlu1 %3347 }
 0x8df   :  { %v3350_v58 = vmul.f32 %v6807_v12, %v3348_v5 }
 0x8e1   :  { %3352 = vrot.lane.b32.xlu0 %v3350_v58, %s7440_s5 }
 0x953   :  { %v3353_v31 = vpop.permute.xlu0 %3352 }
 0x954   :  { %v3355_v24 = vadd.f32 %v3353_v31, %v3345_v62 }
 0x956   :  { %6808 = vtanh.f32 %v3355_v24  ;;  %v3458_v30 = vrot.slane %v3355_v24, 6 }
 0x957   :  { %6810 = vpow2.f32 %v5887_v61 }
 0x960   :  { %v6809_v17 = vpop.eup %6808 }
 0x961   :  { %3358 = vrot.lane.b32.xlu1 %v6809_v17, %s7440_s5  ;;  %v6811_v59 = vpop.eup %6810 }
 0x962   :  { %v3339_v48 = vadd.f32 1.0, %v6811_v59 }
 0x964   :  { %6812 = vrcp.f32 %v3339_v48 }
 0x96e   :  { %v6813_v39 = vpop.eup %6812 }
 0x9d3   :  { %v3359_v25 = vpop.permute.xlu1 %3358 }
 0x9d4   :  { %v8557_v42 = vmul.f32 %v6813_v39, %v3359_v25 }
 0x9d6   :  { %5888 = vmatmul.mubr.msk.f32.vlgmr.msra.gmra.mrb[22].mxu0 %vm3255_vm15, %v8557_v42 }
 0x9d7   :  { %6069 = vmatpush1.bf16.msra.mxu0 %v8426_v38  ;;  %3545 = vmatprep.mubr.f32.mxu0 %v7439_v8 }
 0x9d8   :  { %6071 = vmatprep.subr.bf16.mxu0 %v8436_v20 }
 0x9db   :  { %6073 = vmatpush1.bf16.msra.mxu0 %v8444_v13 }
 0x9dc   :  { %6075 = vmatprep.subr.bf16.mxu0 %v8452_v41 }
 0x9df   :  { %6077 = vmatpush1.bf16.msra.mxu0 %v8463_v14 }
 0x9e0   :  { %6079 = vmatprep.subr.bf16.mxu0 %v8471_v49 }
 0x9e3   :  { %6081 = vmatpush1.bf16.msra.mxu0 %v8481_v50 }
 0x9e4   :  { %6099 = vmatprep.subr.bf16.mxu0 %v8418_v18 }
 0xaa9   :  { %v3431_v45 = vpop.f32.mrb[22].mxu0 }
 0xaaa   :  { %v3433_v19 = vpop.f32.mrb[23].mxu0  ;;  %v3438_v63 = vrot.slane %v3431_v45, 6 }
 0xaab   :  { %v3439_v26 = vrot.slane %v3433_v19, 6 }
 0xaac   :  { %v3442_v54 = vadd.f32 %v3438_v63, %v8552_v36 }
 0xaad   :  { %v3443_v10 = vadd.f32 %v3439_v26, %v8541_v21 }
 0xaae   :  { %v5889_v3 = vmul.f32 -1.442695, %v3442_v54 }
 0xaaf   :  { %6814 = vtanh.f32 %v3443_v10  ;;  %v5890_v22 = vmul.f32 -1.442695, %v3443_v10 }
 0xab0   :  { %6816 = vpow2.f32 %v5889_v3 }
 0xab9   :  { %v6815_v57 = vpop.eup %6814 }
 0xaba   :  { %3462 = vrot.lane.b32.xlu0 %v6815_v57, %s7440_s5  ;;  %v6817_v4 = vpop.eup %6816 }
 0xabb   :  { %v3450_v6 = vadd.f32 1.0, %v6817_v4 }
 0xabd   :  { %6818 = vrcp.f32 %v3450_v6 }
 0xac7   :  { %v6819_v23 = vpop.eup %6818 }
 0xac8   :  { %v3460_v37 = vmul.f32 %v6819_v23, %v3458_v30 }
 0xb2c   :  { %v3463_v52 = vpop.permute.xlu0 %3462 }
 0xb2d   :  { %v3465_v29 = vmul.f32 %v6819_v23, %v3463_v52 }
 0xb2f   :  { %3467 = vrot.lane.b32.xlu1 %v3465_v29, %s7440_s5 }
 0xba1   :  { %v3468_v27 = vpop.permute.xlu1 %3467 }
 0xba2   :  { %v3470_v9 = vadd.f32 %v3468_v27, %v3460_v37 }
 0xba4   :  { %6820 = vtanh.f32 %v3470_v9  ;;  %v3574_v48 = vrot.slane %v3470_v9, 6 }
 0xba5   :  { %6822 = vpow2.f32 %v5890_v22 }
 0xbae   :  { %v6821_v60 = vpop.eup %6820 }
 0xbaf   :  { %3473 = vrot.lane.b32.xlu0 %v6821_v60, %s7440_s5  ;;  %v6823_v1 = vpop.eup %6822 }
 0xbb0   :  { %v3451_v11 = vadd.f32 1.0, %v6823_v1 }
 0xbb2   :  { %6824 = vrcp.f32 %v3451_v11 }
 0xbbc   :  { %v6825_v32 = vpop.eup %6824 }
 0xc21   :  { %v3474_v44 = vpop.permute.xlu0 %3473 }
 0xc22   :  { %v8575_v28 = vmul.f32 %v6825_v32, %v3474_v44 }
 0xc24   :  { %v3478_v7 = vrot.slane %v8575_v28, 2  ;;  %v4167_v4 = vsel %vm4166_vm2, %v8557_v42, %v8575_v28 }
 0xc26   :  { %5891 = vmatmul.mubr.msk.f32.vlgmr.msra.gmra.mrb[24].mxu0 %vm3255_vm15, %v3478_v7 }
 0xc27   :  { %6101 = vmatpush1.bf16.msra.mxu0 %v8426_v38  ;;  %3777 = vmatprep.mubr.f32.mxu0 %v7439_v8 }
 0xc28   :  { %6103 = vmatprep.subr.bf16.mxu0 %v8436_v20 }
 0xc2b   :  { %6105 = vmatpush1.bf16.msra.mxu0 %v8444_v13 }
 0xc2c   :  { %6107 = vmatprep.subr.bf16.mxu0 %v8452_v41 }
 0xc2f   :  { %6109 = vmatpush1.bf16.msra.mxu0 %v8463_v14 }
 0xc30   :  { %6111 = vmatprep.subr.bf16.mxu0 %v8471_v49 }
 0xc33   :  { %6113 = vmatpush1.bf16.msra.mxu0 %v8481_v50 }
 0xc34   :  { %6131 = vmatprep.subr.bf16.mxu0 %v8418_v18 }
 0xcf9   :  { %v3547_v40 = vpop.f32.mrb[24].mxu0 }
 0xcfa   :  { %v3549_v51 = vpop.f32.mrb[25].mxu0  ;;  %v3554_v5 = vrot.slane %v3547_v40, 4 }
 0xcfb   :  { %v3555_v16 = vrot.slane %v3549_v51, 4 }
 0xcfc   :  { %v3558_v58 = vadd.f32 %v3554_v5, %v8552_v36 }
 0xcfd   :  { %v3559_v47 = vadd.f32 %v3555_v16, %v8541_v21 }
 0xcfe   :  { %v5892_v62 = vmul.f32 -1.442695, %v3558_v58 }
 0xcff   :  { %6826 = vtanh.f32 %v3559_v47  ;;  %v5893_v26 = vmul.f32 -1.442695, %v3559_v47 }
 0xd00   :  { %6828 = vpow2.f32 %v5892_v62 }
 0xd09   :  { %v6827_v12 = vpop.eup %6826 }
 0xd0a   :  { %3578 = vrot.lane.b32.xlu1 %v6827_v12, %s7440_s5  ;;  %v6829_v31 = vpop.eup %6828 }
 0xd0b   :  { %v3566_v24 = vadd.f32 1.0, %v6829_v31 }
 0xd0d   :  { %6830 = vrcp.f32 %v3566_v24 }
 0xd17   :  { %v6831_v17 = vpop.eup %6830 }
 0xd18   :  { %v3576_v39 = vmul.f32 %v6831_v17, %v3574_v48 }
 0xd7c   :  { %v3579_v61 = vpop.permute.xlu1 %3578 }
 0xd7d   :  { %v3581_v59 = vmul.f32 %v6831_v17, %v3579_v61  ;;  %v4187_v61 = vrot.slane %v8575_v28, 6 }
 0xd7f   :  { %3583 = vrot.lane.b32.xlu0 %v3581_v59, %s7440_s5 }
 0xdf1   :  { %v3584_v25 = vpop.permute.xlu0 %3583 }
 0xdf2   :  { %v3586_v45 = vadd.f32 %v3584_v25, %v3576_v39  ;;  %v8633_v39 = vsel %vm8535_vm9, %v8491_v15, %v8532_v53 }
 0xdf4   :  { %6832 = vtanh.f32 %v3586_v45  ;;  %v3690_v7 = vrot.slane %v3586_v45, 6 }
 0xdf5   :  { %6834 = vpow2.f32 %v5893_v26  ;;  %v8641_v26 = vsel %vm8546_vm12, %v8489_v2, %v8530_v56 }
 0xdfe   :  { %v6833_v19 = vpop.eup %6832 }
 0xdff   :  { %3589 = vrot.lane.b32.xlu1 %v6833_v19, %s7440_s5  ;;  %v6835_v10 = vpop.eup %6834 }
 0xe00   :  { %v3567_v57 = vadd.f32 1.0, %v6835_v10 }
 0xe02   :  { %6836 = vrcp.f32 %v3567_v57 }
 0xe0c   :  { %v6837_v63 = vpop.eup %6836 }
 0xe71   :  { %v3590_v54 = vpop.permute.xlu1 %3589 }
 0xe72   :  { %v3592_v3 = vmul.f32 %v6837_v63, %v3590_v54 }
 0xe74   :  { %v3594_v6 = vrot.slane %v3592_v3, 4  ;;  %v4169_v23 = vsel %vm4168_vm5, %v4167_v4, %v3592_v3  ;;  %v4185_v31 = vrot.slane %v3592_v3, 2 }
 0xe76   :  { %5894 = vmatmul.mubr.msk.f32.vlgmr.msra.gmra.mrb[14].mxu1 %vm3255_vm15, %v3594_v6 }
 0xe77   :  { %6117 = vmatpush1.bf16.msra.mxu1 %v8426_v38  ;;  %3886 = vmatprep.mubr.f32.mxu1 %v7439_v8 }
 0xe78   :  { %6119 = vmatprep.subr.bf16.mxu1 %v8436_v20 }
 0xe7b   :  { %6121 = vmatpush1.bf16.msra.mxu1 %v8444_v13 }
 0xe7c   :  { %6123 = vmatprep.subr.bf16.mxu1 %v8452_v41 }
 0xe7f   :  { %6125 = vmatpush1.bf16.msra.mxu1 %v8463_v14 }
 0xe80   :  { %6127 = vmatprep.subr.bf16.mxu1 %v8471_v49 }
 0xe83   :  { %6129 = vmatpush1.bf16.msra.mxu1 %v8481_v50 }
 0xe84   :  { %6147 = vmatprep.subr.bf16.mxu1 %v8418_v18 }
 0xf49   :  { %v3663_v52 = vpop.f32.mrb[14].mxu1 }
 0xf4a   :  { %v3665_v29 = vpop.f32.mrb[15].mxu1  ;;  %v3670_v9 = vrot.slane %v3663_v52, 2 }
 0xf4b   :  { %v3671_v30 = vrot.slane %v3665_v29, 2 }
 0xf4c   :  { %v3674_v60 = vadd.f32 %v3670_v9, %v8552_v36 }
 0xf4d   :  { %v3675_v37 = vadd.f32 %v3671_v30, %v8541_v21 }
 0xf4e   :  { %v5895_v22 = vmul.f32 -1.442695, %v3674_v60 }
 0xf4f   :  { %6838 = vtanh.f32 %v3675_v37  ;;  %v5896_v47 = vmul.f32 -1.442695, %v3675_v37 }
 0xf50   :  { %6840 = vpow2.f32 %v5895_v22 }
 0xf59   :  { %v6839_v27 = vpop.eup %6838 }
 0xf5a   :  { %3694 = vrot.lane.b32.xlu0 %v6839_v27, %s7440_s5  ;;  %v6841_v1 = vpop.eup %6840 }
 0xf5b   :  { %v3682_v11 = vadd.f32 1.0, %v6841_v1 }
 0xf5d   :  { %6842 = vrcp.f32 %v3682_v11 }
 0xf67   :  { %v6843_v32 = vpop.eup %6842 }
 0xf68   :  { %v3692_v40 = vmul.f32 %v6843_v32, %v3690_v7 }
 0xfcc   :  { %v3695_v44 = vpop.permute.xlu0 %3694 }
 0xfcd   :  { %v3697_v18 = vmul.f32 %v6843_v32, %v3695_v44 }
 0xfcf   :  { %3699 = vrot.lane.b32.xlu1 %v3697_v18, %s7440_s5 }
0x1041   :  { %v3700_v21 = vpop.permute.xlu1 %3699 }
0x1042   :  { %v3702_v51 = vadd.f32 %v3700_v21, %v3692_v40 }
0x1044   :  { %6844 = vtanh.f32 %v3702_v51  ;;  %v3800_v4 = vrot.slane %v3702_v51, 6 }
0x1045   :  { %6846 = vpow2.f32 %v5896_v47 }
0x104e   :  { %v6845_v16 = vpop.eup %6844 }
0x104f   :  { %3705 = vrot.lane.b32.xlu0 %v6845_v16, %s7440_s5  ;;  %v6847_v36 = vpop.eup %6846 }
0x1050   :  { %v3683_v12 = vadd.f32 1.0, %v6847_v36 }
0x1052   :  { %6848 = vrcp.f32 %v3683_v12 }
0x105c   :  { %v6849_v5 = vpop.eup %6848 }
0x10c1   :  { %v3706_v58 = vpop.permute.xlu0 %3705 }
0x10c2   :  { %v3708_v62 = vmul.f32 %v6849_v5, %v3706_v58 }
0x10c4   :  { %v3710_v24 = vrot.slane %v3708_v62, 6  ;;  %v8613_v17 = vsel %vm4170_vm6, %v4169_v23, %v3708_v62 }
0x10c6   :  { %v4194_v59 = vsel %vm4166_vm2, %v3710_v24, %v4185_v31  ;;  %5897 = vmatmul.mubr.msk.f32.vlgmr.msra.gmra.mrb[26].mxu0 %vm3255_vm15, %v3710_v24 }
0x10c7   :  { %6133 = vmatpush1.bf16.msra.mxu0 %v8426_v38  ;;  %4002 = vmatprep.mubr.f32.mxu0 %v7439_v8  ;;  %v8621_v48 = vsel %vm4168_vm5, %v4194_v59, %v4187_v61 }
0x10c8   :  { %6135 = vmatprep.subr.bf16.mxu0 %v8436_v20 }
0x10cb   :  { %6137 = vmatpush1.bf16.msra.mxu0 %v8444_v13 }
0x10cc   :  { %6139 = vmatprep.subr.bf16.mxu0 %v8452_v41 }
0x10cf   :  { %6141 = vmatpush1.bf16.msra.mxu0 %v8463_v14 }
0x10d0   :  { %6143 = vmatprep.subr.bf16.mxu0 %v8471_v49 }
0x10d3   :  { %6145 = vmatpush1.bf16.msra.mxu0 %v8481_v50 }
0x1199   :  { %v3779_v28 = vpop.f32.mrb[26].mxu0 }
0x119a   :  { %v3781_v25 = vpop.f32.mrb[27].mxu0  ;;  %v3784_v10 = vadd.f32 %v3779_v28, %v8641_v26 }
0x119b   :  { %v3785_v45 = vadd.f32 %v3781_v25, %v8633_v39 }
0x119c   :  { %v5898_v57 = vmul.f32 -1.442695, %v3784_v10 }
0x119d   :  { %6850 = vtanh.f32 %v3785_v45  ;;  %v5899_v2 = vmul.f32 -1.442695, %v3785_v45 }
0x119e   :  { %6852 = vpow2.f32 %v5898_v57 }
0x11a7   :  { %v6851_v19 = vpop.eup %6850 }
0x11a8   :  { %3804 = vrot.lane.b32.xlu1 %v6851_v19, %s7440_s5  ;;  %v6853_v63 = vpop.eup %6852 }
0x11a9   :  { %v3792_v15 = vadd.f32 1.0, %v6853_v63 }
0x11ab   :  { %6854 = vrcp.f32 %v3792_v15 }
0x11b5   :  { %v6855_v53 = vpop.eup %6854 }
0x11b6   :  { %v3802_v6 = vmul.f32 %v6855_v53, %v3800_v4 }
0x121a   :  { %v3805_v54 = vpop.permute.xlu1 %3804 }
0x121b   :  { %v3807_v3 = vmul.f32 %v6855_v53, %v3805_v54 }
0x121d   :  { %3809 = vrot.lane.b32.xlu0 %v3807_v3, %s7440_s5 }
0x128f   :  { %v3810_v23 = vpop.permute.xlu0 %3809 }
0x1290   :  { %v3812_v52 = vadd.f32 %v3810_v23, %v3802_v6 }
0x1292   :  { %6856 = vtanh.f32 %v3812_v52  ;;  %v3915_v18 = vrot.slane %v3812_v52, 6 }
0x1293   :  { %6858 = vpow2.f32 %v5899_v2 }
0x129c   :  { %v6857_v29 = vpop.eup %6856 }
0x129d   :  { %3815 = vrot.lane.b32.xlu1 %v6857_v29, %s7440_s5  ;;  %v6859_v56 = vpop.eup %6858 }
0x129e   :  { %v3793_v30 = vadd.f32 1.0, %v6859_v56 }
0x12a0   :  { %6860 = vrcp.f32 %v3793_v30 }
0x12aa   :  { %v6861_v37 = vpop.eup %6860 }
0x130f   :  { %v3816_v27 = vpop.permute.xlu1 %3815 }
0x1310   :  { %v8646_v9 = vmul.f32 %v6861_v37, %v3816_v27 }
0x1312   :  { %5900 = vmatmul.mubr.msk.f32.vlgmr.msra.gmra.mrb[20].mxu1 %vm3255_vm15, %v8646_v9 }
0x1313   :  { %6149 = vmatpush1.bf16.msra.mxu1 %v8426_v38  ;;  %4118 = vmatprep.mubr.f32.mxu1 %v7439_v8 }
0x1314   :  { %6151 = vmatprep.subr.bf16.mxu1 %v8436_v20 }
0x1317   :  { %6153 = vmatpush1.bf16.msra.mxu1 %v8444_v13 }
0x1318   :  { %6155 = vmatprep.subr.bf16.mxu1 %v8452_v41 }
0x131b   :  { %6157 = vmatpush1.bf16.msra.mxu1 %v8463_v14 }
0x131c   :  { %6159 = vmatprep.subr.bf16.mxu1 %v8471_v49 }
0x131f   :  { %6161 = vmatpush1.bf16.msra.mxu1 %v8481_v50 }
0x13e5   :  { %v3888_v60 = vpop.f32.mrb[20].mxu1 }
0x13e6   :  { %v3890_v22 = vpop.f32.mrb[21].mxu1  ;;  %v3895_v20 = vrot.slane %v3888_v60, 6 }
0x13e7   :  { %v3896_v1 = vrot.slane %v3890_v22, 6 }
0x13e8   :  { %v3899_v13 = vadd.f32 %v3895_v20, %v8641_v26 }
0x13e9   :  { %v3900_v11 = vadd.f32 %v3896_v1, %v8633_v39 }
0x13ea   :  { %v5901_v32 = vmul.f32 -1.442695, %v3899_v13 }
0x13eb   :  { %6862 = vtanh.f32 %v3900_v11  ;;  %v5902_v16 = vmul.f32 -1.442695, %v3900_v11 }
0x13ec   :  { %6864 = vpow2.f32 %v5901_v32 }
0x13f5   :  { %v6863_v38 = vpop.eup %6862 }
0x13f6   :  { %3919 = vrot.lane.b32.xlu0 %v6863_v38, %s7440_s5  ;;  %v6865_v41 = vpop.eup %6864 }
0x13f7   :  { %v3907_v14 = vadd.f32 1.0, %v6865_v41 }
0x13f9   :  { %6866 = vrcp.f32 %v3907_v14 }
0x1403   :  { %v6867_v49 = vpop.eup %6866 }
0x1404   :  { %v3917_v7 = vmul.f32 %v6867_v49, %v3915_v18 }
0x1468   :  { %v3920_v44 = vpop.permute.xlu0 %3919 }
0x1469   :  { %v3922_v50 = vmul.f32 %v6867_v49, %v3920_v44 }
0x146b   :  { %3924 = vrot.lane.b32.xlu1 %v3922_v50, %s7440_s5 }
0x14dd   :  { %v3925_v40 = vpop.permute.xlu1 %3924 }
0x14de   :  { %v3927_v21 = vadd.f32 %v3925_v40, %v3917_v7 }
0x14e0   :  { %6868 = vtanh.f32 %v3927_v21  ;;  %v4031_v53 = vrot.slane %v3927_v21, 6 }
0x14e1   :  { %6870 = vpow2.f32 %v5902_v16 }
0x14ea   :  { %v6869_v51 = vpop.eup %6868 }
0x14eb   :  { %3930 = vrot.lane.b32.xlu0 %v6869_v51, %s7440_s5  ;;  %v6871_v47 = vpop.eup %6870 }
0x14ec   :  { %v3908_v36 = vadd.f32 1.0, %v6871_v47 }
0x14ee   :  { %6872 = vrcp.f32 %v3908_v36 }
0x14f8   :  { %v6873_v12 = vpop.eup %6872 }
0x155d   :  { %v3931_v5 = vpop.permute.xlu0 %3930 }
0x155e   :  { %v8663_v58 = vmul.f32 %v6873_v12, %v3931_v5  ;;  %v4189_v5 = vrot.slane %v8557_v42, 2 }
0x1560   :  { %v3935_v62 = vrot.slane %v8663_v58, 2  ;;  %v4172_v37 = vsel %vm4166_vm2, %v8646_v9, %v8663_v58 }
0x1562   :  { %5903 = vmatmul.mubr.msk.f32.vlgmr.msra.gmra.mrb[28].mxu0 %vm3255_vm15, %v3935_v62 }
0x1563   :  { %4340 = vmatprep.mubr.bf16.mxu0 %v7435_v0 }
0x1635   :  { %v4004_v31 = vpop.f32.mrb[28].mxu0 }
0x1636   :  { %v4006_v24 = vpop.f32.mrb[29].mxu0  ;;  %v4011_v25 = vrot.slane %v4004_v31, 4 }
0x1637   :  { %v4012_v61 = vrot.slane %v4006_v24, 4 }
0x1638   :  { %v4015_v45 = vadd.f32 %v4011_v25, %v8641_v26 }
0x1639   :  { %v4016_v59 = vadd.f32 %v4012_v61, %v8633_v39 }
0x163a   :  { %v5904_v19 = vmul.f32 -1.442695, %v4015_v45  ;;  %v4182_v45 = vrot.slane %v8646_v9, 2 }
0x163b   :  { %6874 = vtanh.f32 %v4016_v59  ;;  %v5905_v23 = vmul.f32 -1.442695, %v4016_v59  ;;  %v4196_v59 = vsel %vm4170_vm6, %v8621_v48, %v4189_v5  ;;  %v4439_v5 = vld [vmem:[#allocation23 + $0x38] sm:$0xff] }
0x163c   :  { %6876 = vpow2.f32 %v5904_v19 }
0x1645   :  { %v6875_v28 = vpop.eup %6874 }
0x1646   :  { %4035 = vrot.lane.b32.xlu1 %v6875_v28, %s7440_s5  ;;  %v6877_v10 = vpop.eup %6876  ;;  %v4180_v28 = vrot.slane %v8663_v58, 6 }
0x1647   :  { %v4023_v57 = vadd.f32 1.0, %v6877_v10 }
0x1649   :  { %6878 = vrcp.f32 %v4023_v57 }
0x1653   :  { %v6879_v63 = vpop.eup %6878 }
0x1654   :  { %v4033_v54 = vmul.f32 %v6879_v63, %v4031_v53 }
0x16b8   :  { %v4036_v15 = vpop.permute.xlu1 %4035 }
0x16b9   :  { %v4038_v0 = vmul.f32 %v6879_v63, %v4036_v15 }
0x16bb   :  { %4040 = vrot.lane.b32.xlu0 %v4038_v0, %s7440_s5 }
0x172d   :  { %v4041_v3 = vpop.permute.xlu0 %4040 }
0x172e   :  { %v4043_v4 = vadd.f32 %v4041_v3, %v4033_v54 }
0x1730   :  { %6880 = vtanh.f32 %v4043_v4  ;;  %v4147_v7 = vrot.slane %v4043_v4, 6 }
0x1731   :  { %6882 = vpow2.f32 %v5905_v23 }
0x173a   :  { %v6881_v6 = vpop.eup %6880 }
0x173b   :  { %4046 = vrot.lane.b32.xlu1 %v6881_v6, %s7440_s5  ;;  %v6883_v52 = vpop.eup %6882 }
0x173c   :  { %v4024_v29 = vadd.f32 1.0, %v6883_v52  ;;  %v6790_v52 = vld [vmem:[%s9008_s16] ss:$8 sps:$4 sm:$0xff]  }
0x173e   :  { %6884 = vrcp.f32 %v4024_v29  ;;  %v6795_v29 = vld [vmem:[%s9008_s16 + $0x14] ss:$8 sps:$4 sm:$0xff]  }
0x1748   :  { %v6885_v2 = vpop.eup %6884 }
0x17ad   :  { %v4047_v56 = vpop.permute.xlu1 %4046 }
0x17ae   :  { %v4049_v30 = vmul.f32 %v6885_v2, %v4047_v56  ;;  %v6793_v2 = vld [vmem:[%s9008_s16 + $0x10] ss:$8 sps:$4 sm:$0xff]   ;;  %v6798_v56 = vld [vmem:[%s9008_s16 + $0x24] ss:$8 sps:$4 sm:$0xff]  }
0x17b0   :  { %v4051_v27 = vrot.slane %v4049_v30, 4  ;;  %v4173_v60 = vsel %vm4168_vm5, %v4172_v37, %v4049_v30  ;;  %v4178_v31 = vrot.slane %v4049_v30, 2  ;;  %v6796_v30 = vld [vmem:[%s9008_s16 + $0x20] ss:$8 sps:$4 sm:$0xff]   ;;  %v6801_v37 = vld [vmem:[%s9008_s16 + $0x34] ss:$8 sps:$4 sm:$0xff]  }
0x17b2   :  { %5906 = vmatmul.mubr.msk.f32.vlgmr.msra.gmra.mrb[22].mxu1 %vm3255_vm15, %v4051_v27  ;;  %v6799_v27 = vld [vmem:[%s9008_s16 + $0x30] ss:$8 sps:$4 sm:$0xff]  }
0x17b3   :  { %4415 = vmatprep.mubr.f32.mxu1 %v7439_v8 }
0x1885   :  { %v4120_v22 = vpop.f32.mrb[22].mxu1 }
0x1886   :  { %v4122_v1 = vpop.f32.mrb[23].mxu1  ;;  %v4127_v13 = vrot.slane %v4120_v22, 2 }
0x1887   :  { %v4128_v11 = vrot.slane %v4122_v1, 2 }
0x1888   :  { %v4131_v32 = vadd.f32 %v4127_v13, %v8641_v26 }
0x1889   :  { %v4132_v38 = vadd.f32 %v4128_v11, %v8633_v39 }
0x188a   :  { %v5907_v41 = vmul.f32 -1.442695, %v4131_v32 }
0x188b   :  { %6886 = vtanh.f32 %v4132_v38  ;;  %v5908_v16 = vmul.f32 -1.442695, %v4132_v38 }
0x188c   :  { %6888 = vpow2.f32 %v5907_v41  ;;  %v5909_v41 = vld [vmem:[%s9006_s14] ss:$0 sm:$0xff] }
0x1895   :  { %v6887_v20 = vpop.eup %6886 }
0x1896   :  { %4151 = vrot.lane.b32.xlu0 %v6887_v20, %s7440_s5  ;;  %v6889_v14 = vpop.eup %6888 }
0x1897   :  { %v4139_v49 = vadd.f32 1.0, %v6889_v14 }
0x1899   :  { %6890 = vrcp.f32 %v4139_v49 }
0x18a3   :  { %v6891_v44 = vpop.eup %6890 }
0x18a4   :  { %v4149_v40 = vmul.f32 %v6891_v44, %v4147_v7 }
0x1908   :  { %v4152_v50 = vpop.permute.xlu0 %4151 }
0x1909   :  { %v4154_v18 = vmul.f32 %v6891_v44, %v4152_v50  ;;  %v5910_v50 = vld [vmem:[#allocation20] ss:$0 sm:$0xff] }
0x190b   :  { %4156 = vrot.lane.b32.xlu1 %v4154_v18, %s7440_s5 }
0x197d   :  { %v4157_v39 = vpop.permute.xlu1 %4156 }
0x197e   :  { %v4159_v21 = vadd.f32 %v4157_v39, %v4149_v40 }
0x1980   :  { %6892 = vtanh.f32 %v4159_v21  ;;  %v4433_v21 = vld [vmem:[#allocation23 + $0x8] sm:$0xff] }
0x1981   :  { %6894 = vpow2.f32 %v5908_v16 }
0x198a   :  { %v6893_v51 = vpop.eup %6892 }
0x198b   :  { %4162 = vrot.lane.b32.xlu0 %v6893_v51, %s7440_s5  ;;  %v6895_v26 = vpop.eup %6894  ;;  %v4435_v51 = vld [vmem:[#allocation23 + $0x18] sm:$0xff] }
0x198c   :  { %v4140_v47 = vadd.f32 1.0, %v6895_v26  ;;  %v8729_v16 = vpack.c.bf16 %v4435_v51, %v4433_v21  ;;  %v4432_v26 = vld [vmem:[#allocation23] sm:$0xff] }
0x198e   :  { %6896 = vrcp.f32 %v4140_v47  ;;  %v4434_v47 = vld [vmem:[#allocation23 + $0x10] sm:$0xff] }
0x1998   :  { %v6897_v36 = vpop.eup %6896 }
0x19fd   :  { %v4163_v12 = vpop.permute.xlu0 %4162 }
0x19fe   :  { %v4165_v62 = vmul.f32 %v6897_v36, %v4163_v12  ;;  %v8731_v36 = vpack.c.bf16 %v4434_v47, %v4432_v26  ;;  %v4437_v12 = vld [vmem:[#allocation23 + $0x28] sm:$0xff] }
0x1a00   :  { %v4176_v24 = vrot.slane %v4165_v62, 6  ;;  %v4174_v61 = vsel %vm4170_vm6, %v4173_v60, %v4165_v62  ;;  %v8735_v62 = vpack.c.bf16 %v4439_v5, %v4437_v12 }
0x1a01   :  { %v4198_v25 = vsel %vm9100_vm8, %v4174_v61, %v4196_v59  ;;  %v4441_v59 = vld [vmem:[#allocation23 + $0x48] sm:$0xff] }
0x1a02   :  { %v4191_v19 = vsel %vm4166_vm2, %v4176_v24, %v4178_v31  ;;  %v4202_v10 = vsel %vm3255_vm15, %v4198_v25, 0.0  ;;  %v4436_v31 = vld [vmem:[#allocation23 + $0x20] sm:$0xff]  ;;  %v4438_v24 = vld [vmem:[#allocation23 + $0x30] sm:$0xff] }
0x1a03   :  { %4203 = vadd.xlane.f32.xlu0 %v4202_v10  ;;  %v4192_v42 = vsel %vm4168_vm5, %v4191_v19, %v4180_v28  ;;  %v8737_v61 = vpack.c.bf16 %v4438_v24, %v4436_v31  ;;  %v4443_v28 = vld [vmem:[#allocation23 + $0x58] sm:$0xff]  ;;  %v4442_v19 = vld [vmem:[#allocation23 + $0x50] sm:$0xff] }
0x1a04   :  { %v4193_v57 = vsel %vm4170_vm6, %v4192_v42, %v4182_v45  ;;  %v4440_v45 = vld [vmem:[#allocation23 + $0x40] sm:$0xff]  ;;  %v4445_v42 = vld [vmem:[#allocation23 + $0x68] sm:$0xff] }
0x1a05   :  { %v4197_v63 = vsel %vm9101_vm10, %v8613_v17, %v4193_v57  ;;  %v6792_v17 = vld [vmem:[%s9008_s16 + $0x4] ss:$8 sps:$4 sm:$0xff]   ;;  %v8744_v10 = vpack.c.bf16 %v4442_v19, %v4440_v45  ;;  %v4447_v57 = vld [vmem:[#allocation23 + $0x78] sm:$0xff] }
0x1a06   :  { %v4199_v48 = vsel %vm3255_vm15, %v4197_v63, 0.0  ;;  %4308 = vmatprep.subr.bf16.mxu0 %v6792_v17 }
0x1a07   :  { %4200 = vadd.xlane.f32.xlu1 %v4199_v48  ;;  %4309 = vmatpush1.bf16.msra.mxu0 %v6790_v52  ;;  %v4444_v48 = vld [vmem:[#allocation23 + $0x60] sm:$0xff] }
0x1a08   :  { %4310 = vmatprep.subr.bf16.mxu0 %v6795_v29 }
0x1a0b   :  { %4311 = vmatpush1.bf16.msra.mxu0 %v6793_v2 }
0x1a0c   :  { %4312 = vmatprep.subr.bf16.mxu0 %v6798_v56 }
0x1a0f   :  { %4313 = vmatpush1.bf16.msra.mxu0 %v6796_v30 }
0x1a10   :  { %4314 = vmatprep.subr.bf16.mxu0 %v6801_v37 }
0x1a13   :  { %4315 = vmatpush1.bf16.msra.mxu0 %v6799_v27 }
0x1a14   :  { %6183 = vmatprep.subr.bf16.mxu0 %v8729_v16 }
0x1a90   :  { %v4204_v58 = vpop.xlane.xlu0 %4203 }
0x1a91   :  { %v4207_v15 = vmul.f32 0.015625, %v4204_v58  ;;  %v4446_v58 = vld [vmem:[#allocation23 + $0x70] sm:$0xff] }
0x1a93   :  { %v4209_v0 = vsub.f32 %v4198_v25, %v4207_v15  ;;  %v8739_v25 = vpack.c.bf16 %v4443_v28, %v4441_v59  ;;  %v8750_v15 = vpack.c.bf16 %v4446_v58, %v4444_v48 }
0x1a94   :  { %v4201_v53 = vpop.xlane.xlu1 %4200 }
0x1a95   :  { %v4206_v9 = vmul.f32 0.015625, %v4201_v53  ;;  %v4211_v54 = vmul.f32 %v4209_v0, %v4209_v0 }
0x1a97   :  { %v4208_v3 = vsub.f32 %v4197_v63, %v4206_v9  ;;  %v4215_v4 = vsel %vm3255_vm15, %v4211_v54, 0.0  ;;  %v8746_v63 = vpack.c.bf16 %v4447_v57, %v4445_v42 }
0x1a98   :  { %4216 = vadd.xlane.f32.xlu1 %v4215_v4 }
0x1a99   :  { %v4210_v6 = vmul.f32 %v4208_v3, %v4208_v3 }
0x1a9b   :  { %v4212_v23 = vsel %vm3255_vm15, %v4210_v6, 0.0 }
0x1a9c   :  { %4213 = vadd.xlane.f32.xlu0 %v4212_v23 }
0x1b25   :  { %v4217_v60 = vpop.xlane.xlu1 %4216 }
0x1b26   :  { %v4219_v22 = vmul.f32 0.015625, %v4217_v60 }
0x1b28   :  { %v4221_v1 = vadd.f32 1e-05, %v4219_v22 }
0x1b29   :  { %v4214_v11 = vpop.xlane.xlu0 %4213 }
0x1b2a   :  { %6898 = vrsqrt.f32 %v4221_v1  ;;  %v4218_v38 = vmul.f32 0.015625, %v4214_v11 }
0x1b2c   :  { %v4220_v20 = vadd.f32 1e-05, %v4218_v38 }
0x1b2e   :  { %6900 = vrsqrt.f32 %v4220_v20 }
0x1b34   :  { %v6899_v13 = vpop.eup %6898 }
0x1b35   :  { %v4225_v32 = vmul.f32 %v6899_v13, %v4209_v0  ;;  %v4253_v0 = vld [vmem:[#allocation22] sm:$0x3] }
0x1b36   :  { %v4262_v9 = vrot.slane %v4253_v0, %v7918_v43  ;;  %v4258_v54 = vrot.slane %v4253_v0, %v7921_v46 }
0x1b37   :  { %v4234_v49 = vmul.f32 %v5909_v41, %v4225_v32 }
0x1b38   :  { %v6901_v14 = vpop.eup %6900 }
0x1b39   :  { %v4224_v44 = vmul.f32 %v6901_v14, %v4208_v3  ;;  %v4243_v40 = vadd.f32 %v5910_v50, %v4234_v49 }
0x1b3b   :  { %v4233_v18 = vmul.f32 %v5909_v41, %v4224_v44 }
0x1b3d   :  { %v4242_v7 = vadd.f32 %v5910_v50, %v4233_v18 }
0x1b3f   :  { %v4244_v39 = vpack.c.bf16 %v4243_v40, %v4242_v7 }
0x1b41   :  { %5919 = vmatmul.mubr.msk.bf16.vlgmr.msra.gmra.mrb[32].mxu0 %vm3255_vm15, %v4244_v39 }
0x1b42   :  { %4618 = vmatprep.mubr.f32.mxu0 %v7439_v8  ;;  %6185 = vmatpush1.bf16.msra.mxu0 %v8731_v36 }
0x1b43   :  { %6187 = vmatprep.subr.bf16.mxu0 %v8735_v62 }
0x1b46   :  { %6189 = vmatpush1.bf16.msra.mxu0 %v8737_v61 }
0x1b47   :  { %6191 = vmatprep.subr.bf16.mxu0 %v8739_v25 }
0x1b4a   :  { %6193 = vmatpush1.bf16.msra.mxu0 %v8744_v10 }
0x1b4b   :  { %6195 = vmatprep.subr.bf16.mxu0 %v8746_v63 }
0x1b4e   :  { %6197 = vmatpush1.bf16.msra.mxu0 %v8750_v15 }
0x1b4f   :  { %6215 = vmatprep.subr.bf16.mxu0 %v8729_v16 }
0x1c14   :  { %v4342_v53 = vpop.f32.mrb[32].mxu0 }
0x1c15   :  { %v4344_v3 = vpop.f32.mrb[33].mxu0  ;;  %v4343_v29 = vadd.f32 %v4342_v53, %v4258_v54 }
0x1c16   :  { %v4346_v4 = vpop.f32.mrb[34].mxu0  ;;  %v4345_v17 = vadd.f32 %v4344_v3, %v4262_v9 }
0x1c17   :  { %v8756_v6 = vadd.f32 %v4346_v4, %v4258_v54  ;;  %v4348_v23 = vpop.f32.mrb[35].mxu0 }
0x1c18   :  { %v8758_v52 = vadd.f32 %v4348_v23, %v4262_v9 }
0x1c19   :  { %v6164_v56 = vpack.c.bf16 %v8756_v6, %v4343_v29 }
0x1c1a   :  { %v6162_v2 = vpack.c.bf16 %v8758_v52, %v4345_v17 }
0x1c1c   :  { %6163 = vmatprep.subr.bf16.mxu1 %v6162_v2 }
0x1c1d   :  { %6165 = vmatpush1.bf16.msra.mxu1 %v6164_v56 }
0x1c1e   :  { %6167 = vmatprep.subr.bf16.mxu1 %v8729_v16 }
0x1c20   :  { %5920 = vmatmul.mubr.msk.f32.vlgmr.msra.gmra.mrb[24].mxu1 %vm3151_vm4, %v8498_v34 }
0x1c21   :  { %6169 = vmatpush1.bf16.msra.mxu1 %v8731_v36  ;;  %4421 = vmatprep.mubr.f32.mxu1 %v7439_v8 }
0x1c22   :  { %6171 = vmatprep.subr.bf16.mxu1 %v8735_v62 }
0x1c24   :  { %5921 = vmatmul.mubr.msk.f32.gmra.mrb[26].mxu1 %vm3151_vm4, %v8508_v35 }
0x1c25   :  { %6173 = vmatpush1.bf16.msra.mxu1 %v8737_v61  ;;  %4512 = vmatprep.mubr.f32.mxu1 %v7439_v8 }
0x1c26   :  { %6175 = vmatprep.subr.bf16.mxu1 %v8739_v25 }
0x1c29   :  { %6177 = vmatpush1.bf16.msra.mxu1 %v8744_v10 }
0x1c2a   :  { %6179 = vmatprep.subr.bf16.mxu1 %v8746_v63 }
0x1c2d   :  { %6181 = vmatpush1.bf16.msra.mxu1 %v8750_v15 }
0x1c2e   :  { %6199 = vmatprep.subr.bf16.mxu1 %v8729_v16 }
0x1c30   :  { %4513 = vmatmul.mubr.f32.vlgmr.msra.gmra.mrb[28].mxu1 %v7439_v8 }
0x1c31   :  { %6201 = vmatpush1.bf16.msra.mxu1 %v8731_v36  ;;  %4734 = vmatprep.mubr.f32.mxu1 %v7439_v8 }
0x1c32   :  { %6203 = vmatprep.subr.bf16.mxu1 %v8735_v62 }
0x1c35   :  { %6205 = vmatpush1.bf16.msra.mxu1 %v8737_v61 }
0x1c36   :  { %6207 = vmatprep.subr.bf16.mxu1 %v8739_v25 }
0x1c39   :  { %6209 = vmatpush1.bf16.msra.mxu1 %v8744_v10 }
0x1c3a   :  { %6211 = vmatprep.subr.bf16.mxu1 %v8746_v63 }
0x1c3d   :  { %6213 = vmatpush1.bf16.msra.mxu1 %v8750_v15 }
0x1c3e   :  { %6231 = vmatprep.subr.bf16.mxu1 %v8729_v16 }
0x1cf3   :  { %v4417_v43 = vpop.f32.mrb[24].mxu1 }
0x1cf4   :  { %v4419_v46 = vpop.f32.mrb[25].mxu1  ;;  %v8799_v1 = vsel %vm8546_vm12, %v4343_v29, %v4417_v43 }
0x1cf5   :  { %v8793_v37 = vsel %vm8535_vm9, %v4345_v17, %v4419_v46 }
0x1cf7   :  { %v8787_v34 = vpop.f32.mrb[26].mxu1 }
0x1cf8   :  { %v8789_v35 = vpop.f32.mrb[27].mxu1 }
0x1d03   :  { %v4514_v30 = vpop.f32.mrb[28].mxu1 }
0x1d04   :  { %v4516_v27 = vpop.f32.mrb[29].mxu1  ;;  %v4519_v11 = vadd.f32 %v4514_v30, %v8799_v1 }
0x1d05   :  { %v4520_v60 = vadd.f32 %v4516_v27, %v8793_v37 }
0x1d06   :  { %v5922_v38 = vmul.f32 -1.442695, %v4519_v11 }
0x1d07   :  { %6902 = vtanh.f32 %v4520_v60  ;;  %v5923_v7 = vmul.f32 -1.442695, %v4520_v60 }
0x1d08   :  { %6904 = vpow2.f32 %v5922_v38 }
0x1d11   :  { %v6903_v22 = vpop.eup %6902 }
0x1d12   :  { %4536 = vrot.lane.b32.xlu0 %v6903_v22, %s7440_s5  ;;  %v6905_v20 = vpop.eup %6904 }
0x1d13   :  { %v4527_v13 = vadd.f32 1.0, %v6905_v20 }
0x1d15   :  { %6906 = vrcp.f32 %v4527_v13 }
0x1d1f   :  { %v6907_v32 = vpop.eup %6906 }
0x1d20   :  { %v4534_v49 = vmul.f32 0.0, %v6907_v32 }
0x1d84   :  { %v4537_v41 = vpop.permute.xlu0 %4536 }
0x1d85   :  { %v4539_v14 = vmul.f32 %v6907_v32, %v4537_v41 }
0x1d87   :  { %4541 = vrot.lane.b32.xlu1 %v4539_v14, %s7440_s5 }
0x1df9   :  { %v4542_v44 = vpop.permute.xlu1 %4541 }
0x1dfa   :  { %v4544_v50 = vadd.f32 %v4542_v44, %v4534_v49 }
0x1dfc   :  { %6908 = vtanh.f32 %v4544_v50  ;;  %v4647_v0 = vrot.slane %v4544_v50, 6 }
0x1dfd   :  { %6910 = vpow2.f32 %v5923_v7 }
0x1e06   :  { %v6909_v18 = vpop.eup %6908 }
0x1e07   :  { %4547 = vrot.lane.b32.xlu1 %v6909_v18, %s7440_s5  ;;  %v6911_v40 = vpop.eup %6910 }
0x1e08   :  { %v4528_v39 = vadd.f32 1.0, %v6911_v40 }
0x1e0a   :  { %6912 = vrcp.f32 %v4528_v39 }
0x1e14   :  { %v6913_v21 = vpop.eup %6912 }
0x1e79   :  { %v4548_v51 = vpop.permute.xlu1 %4547 }
0x1e7a   :  { %v8804_v26 = vmul.f32 %v6913_v21, %v4548_v51 }
0x1e7c   :  { %5924 = vmatmul.mubr.msk.f32.vlgmr.msra.gmra.mrb[30].mxu0 %vm3255_vm15, %v8804_v26 }
0x1e7d   :  { %6217 = vmatpush1.bf16.msra.mxu0 %v8731_v36  ;;  %4850 = vmatprep.mubr.f32.mxu0 %v7439_v8 }
0x1e7e   :  { %6219 = vmatprep.subr.bf16.mxu0 %v8735_v62 }
0x1e81   :  { %6221 = vmatpush1.bf16.msra.mxu0 %v8737_v61 }
0x1e82   :  { %6223 = vmatprep.subr.bf16.mxu0 %v8739_v25 }
0x1e85   :  { %6225 = vmatpush1.bf16.msra.mxu0 %v8744_v10 }
0x1e86   :  { %6227 = vmatprep.subr.bf16.mxu0 %v8746_v63 }
0x1e89   :  { %6229 = vmatpush1.bf16.msra.mxu0 %v8750_v15 }
0x1e8a   :  { %6247 = vmatprep.subr.bf16.mxu0 %v8729_v16 }
0x1f4f   :  { %v4620_v47 = vpop.f32.mrb[30].mxu0 }
0x1f50   :  { %v4622_v12 = vpop.f32.mrb[31].mxu0  ;;  %v4627_v59 = vrot.slane %v4620_v47, 6 }
0x1f51   :  { %v4628_v5 = vrot.slane %v4622_v12, 6 }
0x1f52   :  { %v4631_v28 = vadd.f32 %v4627_v59, %v8799_v1 }
0x1f53   :  { %v4632_v31 = vadd.f32 %v4628_v5, %v8793_v37 }
0x1f54   :  { %v5925_v45 = vmul.f32 -1.442695, %v4631_v28 }
0x1f55   :  { %6914 = vtanh.f32 %v4632_v31  ;;  %v5926_v4 = vmul.f32 -1.442695, %v4632_v31 }
0x1f56   :  { %6916 = vpow2.f32 %v5925_v45 }
0x1f5f   :  { %v6915_v24 = vpop.eup %6914 }
0x1f60   :  { %4651 = vrot.lane.b32.xlu0 %v6915_v24, %s7440_s5  ;;  %v6917_v19 = vpop.eup %6916 }
0x1f61   :  { %v4639_v42 = vadd.f32 1.0, %v6917_v19 }
0x1f63   :  { %6918 = vrcp.f32 %v4639_v42 }
0x1f6d   :  { %v6919_v57 = vpop.eup %6918 }
0x1f6e   :  { %v4649_v53 = vmul.f32 %v6919_v57, %v4647_v0 }
0x1fd2   :  { %v4652_v48 = vpop.permute.xlu0 %4651 }
0x1fd3   :  { %v4654_v58 = vmul.f32 %v6919_v57, %v4652_v48 }
0x1fd5   :  { %4656 = vrot.lane.b32.xlu1 %v4654_v58, %s7440_s5 }
0x2047   :  { %v4657_v9 = vpop.permute.xlu1 %4656 }
0x2048   :  { %v4659_v54 = vadd.f32 %v4657_v9, %v4649_v53 }
0x204a   :  { %6920 = vtanh.f32 %v4659_v54  ;;  %v4763_v44 = vrot.slane %v4659_v54, 6 }
0x204b   :  { %6922 = vpow2.f32 %v5926_v4 }
0x2054   :  { %v6921_v3 = vpop.eup %6920 }
0x2055   :  { %4662 = vrot.lane.b32.xlu0 %v6921_v3, %s7440_s5  ;;  %v6923_v23 = vpop.eup %6922 }
0x2056   :  { %v4640_v17 = vadd.f32 1.0, %v6923_v23 }
0x2058   :  { %6924 = vrcp.f32 %v4640_v17 }
0x2062   :  { %v6925_v29 = vpop.eup %6924 }
0x20c7   :  { %v4663_v2 = vpop.permute.xlu0 %4662 }
0x20c8   :  { %v8822_v56 = vmul.f32 %v6925_v29, %v4663_v2 }
0x20ca   :  { %v4667_v43 = vrot.slane %v8822_v56, 2  ;;  %v5355_v31 = vsel %vm4166_vm2, %v8804_v26, %v8822_v56 }
0x20cc   :  { %5927 = vmatmul.mubr.msk.f32.vlgmr.msra.gmra.mrb[30].mxu1 %vm3255_vm15, %v4667_v43 }
0x20cd   :  { %6233 = vmatpush1.bf16.msra.mxu1 %v8731_v36  ;;  %4966 = vmatprep.mubr.f32.mxu1 %v7439_v8 }
0x20ce   :  { %6235 = vmatprep.subr.bf16.mxu1 %v8735_v62 }
0x20d1   :  { %6237 = vmatpush1.bf16.msra.mxu1 %v8737_v61 }
0x20d2   :  { %6239 = vmatprep.subr.bf16.mxu1 %v8739_v25 }
0x20d5   :  { %6241 = vmatpush1.bf16.msra.mxu1 %v8744_v10 }
0x20d6   :  { %6243 = vmatprep.subr.bf16.mxu1 %v8746_v63 }
0x20d9   :  { %6245 = vmatpush1.bf16.msra.mxu1 %v8750_v15 }
0x20da   :  { %6263 = vmatprep.subr.bf16.mxu1 %v8729_v16 }
0x219f   :  { %v4736_v46 = vpop.f32.mrb[30].mxu1 }
0x21a0   :  { %v4738_v30 = vpop.f32.mrb[31].mxu1  ;;  %v4743_v11 = vrot.slane %v4736_v46, 4 }
0x21a1   :  { %v4744_v27 = vrot.slane %v4738_v30, 4 }
0x21a2   :  { %v4747_v38 = vadd.f32 %v4743_v11, %v8799_v1 }
0x21a3   :  { %v4748_v60 = vadd.f32 %v4744_v27, %v8793_v37 }
0x21a4   :  { %v5928_v20 = vmul.f32 -1.442695, %v4747_v38  ;;  %v5373_v38 = vrot.slane %v8822_v56, 6 }
0x21a5   :  { %6926 = vtanh.f32 %v4748_v60  ;;  %v5929_v39 = vmul.f32 -1.442695, %v4748_v60 }
0x21a6   :  { %6928 = vpow2.f32 %v5928_v20 }
0x21af   :  { %v6927_v22 = vpop.eup %6926 }
0x21b0   :  { %4767 = vrot.lane.b32.xlu1 %v6927_v22, %s7440_s5  ;;  %v6929_v13 = vpop.eup %6928 }
0x21b1   :  { %v4755_v32 = vadd.f32 1.0, %v6929_v13 }
0x21b3   :  { %6930 = vrcp.f32 %v4755_v32  ;;  %v8880_v32 = vsel %vm8535_vm9, %v8758_v52, %v8789_v35 }
0x21bd   :  { %v6931_v41 = vpop.eup %6930 }
0x21be   :  { %v4765_v50 = vmul.f32 %v6931_v41, %v4763_v44  ;;  %v8888_v44 = vsel %vm8546_vm12, %v8756_v6, %v8787_v34 }
0x2222   :  { %v4768_v14 = vpop.permute.xlu1 %4767 }
0x2223   :  { %v4770_v49 = vmul.f32 %v6931_v41, %v4768_v14 }
0x2225   :  { %4772 = vrot.lane.b32.xlu0 %v4770_v49, %s7440_s5 }
0x2297   :  { %v4773_v18 = vpop.permute.xlu0 %4772 }
0x2298   :  { %v4775_v7 = vadd.f32 %v4773_v18, %v4765_v50 }
0x229a   :  { %6932 = vtanh.f32 %v4775_v7  ;;  %v4879_v4 = vrot.slane %v4775_v7, 6 }
0x229b   :  { %6934 = vpow2.f32 %v5929_v39 }
0x22a4   :  { %v6933_v40 = vpop.eup %6932 }
0x22a5   :  { %4778 = vrot.lane.b32.xlu1 %v6933_v40, %s7440_s5  ;;  %v6935_v21 = vpop.eup %6934 }
0x22a6   :  { %v4756_v51 = vadd.f32 1.0, %v6935_v21 }
0x22a8   :  { %6936 = vrcp.f32 %v4756_v51 }
0x22b2   :  { %v6937_v47 = vpop.eup %6936 }
0x2317   :  { %v4779_v12 = vpop.permute.xlu1 %4778 }
0x2318   :  { %v4781_v5 = vmul.f32 %v6937_v47, %v4779_v12 }
0x231a   :  { %v4783_v24 = vrot.slane %v4781_v5, 4  ;;  %v5356_v59 = vsel %vm4168_vm5, %v5355_v31, %v4781_v5  ;;  %v5371_v60 = vrot.slane %v4781_v5, 2 }
0x231c   :  { %5930 = vmatmul.mubr.msk.f32.vlgmr.msra.gmra.mrb[36].mxu0 %vm3255_vm15, %v4783_v24 }
0x231d   :  { %6249 = vmatpush1.bf16.msra.mxu0 %v8731_v36  ;;  %5075 = vmatprep.mubr.f32.mxu0 %v7439_v8 }
0x231e   :  { %6251 = vmatprep.subr.bf16.mxu0 %v8735_v62 }
0x2321   :  { %6253 = vmatpush1.bf16.msra.mxu0 %v8737_v61 }
0x2322   :  { %6255 = vmatprep.subr.bf16.mxu0 %v8739_v25 }
0x2325   :  { %6257 = vmatpush1.bf16.msra.mxu0 %v8744_v10 }
0x2326   :  { %6259 = vmatprep.subr.bf16.mxu0 %v8746_v63 }
0x2329   :  { %6261 = vmatpush1.bf16.msra.mxu0 %v8750_v15 }
0x232a   :  { %6279 = vmatprep.subr.bf16.mxu0 %v8729_v16 }
0x23ef   :  { %v4852_v28 = vpop.f32.mrb[36].mxu0 }
0x23f0   :  { %v4854_v45 = vpop.f32.mrb[37].mxu0  ;;  %v4859_v48 = vrot.slane %v4852_v28, 2 }
0x23f1   :  { %v4860_v19 = vrot.slane %v4854_v45, 2 }
0x23f2   :  { %v4863_v58 = vadd.f32 %v4859_v48, %v8799_v1 }
0x23f3   :  { %v4864_v42 = vadd.f32 %v4860_v19, %v8793_v37 }
0x23f4   :  { %v5931_v0 = vmul.f32 -1.442695, %v4863_v58 }
0x23f5   :  { %6938 = vtanh.f32 %v4864_v42  ;;  %v5932_v2 = vmul.f32 -1.442695, %v4864_v42 }
0x23f6   :  { %6940 = vpow2.f32 %v5931_v0 }
0x23ff   :  { %v6939_v57 = vpop.eup %6938 }
0x2400   :  { %4883 = vrot.lane.b32.xlu0 %v6939_v57, %s7440_s5  ;;  %v6941_v53 = vpop.eup %6940 }
0x2401   :  { %v4871_v9 = vadd.f32 1.0, %v6941_v53 }
0x2403   :  { %6942 = vrcp.f32 %v4871_v9 }
0x240d   :  { %v6943_v54 = vpop.eup %6942 }
0x240e   :  { %v4881_v23 = vmul.f32 %v6943_v54, %v4879_v4 }
0x2472   :  { %v4884_v3 = vpop.permute.xlu0 %4883 }
0x2473   :  { %v4886_v16 = vmul.f32 %v6943_v54, %v4884_v3 }
0x2475   :  { %4888 = vrot.lane.b32.xlu1 %v4886_v16, %s7440_s5 }
0x24e7   :  { %v4889_v37 = vpop.permute.xlu1 %4888 }
0x24e8   :  { %v4891_v17 = vadd.f32 %v4889_v37, %v4881_v23 }
0x24ea   :  { %6944 = vtanh.f32 %v4891_v17  ;;  %v4989_v39 = vrot.slane %v4891_v17, 6 }
0x24eb   :  { %6946 = vpow2.f32 %v5932_v2 }
0x24f4   :  { %v6945_v29 = vpop.eup %6944 }
0x24f5   :  { %4894 = vrot.lane.b32.xlu0 %v6945_v29, %s7440_s5  ;;  %v6947_v1 = vpop.eup %6946 }
0x24f6   :  { %v4872_v43 = vadd.f32 1.0, %v6947_v1 }
0x24f8   :  { %6948 = vrcp.f32 %v4872_v43 }
0x2502   :  { %v6949_v46 = vpop.eup %6948 }
0x2567   :  { %v4895_v30 = vpop.permute.xlu0 %4894 }
0x2568   :  { %v4897_v27 = vmul.f32 %v6949_v46, %v4895_v30 }
0x256a   :  { %v4899_v22 = vrot.slane %v4897_v27, 6  ;;  %v8860_v11 = vsel %vm4170_vm6, %v5356_v59, %v4897_v27 }
0x256c   :  { %v5380_v20 = vsel %vm4166_vm2, %v4899_v22, %v5371_v60  ;;  %5933 = vmatmul.mubr.msk.f32.vlgmr.msra.gmra.mrb[32].mxu1 %vm3255_vm15, %v4899_v22 }
0x256d   :  { %v8866_v13 = vsel %vm4168_vm5, %v5380_v20, %v5373_v38  ;;  %6265 = vmatpush1.bf16.msra.mxu1 %v8731_v36  ;;  %5191 = vmatprep.mubr.f32.mxu1 %v7439_v8 }
0x256e   :  { %6267 = vmatprep.subr.bf16.mxu1 %v8735_v62 }
0x2571   :  { %6269 = vmatpush1.bf16.msra.mxu1 %v8737_v61 }
0x2572   :  { %6271 = vmatprep.subr.bf16.mxu1 %v8739_v25 }
0x2575   :  { %6273 = vmatpush1.bf16.msra.mxu1 %v8744_v10 }
0x2576   :  { %6275 = vmatprep.subr.bf16.mxu1 %v8746_v63 }
0x2579   :  { %6277 = vmatpush1.bf16.msra.mxu1 %v8750_v15 }
0x263f   :  { %v4968_v56 = vpop.f32.mrb[32].mxu1 }
0x2640   :  { %v4970_v41 = vpop.f32.mrb[33].mxu1  ;;  %v4973_v50 = vadd.f32 %v4968_v56, %v8888_v44 }
0x2641   :  { %v4974_v14 = vadd.f32 %v4970_v41, %v8880_v32 }
0x2642   :  { %v5934_v18 = vmul.f32 -1.442695, %v4973_v50 }
0x2643   :  { %6950 = vtanh.f32 %v4974_v14  ;;  %v5935_v6 = vmul.f32 -1.442695, %v4974_v14 }
0x2644   :  { %6952 = vpow2.f32 %v5934_v18 }
0x264d   :  { %v6951_v49 = vpop.eup %6950 }
0x264e   :  { %4993 = vrot.lane.b32.xlu1 %v6951_v49, %s7440_s5  ;;  %v6953_v55 = vpop.eup %6952 }
0x264f   :  { %v4981_v52 = vadd.f32 1.0, %v6953_v55 }
0x2651   :  { %6954 = vrcp.f32 %v4981_v52 }
0x265b   :  { %v6955_v35 = vpop.eup %6954 }
0x265c   :  { %v4991_v21 = vmul.f32 %v6955_v35, %v4989_v39 }
0x26c0   :  { %v4994_v7 = vpop.permute.xlu1 %4993 }
0x26c1   :  { %v4996_v40 = vmul.f32 %v6955_v35, %v4994_v7 }
0x26c3   :  { %4998 = vrot.lane.b32.xlu0 %v4996_v40, %s7440_s5 }
0x2735   :  { %v4999_v51 = vpop.permute.xlu0 %4998 }
0x2736   :  { %v5001_v47 = vadd.f32 %v4999_v51, %v4991_v21 }
0x2738   :  { %6956 = vtanh.f32 %v5001_v47  ;;  %v5104_v57 = vrot.slane %v5001_v47, 6 }
0x2739   :  { %6958 = vpow2.f32 %v5935_v6 }
0x2742   :  { %v6957_v33 = vpop.eup %6956 }
0x2743   :  { %5004 = vrot.lane.b32.xlu1 %v6957_v33, %s7440_s5  ;;  %v6959_v34 = vpop.eup %6958 }
0x2744   :  { %v4982_v12 = vadd.f32 1.0, %v6959_v34 }
0x2746   :  { %6960 = vrcp.f32 %v4982_v12 }
0x2750   :  { %v6961_v5 = vpop.eup %6960 }
0x27b5   :  { %v5005_v31 = vpop.permute.xlu1 %5004 }
0x27b6   :  { %v8893_v24 = vmul.f32 %v6961_v5, %v5005_v31 }
0x27b8   :  { %5936 = vmatmul.mubr.msk.f32.vlgmr.msra.gmra.mrb[38].mxu0 %vm3255_vm15, %v8893_v24 }
0x27b9   :  { %6281 = vmatpush1.bf16.msra.mxu0 %v8731_v36  ;;  %5307 = vmatprep.mubr.f32.mxu0 %v7439_v8 }
0x27ba   :  { %6283 = vmatprep.subr.bf16.mxu0 %v8735_v62 }
0x27bd   :  { %6285 = vmatpush1.bf16.msra.mxu0 %v8737_v61 }
0x27be   :  { %6287 = vmatprep.subr.bf16.mxu0 %v8739_v25 }
0x27c1   :  { %6289 = vmatpush1.bf16.msra.mxu0 %v8744_v10 }
0x27c2   :  { %6291 = vmatprep.subr.bf16.mxu0 %v8746_v63 }
0x27c5   :  { %6293 = vmatpush1.bf16.msra.mxu0 %v8750_v15 }
0x288b   :  { %v5077_v59 = vpop.f32.mrb[38].mxu0 }
0x288c   :  { %v5079_v28 = vpop.f32.mrb[39].mxu0  ;;  %v5084_v8 = vrot.slane %v5077_v59, 6 }
0x288d   :  { %v5085_v45 = vrot.slane %v5079_v28, 6 }
0x288e   :  { %v5088_v62 = vadd.f32 %v5084_v8, %v8888_v44 }
0x288f   :  { %v5089_v19 = vadd.f32 %v5085_v45, %v8880_v32 }
0x2890   :  { %v5937_v61 = vmul.f32 -1.442695, %v5088_v62 }
0x2891   :  { %6962 = vtanh.f32 %v5089_v19  ;;  %v5938_v9 = vmul.f32 -1.442695, %v5089_v19 }
0x2892   :  { %6964 = vpow2.f32 %v5937_v61  ;;  %v5386_v61 = vld [vmem:[%s9011_s19 + $0x8] sm:$0xff] }
0x289b   :  { %v6963_v36 = vpop.eup %6962 }
0x289c   :  { %5108 = vrot.lane.b32.xlu0 %v6963_v36, %s7440_s5  ;;  %v6965_v25 = vpop.eup %6964 }
0x289d   :  { %v5096_v10 = vadd.f32 1.0, %v6965_v25 }
0x289f   :  { %6966 = vrcp.f32 %v5096_v10  ;;  %v5388_v10 = vld [vmem:[%s9011_s19 + $0x18] sm:$0xff] }
0x28a9   :  { %v6967_v63 = vpop.eup %6966 }
0x28aa   :  { %v5106_v48 = vmul.f32 %v6967_v63, %v5104_v57 }
0x290e   :  { %v5109_v42 = vpop.permute.xlu0 %5108 }
0x290f   :  { %v5111_v15 = vmul.f32 %v6967_v63, %v5109_v42 }
0x2911   :  { %5113 = vrot.lane.b32.xlu1 %v5111_v15, %s7440_s5 }
0x2983   :  { %v5114_v58 = vpop.permute.xlu1 %5113 }
0x2984   :  { %v5116_v0 = vadd.f32 %v5114_v58, %v5106_v48  ;;  %v5389_v58 = vld [vmem:[%s9011_s19 + $0x20] sm:$0xff] }
0x2986   :  { %6968 = vtanh.f32 %v5116_v0  ;;  %v5220_v41 = vrot.slane %v5116_v0, 6  ;;  %v5390_v0 = vld [vmem:[%s9011_s19 + $0x28] sm:$0xff] }
0x2987   :  { %6970 = vpow2.f32 %v5938_v9  ;;  %v5391_v9 = vld [vmem:[%s9011_s19 + $0x30] sm:$0xff] }
0x2990   :  { %v6969_v53 = vpop.eup %6968 }
0x2991   :  { %5119 = vrot.lane.b32.xlu0 %v6969_v53, %s7440_s5  ;;  %v6971_v54 = vpop.eup %6970  ;;  %v6302_v53 = vpack.c.bf16 %v5390_v0, %v5389_v58 }
0x2992   :  { %v5097_v3 = vadd.f32 1.0, %v6971_v54  ;;  %v5392_v54 = vld [vmem:[%s9011_s19 + $0x38] sm:$0xff] }
0x2994   :  { %6972 = vrcp.f32 %v5097_v3  ;;  %v6306_v3 = vpack.c.bf16 %v5392_v54, %v5391_v9 }
0x299e   :  { %v6973_v16 = vpop.eup %6972 }
0x2a03   :  { %v5120_v4 = vpop.permute.xlu0 %5119 }
0x2a04   :  { %v8910_v23 = vmul.f32 %v6973_v16, %v5120_v4  ;;  %v5483_v16 = vld [vmem:[#allocation26] sm:$0xff]  ;;  %v5484_v4 = vld [vmem:[#allocation26 + $0x8] sm:$0xff] }
0x2a06   :  { %v5124_v37 = vrot.slane %v8910_v23, 2  ;;  %v5358_v21 = vsel %vm4166_vm2, %v8893_v24, %v8910_v23 }
0x2a08   :  { %5939 = vmatmul.mubr.msk.f32.vlgmr.msra.gmra.mrb[34].mxu1 %vm3255_vm15, %v5124_v37  ;;  %v6310_v37 = vpack.c.bf16 %v5484_v4, %v5483_v16 }
0x2a0a   :  { %6311 = vmatprep.subr.bf16.mxu0 %v6310_v37 }
0x2adb   :  { %v5193_v17 = vpop.f32.mrb[34].mxu1 }
0x2adc   :  { %v5195_v29 = vpop.f32.mrb[35].mxu1  ;;  %v5200_v46 = vrot.slane %v5193_v17, 4 }
0x2add   :  { %v5201_v2 = vrot.slane %v5195_v29, 4 }
0x2ade   :  { %v5204_v30 = vadd.f32 %v5200_v46, %v8888_v44 }
0x2adf   :  { %v5205_v1 = vadd.f32 %v5201_v2, %v8880_v32 }
0x2ae0   :  { %v5940_v27 = vmul.f32 -1.442695, %v5204_v30  ;;  %v5375_v30 = vrot.slane %v8804_v26, 2 }
0x2ae1   :  { %6974 = vtanh.f32 %v5205_v1  ;;  %v5941_v55 = vmul.f32 -1.442695, %v5205_v1 }
0x2ae2   :  { %6976 = vpow2.f32 %v5940_v27 }
0x2aeb   :  { %v6975_v43 = vpop.eup %6974 }
0x2aec   :  { %5224 = vrot.lane.b32.xlu1 %v6975_v43, %s7440_s5  ;;  %v6977_v60 = vpop.eup %6976 }
0x2aed   :  { %v5212_v22 = vadd.f32 1.0, %v6977_v60 }
0x2aef   :  { %6978 = vrcp.f32 %v5212_v22 }
0x2af9   :  { %v6979_v38 = vpop.eup %6978 }
0x2afa   :  { %v5222_v14 = vmul.f32 %v6979_v38, %v5220_v41 }
0x2b5e   :  { %v5225_v20 = vpop.permute.xlu1 %5224 }
0x2b5f   :  { %v5227_v56 = vmul.f32 %v6979_v38, %v5225_v20  ;;  %v5382_v20 = vsel %vm4170_vm6, %v8866_v13, %v5375_v30  ;;  %v5485_v13 = vld [vmem:[#allocation26 + $0x10] sm:$0xff] }
0x2b61   :  { %5229 = vrot.lane.b32.xlu0 %v5227_v56, %s7440_s5  ;;  %v5366_v56 = vrot.slane %v8910_v23, 6 }
0x2bd3   :  { %v5230_v49 = vpop.permute.xlu0 %5229 }
0x2bd4   :  { %v5232_v50 = vadd.f32 %v5230_v49, %v5222_v14  ;;  %v5368_v14 = vrot.slane %v8893_v24, 2 }
0x2bd6   :  { %6980 = vtanh.f32 %v5232_v50  ;;  %v5336_v42 = vrot.slane %v5232_v50, 6 }
0x2bd7   :  { %6982 = vpow2.f32 %v5941_v55  ;;  %v5486_v55 = vld [vmem:[#allocation26 + $0x18] sm:$0xff] }
0x2bd8   :  { %v6314_v23 = vpack.c.bf16 %v5486_v55, %v5485_v13 }
0x2be0   :  { %v6981_v18 = vpop.eup %6980 }
0x2be1   :  { %5235 = vrot.lane.b32.xlu1 %v6981_v18, %s7440_s5  ;;  %v6983_v52 = vpop.eup %6982 }
0x2be2   :  { %v5213_v35 = vadd.f32 1.0, %v6983_v52  ;;  %v5945_v52 = vld [vmem:[#allocation25] ss:$0 sm:$0xff] }
0x2be4   :  { %6984 = vrcp.f32 %v5213_v35 }
0x2bee   :  { %v6985_v7 = vpop.eup %6984 }
0x2c53   :  { %v5236_v40 = vpop.permute.xlu1 %5235 }
0x2c54   :  { %v8919_v39 = vmul.f32 %v6985_v7, %v5236_v40 }
0x2c56   :  { %v5240_v51 = vrot.slane %v8919_v39, 4  ;;  %v8927_v47 = vsel %vm4168_vm5, %v5358_v21, %v8919_v39  ;;  %v5364_v60 = vrot.slane %v8919_v39, 2 }
0x2c58   :  { %5942 = vmatmul.mubr.msk.f32.vlgmr.msra.gmra.mrb[40].mxu0 %vm3255_vm15, %v5240_v51 }
0x2c59   :  { %6313 = vmatpush3.bf16.msra.mxu0 %v6310_v37 }
0x2c5a   :  { %6315 = vmatprep.subr.bf16.mxu0 %v6314_v23 }
0x2c5d   :  { %6317 = vmatpush3.bf16.msra.mxu0 %v6314_v23 }
0x2d2b   :  { %v5309_v33 = vpop.f32.mrb[40].mxu0 }
0x2d2c   :  { %v5311_v6 = vpop.f32.mrb[41].mxu0  ;;  %v5316_v31 = vrot.slane %v5309_v33, 2 }
0x2d2d   :  { %v5317_v34 = vrot.slane %v5311_v6, 2 }
0x2d2e   :  { %v5320_v59 = vadd.f32 %v5316_v31, %v8888_v44  ;;  %v5387_v44 = vld [vmem:[%s9011_s19 + $0x10] sm:$0xff] }
0x2d2f   :  { %v5321_v12 = vadd.f32 %v5317_v34, %v8880_v32  ;;  %v5385_v32 = vld [vmem:[%s9011_s19] sm:$0xff]  ;;  %v6298_v63 = vpack.c.bf16 %v5388_v10, %v5387_v44  ;;  %s7441_s19 = smov [#allocation29]  }
0x2d30   :  { %v5943_v28 = vmul.f32 -1.442695, %v5320_v59  ;;  %v6294_v25 = vpack.c.bf16 %v5386_v61, %v5385_v32 }
0x2d31   :  { %6986 = vtanh.f32 %v5321_v12  ;;  %v5944_v29 = vmul.f32 -1.442695, %v5321_v12 }
0x2d32   :  { %6988 = vpow2.f32 %v5943_v28  ;;  %6295 = vmatprep.subr.bf16.mxu1 %v6294_v25 }
0x2d33   :  { %6297 = vmatpush3.bf16.msra.mxu1 %v6294_v25 }
0x2d34   :  { %6299 = vmatprep.subr.bf16.mxu1 %v6298_v63 }
0x2d37   :  { %6301 = vmatpush3.bf16.msra.mxu1 %v6298_v63 }
0x2d38   :  { %6303 = vmatprep.subr.bf16.mxu1 %v6302_v53 }
0x2d3b   :  { %v6987_v5 = vpop.eup %6986  ;;  %6305 = vmatpush3.bf16.msra.mxu1 %v6302_v53 }
0x2d3c   :  { %5340 = vrot.lane.b32.xlu0 %v6987_v5, %s7440_s5  ;;  %v6989_v45 = vpop.eup %6988  ;;  %6307 = vmatprep.subr.bf16.mxu1 %v6306_v3 }
0x2d3d   :  { %v5328_v19 = vadd.f32 1.0, %v6989_v45 }
0x2d3f   :  { %6990 = vrcp.f32 %v5328_v19  ;;  %6309 = vmatpush3.bf16.msra.mxu1 %v6306_v3 }
0x2d49   :  { %v6991_v36 = vpop.eup %6990 }
0x2d4a   :  { %v5338_v15 = vmul.f32 %v6991_v36, %v5336_v42 }
0x2dae   :  { %v5341_v8 = vpop.permute.xlu0 %5340 }
0x2daf   :  { %v5343_v62 = vmul.f32 %v6991_v36, %v5341_v8 }
0x2db1   :  { %5345 = vrot.lane.b32.xlu1 %v5343_v62, %s7440_s5 }
0x2e23   :  { %v5346_v57 = vpop.permute.xlu1 %5345 }
0x2e24   :  { %v5348_v48 = vadd.f32 %v5346_v57, %v5338_v15 }
0x2e26   :  { %6992 = vtanh.f32 %v5348_v48 }
0x2e27   :  { %6994 = vpow2.f32 %v5944_v29 }
0x2e30   :  { %v6993_v17 = vpop.eup %6992 }
0x2e31   :  { %5351 = vrot.lane.b32.xlu0 %v6993_v17, %s7440_s5  ;;  %v6995_v2 = vpop.eup %6994  ;;  %s5582_s5 = sshll.u32 %s7441_s19, 4  ;;  %s5583_s5 = int_to_ptr.vmem [resolvable:$true] %s5582_s5 }
0x2e32   :  { %v5329_v1 = vadd.f32 1.0, %v6995_v2  ;;  %s7372_s18 = scalar_lea.vmem %s5583_s5, 256  ;;  %p7377_p11 = scmp.lt.s32.totalorder %s5583_s5, %s5583_s5 }
0x2e33   :  { %p7373_p10 = scmp.ne.s32.totalorder %s5583_s5, %s7372_s18  ;;  %p7378_p12 = scmp.lt.s32.totalorder %s7372_s18, %s7372_s18 }
0x2e34   :  { %6996 = vrcp.f32 %v5329_v1 }
0x2e35   :  { %p7379_p13 = por %p7378_p12, %p7377_p11 }
0x2e37   :  { %p7380_p0 = pnand %p7379_p13, %p7373_p10 }
0x2e3e   :  { %v6997_v43 = vpop.eup %6996 }
0x2ea3   :  { %v5352_v46 = vpop.permute.xlu0 %5351 }
0x2ea4   :  { %v5354_v27 = vmul.f32 %v6997_v43, %v5352_v46 }
0x2ea6   :  { %v5360_v22 = vsel %vm4170_vm6, %v8927_v47, %v5354_v27  ;;  %v5362_v38 = vrot.slane %v5354_v27, 6 }
0x2ea7   :  { %v5384_v41 = vsel %vm9102_vm1, %v5360_v22, %v5382_v20 }
0x2ea8   :  { %v5377_v49 = vsel %vm4166_vm2, %v5362_v38, %v5364_v60 }
0x2ea9   :  { %v5378_v26 = vsel %vm4168_vm5, %v5377_v49, %v5366_v56 }
0x2eaa   :  { %v5379_v50 = vsel %vm4170_vm6, %v5378_v26, %v5368_v14 }
0x2eab   :  { %v5383_v18 = vsel %vm9103_vm11, %v8860_v11, %v5379_v50  ;;  %v5948_v11 = vld [vmem:[#allocation28] ss:$0 sm:$0xff] }
0x2eac   :  { %6000 = vmatprep.mubr.msk.f32.mxu1 %vm3255_vm15, %v5383_v18 }
0x2ead   :  { %6001 = vmatmul.mubr.msk.f32.vlgmr.msra.gmra.mrb[36].mxu1 %vm3255_vm15, %v5384_v41 }
0x2f80   :  { %v6002_v24 = vpop.f32.mrb[36].mxu1 }
0x2f81   :  { %v5478_v35 = vadd.f32 %v6002_v24, %v5945_v52  ;;  %v5472_v7 = vpop.f32.mrb[37].mxu1 }
0x2f82   :  { %v5473_v40 = vadd.f32 %v5945_v52, %v5472_v7 }
0x2f83   :  { %v5482_v21 = vmax.f32 %v5478_v35, 0.0 }
0x2f84   :  { %v5481_v39 = vmax.f32 %v5473_v40, 0.0 }
0x2f86   :  { %6011 = vmatprep.mubr.msk.f32.mxu0 %vm9104_vm7, %v5481_v39 }
0x2f87   :  { %6012 = vmatmul.mubr.msk.f32.vlgmr.msra.gmra.mrb[42].mxu0 %vm9091_vm0, %v5482_v21 }
0x305a   :  { %v6013_v51 = vpop.f32.mrb[42].mxu0 }
0x305b   :  { %v5572_v47 = vadd.f32 %v6013_v51, %v5948_v11  ;;  %v5566_v33 = vpop.f32.mrb[43].mxu0 }
0x305c   :  { %v5567_v6 = vadd.f32 %v5948_v11, %v5566_v33 }
0x305d   :  { %5576 = vst [vmem:[#allocation29 + $0x8] sm:$0xff] %v5572_v47 }
0x305e   :  { %5575 = vst [vmem:[#allocation29] sm:$0xff] %v5567_v6 }
0x305f   :  { %7383 = shalt.err (!%p7380_p0)
}
0x3060   :  { %s9105_s4 = sld [smem:[#allocation48_spill]] }
0x3066   :  { %s7384_s15 = scalar_lea.hbm %s9105_s4, 256 }
0x3067   :  { %p7385_p1 = scmp.ne.s32.totalorder %s9105_s4, %s7384_s15  ;;  %p7388_p2 = scmp.lt.u32.totalorder %s7384_s15, %s9105_s4 }
0x3069   :  { %p7390_p3 = pnand %p7388_p2, %p7385_p1 }
0x306b   :  { %7393 = shalt.err (!%p7390_p3)
}
0x306c   :  { %5588 = dma.vmem_to_hbm [thread:$0]  %s5583_s5, 256, %s9105_s4, [#allocation4], %s9044_s24, %s9044_s24, %s9043_s0  }
0x306d   :  { %7412 = dma.done.wait [#allocation4], 256  }
0x306e   :  { %7413 = vsyncadd [#allocation4], 4294967040 }
0x306f   :  { %5592 = vsyncpa [#allocation3], 1 }
0x3070   :  { %5593 = vsyncpa [#allocation6], 1 }
0x3071   :  { %5594 = vsyncpa [#allocation9], 1 }
0x3072   :  { %5595 = vsyncpa [#allocation12], 1 }
0x3073   :  { %5596 = vsyncpa [#allocation15], 1 }
0x3074   :  { %5597 = vsyncpa [#allocation18], 1 }
0x3075   :  { %5598 = vsyncpa [#allocation21], 1 }
0x3076   :  { %5599 = vsyncpa [#allocation24], 1 }
0x3077   :  { %5600 = vsyncpa [#allocation27], 1 }
0x3078   :  { %5601 = vsyncpa [#allocation4], 1 }

</bundles_post_ra>
